<compile_context>
chip_gen: v6e
topology: v6e:2x2x1
jax: 0.10.0
libtpu: 0.0.40
codegen_flags: <defaults>
</compile_context>

<pallas_src>
import jax
import jax.numpy as jnp
from jax.experimental import pallas as pl
from jax.experimental.pallas import tpu as pltpu

IN_FEATURES = 3 * 64 * 64   # 12288
HIDDEN = 105
OUT = 1

HIDDEN_PAD = 128            # pad 105 -> 128 (lane width)
OUT_PAD = 128               # pad 1   -> 128 (lane-dense output store)
TB_MAX = 256                # max batch rows per grid tile (bounds VMEM)


def _round_up(x, m):
    return ((x + m - 1) // m) * m


def _flatnet_kernel(x_ref, w1_ref, b1_ref, w2_ref, b2_ref, o_ref):
    # One batch tile: fc1 + ReLU + fc2 in a single pass.  W1/b1/W2/b2 are
    # resident (constant index_map), only x and the output stream per tile.
    x_tile = x_ref[...].astype(w1_ref.dtype)          # no-op for f32 weights
    h = jnp.dot(x_tile, w1_ref[...], preferred_element_type=jnp.float32)
    h = jnp.maximum(h + b1_ref[...], 0.0)              # ReLU(fc1)
    o_ref[...] = (
        jnp.dot(h, w2_ref[...], preferred_element_type=jnp.float32)
        + b2_ref[...]
    )                                                   # fc2


def _default_weights_dtype():
    """bf16 W1 on v5e (no fast f32 MXU path, least HBM BW), f32 elsewhere."""
    try:
        kind = jax.devices()[0].device_kind.lower()
    except Exception:
        return jnp.float32
    if "v5 lite" in kind or "v5e" in kind or "v5litepod" in kind:
        return jnp.bfloat16
    return jnp.float32


def prepare_flat_imagenet_params(w1, b1, w2, b2, weights_dtype=None):
    """One-time re-layout of PyTorch Linear params (out,in) -> padded (in,out).

    Call once and reuse the result for every forward call; keeps the transpose
    + pad off the inference path.
    """
    if weights_dtype is None:
        weights_dtype = _default_weights_dtype()
    w1_p = (
        jnp.zeros((IN_FEATURES, HIDDEN_PAD), weights_dtype)
        .at[:, :HIDDEN].set(w1.T.astype(weights_dtype))
    )
    b1_p = jnp.zeros((1, HIDDEN_PAD), jnp.float32).at[0, :HIDDEN].set(b1)
    w2_p = jnp.zeros((HIDDEN_PAD, OUT_PAD), jnp.float32).at[:HIDDEN, :OUT].set(w2.T)
    b2_p = jnp.zeros((1, OUT_PAD), jnp.float32).at[0, :OUT].set(b2)
    return w1_p, b1_p, w2_p, b2_p


@jax.jit
def flat_imagenet_forward(x, w1_p, b1_p, w2_p, b2_p):
    """x: (B, 3, 64, 64) float32 (NCHW).  Params from prepare_flat_imagenet_params.

    Returns (B,) float32.
    """
    B = x.shape[0]
    x_flat = x.reshape(B, IN_FEATURES).astype(jnp.float32)   # free reshape, no copy

    # Batch tile: multiple of 8 sublanes, capped at TB_MAX, and chosen so the
    # batch axis has >= 2 blocks whenever B >= 16 (v7x megacore split).
    TB = min(TB_MAX, _round_up(pl.cdiv(B, 2), 8))
    n_b = pl.cdiv(B, TB)    # ragged last block handled by Pallas bounds masking

    # Advisory cost: x read once, W1 resident (read once per call), output write.
    bytes_accessed = (
        B * IN_FEATURES * 4
        + IN_FEATURES * HIDDEN_PAD * w1_p.dtype.itemsize
        + HIDDEN_PAD * OUT_PAD * 4
        + (HIDDEN_PAD + OUT_PAD) * 4
        + B * OUT_PAD * 4
    )
    flops = 2 * B * IN_FEATURES * HIDDEN_PAD + 2 * B * HIDDEN_PAD * OUT_PAD
    cost = pl.CostEstimate(
        flops=int(flops), transcendentals=0, bytes_accessed=int(bytes_accessed)
    )

    # Constant-index (resident) operands: single-buffered, no re-DMA ever.
    resident = dict(pipeline_mode=pl.Buffered(1))

    out_p = pl.pallas_call(
        _flatnet_kernel,
        out_shape=jax.ShapeDtypeStruct((B, OUT_PAD), jnp.float32),
        grid=(n_b,),
        in_specs=[
            pl.BlockSpec((TB, IN_FEATURES), lambda b: (b, 0)),                 # x tile
            pl.BlockSpec((IN_FEATURES, HIDDEN_PAD), lambda b: (0, 0), **resident),  # W1
            pl.BlockSpec((1, HIDDEN_PAD), lambda b: (0, 0), **resident),       # b1
            pl.BlockSpec((HIDDEN_PAD, OUT_PAD), lambda b: (0, 0), **resident), # W2
            pl.BlockSpec((1, OUT_PAD), lambda b: (0, 0), **resident),          # b2
        ],
        out_specs=pl.BlockSpec((TB, OUT_PAD), lambda b: (b, 0)),
        compiler_params=pltpu.CompilerParams(
            dimension_semantics=("parallel",),
            # Peak VMEM with TB=256 f32: x double-buffer ~25 MB + resident W1
            # ~6.3 MB + small operands -> ~32 MB, inside v7x's 64 MiB physical
            # and well under v5e/v6e's 128 MiB.
            vmem_limit_bytes=48 * 1024 * 1024,
        ),
        cost_estimate=cost,
    )(x_flat, w1_p, b1_p, w2_p, b2_p)

    # fc2 output is column 0; drop any ragged-block rows and flatten -> (B,)
    return out_p[:B, 0]


# TODO(synk): the module's `center` input_transform (255*x - mean) and the
# training `regime` are data-pipeline/optimizer config, not part of forward();
# they are intentionally not implemented here.


if __name__ == "__main__":
    key = jax.random.PRNGKey(0)
    k_x, k_w1, k_b1, k_w2, k_b2 = jax.random.split(key, 5)

    B = 2
    x = jax.random.normal(k_x, (B, 3, 64, 64), jnp.float32)

    # Deterministic synthetic parameters in PyTorch Linear layout (out, in).
    bound1 = 1.0 / (IN_FEATURES ** 0.5)
    w1 = jax.random.uniform(k_w1, (HIDDEN, IN_FEATURES), jnp.float32, -bound1, bound1)
    b1 = jax.random.uniform(k_b1, (HIDDEN,), jnp.float32, -bound1, bound1)
    bound2 = 1.0 / (HIDDEN ** 0.5)
    w2 = jax.random.uniform(k_w2, (OUT, HIDDEN), jnp.float32, -bound2, bound2)
    b2 = jax.random.uniform(k_b2, (OUT,), jnp.float32, -bound2, bound2)

    # High-precision pure-JAX reference of the forward pass.
    hp = jax.lax.Precision.HIGHEST
    ref_h = jnp.maximum(
        jnp.dot(x.reshape(B, -1), w1.T, precision=hp) + b1, 0.0
    )
    ref = (jnp.dot(ref_h, w2.T, precision=hp) + b2).reshape(-1)

    # --- f32-weight path (MXU default precision => allclose, not bit-exact) ---
    params_f32 = prepare_flat_imagenet_params(
        w1, b1, w2, b2, weights_dtype=jnp.float32
    )
    out = jax.block_until_ready(flat_imagenet_forward(x, *params_f32))
    assert out.shape == (B,)
    assert jnp.allclose(out, ref, rtol=1e-2, atol=1e-2), (out, ref)

    # --- bf16 W1 streaming path: halves dominant HBM traffic, f32 accumulate ---
    params_bf16 = prepare_flat_imagenet_params(
        w1, b1, w2, b2, weights_dtype=jnp.bfloat16
    )
    out_bf16 = jax.block_until_ready(flat_imagenet_forward(x, *params_bf16))
    assert out_bf16.shape == (B,)
    assert jnp.allclose(out_bf16, ref, rtol=2e-2, atol=2e-2), (out_bf16, ref)

    print("KERNEL_OK")
</pallas_src>

<mosaic_0001>
module attributes {stable_mosaic.version = 11 : i64} {
  func.func @_flatnet_kernel(%arg0: i32, %arg1: memref<8x12288xf32, #tpu.memory_space<vmem>>, %arg2: memref<12288x128xf32, #tpu.memory_space<vmem>>, %arg3: memref<1x128xf32, #tpu.memory_space<vmem>>, %arg4: memref<128x128xf32, #tpu.memory_space<vmem>>, %arg5: memref<1x128xf32, #tpu.memory_space<vmem>>, %arg6: memref<8x128xf32, #tpu.memory_space<vmem>>) attributes {dimension_semantics = [#tpu.dimension_semantics<parallel>], iteration_bounds = array<i64: 1>, scalar_prefetch = 0 : i64, scratch_operands = 0 : i64, tpu.core_type = #tpu.core_type<tc>, window_params = [{transform_indices = @transform_0, window_bounds = array<i64: 8, 12288>}, {pipeline_mode = #tpu.pipeline_mode<synchronous>, transform_indices = @transform_1, window_bounds = array<i64: 12288, 128>}, {pipeline_mode = #tpu.pipeline_mode<synchronous>, transform_indices = @transform_2, window_bounds = array<i64: 1, 128>}, {pipeline_mode = #tpu.pipeline_mode<synchronous>, transform_indices = @transform_3, window_bounds = array<i64: 128, 128>}, {pipeline_mode = #tpu.pipeline_mode<synchronous>, transform_indices = @transform_4, window_bounds = array<i64: 1, 128>}, {transform_indices = @transform_5, window_bounds = array<i64: 8, 128>}]} {
    %c0 = arith.constant 0 : index
    %c0_0 = arith.constant 0 : index
    %0 = vector.load %arg1[%c0, %c0_0] : memref<8x12288xf32, #tpu.memory_space<vmem>>, vector<8x12288xf32>
    %c0_1 = arith.constant 0 : index
    %c0_2 = arith.constant 0 : index
    %1 = vector.load %arg2[%c0_1, %c0_2] : memref<12288x128xf32, #tpu.memory_space<vmem>>, vector<12288x128xf32>
    %cst = arith.constant dense<0.000000e+00> : vector<8x128xf32>
    %2 = tpu.matmul %0, %1, %cst {dimension_numbers = #tpu.dot_dimension_numbers<[1], [0], [0], [1], [0, 0, 1, 1], [], []>} : vector<8x12288xf32>, vector<12288x128xf32>, vector<8x128xf32> -> vector<8x128xf32>
    %c0_3 = arith.constant 0 : index
    %c0_4 = arith.constant 0 : index
    %3 = vector.load %arg3[%c0_3, %c0_4] : memref<1x128xf32, #tpu.memory_space<vmem>>, vector<1x128xf32>
    %4 = vector.broadcast %3 : vector<1x128xf32> to vector<8x128xf32>
    %5 = arith.addf %2, %4 : vector<8x128xf32>
    %cst_5 = arith.constant 0.000000e+00 : f32
    %6 = vector.broadcast %cst_5 : f32 to vector<8x128xf32>
    %7 = arith.maximumf %5, %6 : vector<8x128xf32>
    %c0_6 = arith.constant 0 : index
    %c0_7 = arith.constant 0 : index
    %8 = vector.load %arg4[%c0_6, %c0_7] : memref<128x128xf32, #tpu.memory_space<vmem>>, vector<128x128xf32>
    %cst_8 = arith.constant dense<0.000000e+00> : vector<8x128xf32>
    %9 = tpu.matmul %7, %8, %cst_8 {dimension_numbers = #tpu.dot_dimension_numbers<[1], [0], [0], [1], [0, 0, 1, 1], [], []>} : vector<8x128xf32>, vector<128x128xf32>, vector<8x128xf32> -> vector<8x128xf32>
    %c0_9 = arith.constant 0 : index
    %c0_10 = arith.constant 0 : index
    %10 = vector.load %arg5[%c0_9, %c0_10] : memref<1x128xf32, #tpu.memory_space<vmem>>, vector<1x128xf32>
    %11 = vector.broadcast %10 : vector<1x128xf32> to vector<8x128xf32>
    %12 = arith.addf %9, %11 : vector<8x128xf32>
    %c0_11 = arith.constant 0 : index
    %c0_12 = arith.constant 0 : index
    %13 = vector.load %arg6[%c0_11, %c0_12] : memref<8x128xf32, #tpu.memory_space<vmem>>, vector<8x128xf32>
    tpu.vector_store %arg6[%c0_11, %c0_12], %12 {strides = array<i32>} : memref<8x128xf32, #tpu.memory_space<vmem>>, vector<8x128xf32>,
    return
  }
  func.func @transform_0(%arg0: i32) -> (i32, i32) {
    %c0_i32 = arith.constant 0 : i32
    %c0_i32_0 = arith.constant 0 : i32
    return %arg0, %c0_i32 : i32, i32
  }
  func.func @transform_1(%arg0: i32) -> (i32, i32) {
    %c0_i32 = arith.constant 0 : i32
    %c0_i32_0 = arith.constant 0 : i32
    %c0_i32_1 = arith.constant 0 : i32
    return %c0_i32, %c0_i32_0 : i32, i32
  }
  func.func @transform_2(%arg0: i32) -> (i32, i32) {
    %c0_i32 = arith.constant 0 : i32
    %c0_i32_0 = arith.constant 0 : i32
    %c0_i32_1 = arith.constant 0 : i32
    return %c0_i32, %c0_i32_0 : i32, i32
  }
  func.func @transform_3(%arg0: i32) -> (i32, i32) {
    %c0_i32 = arith.constant 0 : i32
    %c0_i32_0 = arith.constant 0 : i32
    %c0_i32_1 = arith.constant 0 : i32
    return %c0_i32, %c0_i32_0 : i32, i32
  }
  func.func @transform_4(%arg0: i32) -> (i32, i32) {
    %c0_i32 = arith.constant 0 : i32
    %c0_i32_0 = arith.constant 0 : i32
    %c0_i32_1 = arith.constant 0 : i32
    return %c0_i32, %c0_i32_0 : i32, i32
  }
  func.func @transform_5(%arg0: i32) -> (i32, i32) {
    %c0_i32 = arith.constant 0 : i32
    %c0_i32_0 = arith.constant 0 : i32
    return %arg0, %c0_i32 : i32, i32
  }
}

</mosaic_0001>

<bundles_post_ra>
// kernel: flat_imagenet_forward.1
= control target key start
LH: loop header
LB: loop body
LE: loop exit
PB: predicated region body
PF: predicated region fallthrough
CT: control target
= control target key end

     0   :  { %10 = vsyncpa [#allocation3], 0  ;;  %s8551_s0 = inlined_call_operand.vmem [shape: f32[2,12288], index: 0, kind: input, shape index: {}]   ;;  %s8552_s1 = inlined_call_operand.hbm [shape: f32[12288,128], index: 1, kind: input, shape index: {}]   ;;  %s8553_s2 = inlined_call_operand.hbm [shape: f32[1,128], index: 2, kind: input, shape index: {}]   ;;  %s8554_s3 = inlined_call_operand.hbm [shape: f32[128,128], index: 3, kind: input, shape index: {}]   ;;  %s8555_s4 = inlined_call_operand.hbm [shape: f32[1,128], index: 4, kind: input, shape index: {}]   ;;  %s8556_s5 = inlined_call_operand.vmem [shape: f32[2,128], index: 5, kind: output, shape index: {}]  }
   0x1   :  { %11 = vsyncpa [#allocation5], 0 }
   0x2   :  { %12 = vsyncpa [#allocation8], 0  ;;  %s8094_s18 = smov [#allocation4]   ;;  %s8095_s20 = smov [#allocation2]  }
   0x3   :  { %s33_s19 = sshll.u32 %s8094_s18, 4  ;;  %s20_s21 = sshll.u32 %s8095_s20, 4  ;;  %s34_s19 = int_to_ptr.vmem [resolvable:$true] %s33_s19  ;;  %s21_s21 = int_to_ptr.vmem [resolvable:$true] %s20_s21 }
   0x4   :  { %s8016_s22 = scalar_lea.vmem %s34_s19, 16  ;;  %s8020_s23 = scalar_lea.vmem %s34_s19, 32 }
   0x5   :  { %p8017_p0 = scmp.ne.s32.totalorder %s34_s19, %s8016_s22  ;;  %p8021_p1 = scmp.lt.s32.totalorder %s34_s19, %s34_s19 }
   0x6   :  { %p8022_p2 = scmp.lt.s32.totalorder %s8020_s23, %s8016_s22 }
   0x8   :  { %p8023_p3 = por %p8022_p2, %p8021_p1 }
   0xa   :  { %p8024_p4 = pnand %p8023_p3, %p8017_p0 }
   0xc   :  { %8027 = shalt.err (!%p8024_p4)
}
   0xd   :  { %36 = dma.hbm_to_vmem [thread:$0]  %s8553_s2, 16, %s34_s19, [#allocation5]  }
   0xe   :  { %s8036_s26 = scalar_lea.vmem %s21_s21, 196608  ;;  %p8041_p6 = scmp.lt.s32.totalorder %s21_s21, %s21_s21 }
   0xf   :  { %p8037_p5 = scmp.ne.s32.totalorder %s21_s21, %s8036_s26  ;;  %p8042_p7 = scmp.lt.s32.totalorder %s8036_s26, %s8036_s26 }
  0x11   :  { %p8043_p8 = por %p8042_p7, %p8041_p6 }
  0x13   :  { %p8044_p9 = pnand %p8043_p8, %p8037_p5 }
  0x15   :  { %8047 = shalt.err (!%p8044_p9)
}
  0x16   :  { %s8096_s27 = smov 128   ;;  %s8097_s28 = smov 8  }
  0x17   :  { %26 = dma.hbm_to_vmem [thread:$0]  %s8552_s1, 196608, %s21_s21, [#allocation3], %s8096_s27, %s8096_s27, %s8097_s28  }
  0x18   :  { %s8098_s6 = smov [#allocation6]   ;;  %s8099_s8 = smov [#allocation7]  }
  0x19   :  { %s42_s7 = sshll.u32 %s8098_s6, 4  ;;  %s55_s9 = sshll.u32 %s8099_s8, 4  ;;  %s43_s7 = int_to_ptr.vmem [resolvable:$true] %s42_s7  ;;  %s56_s9 = int_to_ptr.vmem [resolvable:$true] %s55_s9 }
  0x1a   :  { %s8056_s2 = scalar_lea.vmem %s43_s7, 2048  ;;  %p8061_p11 = scmp.lt.s32.totalorder %s43_s7, %s43_s7 }
  0x1b   :  { %p8057_p10 = scmp.ne.s32.totalorder %s43_s7, %s8056_s2  ;;  %p8062_p12 = scmp.lt.s32.totalorder %s8056_s2, %s8056_s2 }
  0x1d   :  { %p8063_p13 = por %p8062_p12, %p8061_p11 }
  0x1f   :  { %p8064_p0 = pnand %p8063_p13, %p8057_p10 }
  0x21   :  { %8067 = shalt.err (!%p8064_p0)
}
  0x22   :  { %48 = dma.hbm_to_vmem [thread:$0]  %s8554_s3, 2048, %s43_s7, [#allocation5], %s8096_s27, %s8096_s27, %s8097_s28  }
  0x23   :  { %s8076_s12 = scalar_lea.vmem %s56_s9, 16  ;;  %s8080_s1 = scalar_lea.vmem %s56_s9, 32 }
  0x24   :  { %p8077_p1 = scmp.ne.s32.totalorder %s56_s9, %s8076_s12  ;;  %p8081_p2 = scmp.lt.s32.totalorder %s56_s9, %s56_s9 }
  0x25   :  { %p8082_p3 = scmp.lt.s32.totalorder %s8080_s1, %s8076_s12 }
  0x27   :  { %p8083_p4 = por %p8082_p3, %p8081_p2 }
  0x29   :  { %p8084_p5 = pnand %p8083_p4, %p8077_p1 }
  0x2b   :  { %8087 = shalt.err (!%p8084_p5)
}
  0x2c   :  { %58 = dma.hbm_to_vmem [thread:$0]  %s8555_s4, 16, %s56_s9, [#allocation8]  }
  0x2d   :  { %8088 = dma.done.wait [#allocation3], 196608  }
  0x2e   :  { %8089 = vsyncadd [#allocation3], 4294770688 }
  0x2f   :  { %8090 = dma.done.wait [#allocation5], 2064  }
  0x30   :  { %8091 = vsyncadd [#allocation5], 4294965232 }
  0x31   :  { %8092 = dma.done.wait [#allocation8], 16  }
  0x32   :  { %8093 = vsyncadd [#allocation8], 4294967280  ;;  %v198_v0 = vld [vmem:[#allocation2 + $0xf8] sm:$0xff]  ;;  %v197_v4 = vld [vmem:[#allocation2 + $0xf0] sm:$0xff]  ;;  %v8100_v30 = vmov 1983009808   ;;  %v1813_v32 = vlaneseq }
  0x33   :  { %v230_v1 = vld [vmem:[#allocation2 + $0x1f8] sm:$0xff]  ;;  %6267 = vmatprep.subr.mxu0 %v198_v0  ;;  %v229_v5 = vld [vmem:[#allocation2 + $0x1f0] sm:$0xff]  ;;  %v196_v8 = vld [vmem:[#allocation2 + $0xe8] sm:$0xff]  ;;  %v1811_v31 = vunpack.c.l.s4 %v8100_v30  ;;  %vm8102_vm0 = vmmov 0  }
  0x34   :  { %v182_v2 = vld [vmem:[#allocation2 + $0x78] sm:$0xff]  ;;  %6302 = vmatprep.subr.mxu1 %v230_v1  ;;  %v181_v6 = vld [vmem:[#allocation2 + $0x70] sm:$0xff]  ;;  %v228_v9 = vld [vmem:[#allocation2 + $0x1e8] sm:$0xff]  ;;  %v1814_v42 = vshrl.u32 %v1813_v32, 7 }
  0x35   :  { %v214_v3 = vld [vmem:[#allocation2 + $0x178] sm:$0xff]  ;;  %6268 = vmatpush3.msra.mxu0 %v182_v2  ;;  %v213_v7 = vld [vmem:[#allocation2 + $0x170] sm:$0xff]  ;;  %v180_v10 = vld [vmem:[#allocation2 + $0x68] sm:$0xff]  ;;  %v1812_v41 = vunpack.c.0.s8 %v1811_v31 }
  0x36   :  { %6303 = vmatpush3.msra.mxu1 %v214_v3  ;;  %6269 = vmatprep.subr.mxu0 %v197_v4  ;;  %v212_v11 = vld [vmem:[#allocation2 + $0x168] sm:$0xff]  ;;  %v195_v12 = vld [vmem:[#allocation2 + $0xe0] sm:$0xff]  ;;  %v194_v16 = vld [vmem:[#allocation2 + $0xd8] sm:$0xff] }
  0x37   :  { %6304 = vmatprep.subr.mxu1 %v229_v5  ;;  %6270 = vmatpush3.msra.mxu0 %v181_v6  ;;  %v227_v13 = vld [vmem:[#allocation2 + $0x1e0] sm:$0xff]  ;;  %v226_v17 = vld [vmem:[#allocation2 + $0x1d8] sm:$0xff]  ;;  %v193_v20 = vld [vmem:[#allocation2 + $0xd0] sm:$0xff]  ;;  %v8145_v53 = vsub.s32 %v1812_v41, %v1814_v42 }
  0x38   :  { %6305 = vmatpush3.msra.mxu1 %v213_v7  ;;  %6271 = vmatprep.subr.mxu0 %v196_v8  ;;  %v179_v14 = vld [vmem:[#allocation2 + $0x60] sm:$0xff]  ;;  %v178_v18 = vld [vmem:[#allocation2 + $0x58] sm:$0xff]  ;;  %v225_v21 = vld [vmem:[#allocation2 + $0x1d0] sm:$0xff] }
  0x39   :  { %6306 = vmatprep.subr.mxu1 %v228_v9  ;;  %v211_v15 = vld [vmem:[#allocation2 + $0x160] sm:$0xff]  ;;  %6272 = vmatpush3.msra.mxu0 %v180_v10  ;;  %v210_v19 = vld [vmem:[#allocation2 + $0x158] sm:$0xff]  ;;  %v177_v22 = vld [vmem:[#allocation2 + $0x50] sm:$0xff] }
  0x3a   :  { %6307 = vmatpush3.msra.mxu1 %v212_v11  ;;  %6273 = vmatprep.subr.mxu0 %v195_v12  ;;  %v209_v23 = vld [vmem:[#allocation2 + $0x150] sm:$0xff]  ;;  %v192_v24 = vld [vmem:[#allocation2 + $0xc8] sm:$0xff]  ;;  %v191_v28 = vld [vmem:[#allocation2 + $0xc0] sm:$0xff] }
  0x3b   :  { %6308 = vmatprep.subr.mxu1 %v227_v13  ;;  %6274 = vmatpush3.msra.mxu0 %v179_v14  ;;  %v224_v25 = vld [vmem:[#allocation2 + $0x1c8] sm:$0xff]  ;;  %v223_v29 = vld [vmem:[#allocation2 + $0x1c0] sm:$0xff]  ;;  %v190_v35 = vld [vmem:[#allocation2 + $0xb8] sm:$0xff] }
  0x3c   :  { %6309 = vmatpush3.msra.mxu1 %v211_v15  ;;  %6275 = vmatprep.subr.mxu0 %v194_v16  ;;  %v176_v26 = vld [vmem:[#allocation2 + $0x48] sm:$0xff]  ;;  %v175_v33 = vld [vmem:[#allocation2 + $0x40] sm:$0xff]  ;;  %v222_v36 = vld [vmem:[#allocation2 + $0x1b8] sm:$0xff] }
  0x3d   :  { %6310 = vmatprep.subr.mxu1 %v226_v17  ;;  %6276 = vmatpush3.msra.mxu0 %v178_v18  ;;  %v208_v27 = vld [vmem:[#allocation2 + $0x148] sm:$0xff]  ;;  %v207_v34 = vld [vmem:[#allocation2 + $0x140] sm:$0xff]  ;;  %v174_v37 = vld [vmem:[#allocation2 + $0x38] sm:$0xff] }
  0x3e   :  { %6311 = vmatpush3.msra.mxu1 %v210_v19  ;;  %6277 = vmatprep.subr.mxu0 %v193_v20  ;;  %v206_v38 = vld [vmem:[#allocation2 + $0x138] sm:$0xff]  ;;  %v189_v39 = vld [vmem:[#allocation2 + $0xb0] sm:$0xff]  ;;  %v188_v45 = vld [vmem:[#allocation2 + $0xa8] sm:$0xff] }
  0x3f   :  { %6312 = vmatprep.subr.mxu1 %v225_v21  ;;  %6278 = vmatpush3.msra.mxu0 %v177_v22  ;;  %v221_v40 = vld [vmem:[#allocation2 + $0x1b0] sm:$0xff]  ;;  %v220_v46 = vld [vmem:[#allocation2 + $0x1a8] sm:$0xff]  ;;  %v187_v49 = vld [vmem:[#allocation2 + $0xa0] sm:$0xff] }
  0x40   :  { %6313 = vmatpush3.msra.mxu1 %v209_v23  ;;  %6279 = vmatprep.subr.mxu0 %v192_v24  ;;  %v173_v43 = vld [vmem:[#allocation2 + $0x30] sm:$0xff]  ;;  %v172_v47 = vld [vmem:[#allocation2 + $0x28] sm:$0xff]  ;;  %v219_v50 = vld [vmem:[#allocation2 + $0x1a0] sm:$0xff] }
  0x41   :  { %6314 = vmatprep.subr.mxu1 %v224_v25  ;;  %6280 = vmatpush3.msra.mxu0 %v176_v26  ;;  %v205_v44 = vld [vmem:[#allocation2 + $0x130] sm:$0xff]  ;;  %v204_v48 = vld [vmem:[#allocation2 + $0x128] sm:$0xff]  ;;  %v171_v51 = vld [vmem:[#allocation2 + $0x20] sm:$0xff] }
  0x42   :  { %6315 = vmatpush3.msra.mxu1 %v208_v27  ;;  %6281 = vmatprep.subr.mxu0 %v191_v28  ;;  %v203_v52 = vld [vmem:[#allocation2 + $0x120] sm:$0xff]  ;;  %v186_v57 = vld [vmem:[#allocation2 + $0x98] sm:$0xff]  ;;  %v185_v2 = vld [vmem:[#allocation2 + $0x90] sm:$0xff] }
  0x43   :  { %6316 = vmatprep.subr.mxu1 %v223_v29  ;;  %6282 = vmatpush3.msra.mxu0 %v175_v33  ;;  %v71_v54 = vld [vmem:[%s8551_s0] sm:$0xff]  ;;  %v218_v58 = vld [vmem:[#allocation2 + $0x198] sm:$0xff]  ;;  %v217_v3 = vld [vmem:[#allocation2 + $0x190] sm:$0xff] }
  0x44   :  { %6317 = vmatpush3.msra.mxu1 %v207_v34  ;;  %6283 = vmatprep.subr.mxu0 %v190_v35  ;;  %v95_v55 = vld [vmem:[%s8551_s0 + $0xc0] sm:$0xff]  ;;  %v170_v62 = vld [vmem:[#allocation2 + $0x18] sm:$0xff]  ;;  %v169_v5 = vld [vmem:[#allocation2 + $0x10] sm:$0xff] }
  0x45   :  { %6318 = vmatprep.subr.mxu1 %v222_v36  ;;  %6284 = vmatpush3.msra.mxu0 %v174_v37  ;;  %v119_v56 = vld [vmem:[%s8551_s0 + $0x180] sm:$0xff]  ;;  %v1806_v60 = vcombine.low %v71_v54, %v95_v55  ;;  %v1807_v61 = vcombine.high %v71_v54, %v95_v55  ;;  %v202_v63 = vld [vmem:[#allocation2 + $0x118] sm:$0xff]  ;;  %v201_v6 = vld [vmem:[#allocation2 + $0x110] sm:$0xff] }
  0x46   :  { %6319 = vmatpush3.msra.mxu1 %v206_v38  ;;  %6285 = vmatprep.subr.mxu0 %v189_v39  ;;  %v143_v59 = vld [vmem:[%s8551_s0 + $0x240] sm:$0xff]  ;;  %v184_v8 = vld [vmem:[#allocation2 + $0x88] sm:$0xff]  ;;  %v262_v21 = vld [vmem:[#allocation2 + $0x2f8] sm:$0xff] }
  0x47   :  { %6320 = vmatprep.subr.mxu1 %v221_v40  ;;  %6286 = vmatpush3.msra.mxu0 %v173_v43  ;;  %v1808_v0 = vcombine.low %v119_v56, %v143_v59  ;;  %v1809_v1 = vcombine.high %v119_v56, %v143_v59  ;;  %v1816_v4 = vrot.slane %v1806_v60, %v8145_v53  ;;  %v216_v9 = vld [vmem:[#allocation2 + $0x188] sm:$0xff]  ;;  %v183_v14 = vld [vmem:[#allocation2 + $0x80] sm:$0xff]  ;;  %v294_v23 = vld [vmem:[#allocation2 + $0x3f8] sm:$0xff] }
  0x48   :  { %6321 = vmatpush3.msra.mxu1 %v205_v44  ;;  %6287 = vmatprep.subr.mxu0 %v188_v45  ;;  %v1823_v10 = vrot.slane %v1807_v61, %v8145_v53  ;;  %v168_v12 = vld [vmem:[#allocation2 + $0x8] sm:$0xff]  ;;  %v215_v15 = vld [vmem:[#allocation2 + $0x180] sm:$0xff]  ;;  %v246_v24 = vld [vmem:[#allocation2 + $0x278] sm:$0xff] }
  0x49   :  { %6322 = vmatprep.subr.mxu1 %v220_v46  ;;  %6288 = vmatpush3.msra.mxu0 %v172_v47  ;;  %v1830_v7 = vrot.slane %v1808_v0, %v8145_v53  ;;  %v1837_v11 = vrot.slane %v1809_v1, %v8145_v53  ;;  %v200_v13 = vld [vmem:[#allocation2 + $0x108] sm:$0xff]  ;;  %v167_v17 = vld [vmem:[#allocation2] sm:$0xff]  ;;  %v278_v25 = vld [vmem:[#allocation2 + $0x378] sm:$0xff] }
  0x4a   :  { %6323 = vmatpush3.msra.mxu1 %v204_v48  ;;  %6289 = vmatprep.subr.mxu0 %v187_v49  ;;  %v199_v19 = vld [vmem:[#allocation2 + $0x100] sm:$0xff]  ;;  %v261_v26 = vld [vmem:[#allocation2 + $0x2f0] sm:$0xff]  ;;  %v260_v30 = vld [vmem:[#allocation2 + $0x2e8] sm:$0xff] }
  0x4b   :  { %6324 = vmatprep.subr.mxu1 %v219_v50  ;;  %6290 = vmatpush3.msra.mxu0 %v171_v51  ;;  %v1839_v16 = vcombine.high %v1816_v4, %v1830_v7  ;;  %v1838_v18 = vcombine.low %v1816_v4, %v1830_v7  ;;  %v1841_v20 = vcombine.high %v1823_v10, %v1837_v11  ;;  %v293_v27 = vld [vmem:[#allocation2 + $0x3f0] sm:$0xff]  ;;  %v292_v31 = vld [vmem:[#allocation2 + $0x3e8] sm:$0xff]  ;;  %v259_v34 = vld [vmem:[#allocation2 + $0x2e0] sm:$0xff] }
  0x4c   :  { %6325 = vmatpush3.msra.mxu1 %v203_v52  ;;  %6291 = vmatprep.subr.mxu0 %v186_v57  ;;  %v1840_v22 = vcombine.low %v1823_v10, %v1837_v11  ;;  %v245_v28 = vld [vmem:[#allocation2 + $0x270] sm:$0xff]  ;;  %v244_v32 = vld [vmem:[#allocation2 + $0x268] sm:$0xff]  ;;  %v291_v35 = vld [vmem:[#allocation2 + $0x3e0] sm:$0xff] }
  0x4d   :  { %6326 = vmatprep.subr.mxu1 %v218_v58  ;;  %6292 = vmatpush3.msra.mxu0 %v170_v62  ;;  %v277_v29 = vld [vmem:[#allocation2 + $0x370] sm:$0xff]  ;;  %v276_v33 = vld [vmem:[#allocation2 + $0x368] sm:$0xff]  ;;  %v243_v36 = vld [vmem:[#allocation2 + $0x260] sm:$0xff] }
  0x4e   :  { %6327 = vmatpush3.msra.mxu1 %v202_v63  ;;  %6293 = vmatprep.subr.mxu0 %v185_v2  ;;  %v275_v37 = vld [vmem:[#allocation2 + $0x360] sm:$0xff]  ;;  %v258_v38 = vld [vmem:[#allocation2 + $0x2d8] sm:$0xff]  ;;  %v257_v42 = vld [vmem:[#allocation2 + $0x2d0] sm:$0xff] }
  0x4f   :  { %6328 = vmatprep.subr.mxu1 %v217_v3  ;;  %6294 = vmatpush3.msra.mxu0 %v169_v5  ;;  %v290_v39 = vld [vmem:[#allocation2 + $0x3d8] sm:$0xff]  ;;  %v289_v43 = vld [vmem:[#allocation2 + $0x3d0] sm:$0xff]  ;;  %v256_v46 = vld [vmem:[#allocation2 + $0x2c8] sm:$0xff] }
  0x50   :  { %6329 = vmatpush3.msra.mxu1 %v201_v6  ;;  %6295 = vmatprep.subr.mxu0 %v184_v8  ;;  %v242_v40 = vld [vmem:[#allocation2 + $0x258] sm:$0xff]  ;;  %v241_v44 = vld [vmem:[#allocation2 + $0x250] sm:$0xff]  ;;  %v288_v47 = vld [vmem:[#allocation2 + $0x3c8] sm:$0xff] }
  0x51   :  { %6330 = vmatprep.subr.mxu1 %v216_v9  ;;  %6296 = vmatpush3.msra.mxu0 %v168_v12  ;;  %v274_v41 = vld [vmem:[#allocation2 + $0x358] sm:$0xff]  ;;  %v273_v45 = vld [vmem:[#allocation2 + $0x350] sm:$0xff]  ;;  %v240_v48 = vld [vmem:[#allocation2 + $0x248] sm:$0xff] }
  0x52   :  { %6331 = vmatpush3.msra.mxu1 %v200_v13  ;;  %6297 = vmatprep.subr.mxu0 %v183_v14  ;;  %v272_v49 = vld [vmem:[#allocation2 + $0x348] sm:$0xff]  ;;  %v255_v50 = vld [vmem:[#allocation2 + $0x2c0] sm:$0xff]  ;;  %v254_v55 = vld [vmem:[#allocation2 + $0x2b8] sm:$0xff] }
  0x53   :  { %6332 = vmatprep.subr.mxu1 %v215_v15  ;;  %6298 = vmatpush3.msra.mxu0 %v167_v17  ;;  %v287_v51 = vld [vmem:[#allocation2 + $0x3c0] sm:$0xff]  ;;  %v286_v56 = vld [vmem:[#allocation2 + $0x3b8] sm:$0xff]  ;;  %v253_v59 = vld [vmem:[#allocation2 + $0x2b0] sm:$0xff] }
  0x54   :  { %2830 = vmatprep.mubr.f32.mxu0 %v1839_v16  ;;  %6333 = vmatpush3.msra.mxu1 %v199_v19  ;;  %v239_v52 = vld [vmem:[#allocation2 + $0x240] sm:$0xff]  ;;  %v238_v57 = vld [vmem:[#allocation2 + $0x238] sm:$0xff]  ;;  %v285_v60 = vld [vmem:[#allocation2 + $0x3b0] sm:$0xff] }
  0x55   :  { %2831 = vmatmul.mubr.f32.vlgmr.msra.gmra.mxu0 %v1838_v18  ;;  %2900 = vmatprep.mubr.f32.mxu1 %v1841_v20  ;;  %v271_v54 = vld [vmem:[#allocation2 + $0x340] sm:$0xff]  ;;  %v270_v58 = vld [vmem:[#allocation2 + $0x338] sm:$0xff]  ;;  %v237_v61 = vld [vmem:[#allocation2 + $0x230] sm:$0xff] }
  0x56   :  { %6337 = vmatprep.subr.mxu0 %v262_v21  ;;  %6372 = vmatprep.subr.mxu1 %v294_v23  ;;  %v269_v62 = vld [vmem:[#allocation2 + $0x330] sm:$0xff]  ;;  %v72_v63 = vld [vmem:[%s8551_s0 + $0x8] sm:$0xff]  ;;  %v251_v7 = vld [vmem:[#allocation2 + $0x2a0] sm:$0xff] }
  0x57   :  { %2901 = vmatmul.mubr.f32.vlgmr.msra.gmra.mxu1 %v1840_v22  ;;  %6338 = vmatpush3.msra.mxu0 %v246_v24  ;;  %v96_v0 = vld [vmem:[%s8551_s0 + $0xc8] sm:$0xff]  ;;  %v283_v8 = vld [vmem:[#allocation2 + $0x3a0] sm:$0xff]  ;;  %v250_v13 = vld [vmem:[#allocation2 + $0x298] sm:$0xff] }
  0x58   :  { %6373 = vmatpush3.msra.mxu1 %v278_v25  ;;  %6339 = vmatprep.subr.mxu0 %v261_v26  ;;  %v120_v1 = vld [vmem:[%s8551_s0 + $0x188] sm:$0xff]  ;;  %v1842_v9 = vcombine.low %v72_v63, %v96_v0  ;;  %v235_v11 = vld [vmem:[#allocation2 + $0x220] sm:$0xff]  ;;  %v282_v14 = vld [vmem:[#allocation2 + $0x398] sm:$0xff]  ;;  %v1843_v15 = vcombine.high %v72_v63, %v96_v0 }
  0x59   :  { %6374 = vmatprep.subr.mxu1 %v293_v27  ;;  %6340 = vmatpush3.msra.mxu0 %v245_v28  ;;  %v144_v2 = vld [vmem:[%s8551_s0 + $0x248] sm:$0xff]  ;;  %v267_v12 = vld [vmem:[#allocation2 + $0x320] sm:$0xff]  ;;  %v234_v17 = vld [vmem:[#allocation2 + $0x218] sm:$0xff] }
  0x5a   :  { %6375 = vmatpush3.msra.mxu1 %v277_v29  ;;  %6341 = vmatprep.subr.mxu0 %v260_v30  ;;  %v252_v3 = vld [vmem:[#allocation2 + $0x2a8] sm:$0xff]  ;;  %v1844_v10 = vcombine.low %v120_v1, %v144_v2  ;;  %v1845_v16 = vcombine.high %v120_v1, %v144_v2  ;;  %v266_v18 = vld [vmem:[#allocation2 + $0x318] sm:$0xff]  ;;  %v249_v19 = vld [vmem:[#allocation2 + $0x290] sm:$0xff]  ;;  %v1852_v21 = vrot.slane %v1842_v9, %v8145_v53 }
  0x5b   :  { %6376 = vmatprep.subr.mxu1 %v292_v31  ;;  %6342 = vmatpush3.msra.mxu0 %v244_v32  ;;  %v284_v4 = vld [vmem:[#allocation2 + $0x3a8] sm:$0xff]  ;;  %v281_v20 = vld [vmem:[#allocation2 + $0x390] sm:$0xff]  ;;  %v1859_v27 = vrot.slane %v1843_v15, %v8145_v53  ;;  %v247_v31 = vld [vmem:[#allocation2 + $0x280] sm:$0xff] }
  0x5c   :  { %6377 = vmatpush3.msra.mxu1 %v276_v33  ;;  %6343 = vmatprep.subr.mxu0 %v259_v34  ;;  %v236_v5 = vld [vmem:[#allocation2 + $0x228] sm:$0xff]  ;;  %v1866_v22 = vrot.slane %v1844_v10, %v8145_v53  ;;  %v233_v23 = vld [vmem:[#allocation2 + $0x210] sm:$0xff]  ;;  %v1873_v28 = vrot.slane %v1845_v16, %v8145_v53  ;;  %v279_v32 = vld [vmem:[#allocation2 + $0x380] sm:$0xff] }
  0x5d   :  { %6378 = vmatprep.subr.mxu1 %v291_v35  ;;  %6344 = vmatpush3.msra.mxu0 %v243_v36  ;;  %v268_v6 = vld [vmem:[#allocation2 + $0x328] sm:$0xff]  ;;  %v265_v24 = vld [vmem:[#allocation2 + $0x310] sm:$0xff]  ;;  %v231_v34 = vld [vmem:[#allocation2 + $0x200] sm:$0xff] }
  0x5e   :  { %6379 = vmatpush3.msra.mxu1 %v275_v37  ;;  %6345 = vmatprep.subr.mxu0 %v258_v38  ;;  %v248_v25 = vld [vmem:[#allocation2 + $0x288] sm:$0xff]  ;;  %v1875_v33 = vcombine.high %v1852_v21, %v1866_v22  ;;  %v1874_v35 = vcombine.low %v1852_v21, %v1866_v22  ;;  %v263_v36 = vld [vmem:[#allocation2 + $0x300] sm:$0xff]  ;;  %v1877_v37 = vcombine.high %v1859_v27, %v1873_v28  ;;  %v326_v38 = vld [vmem:[#allocation2 + $0x4f8] sm:$0xff] }
  0x5f   :  { %6380 = vmatprep.subr.mxu1 %v290_v39  ;;  %6346 = vmatpush3.msra.mxu0 %v242_v40  ;;  %v280_v26 = vld [vmem:[#allocation2 + $0x388] sm:$0xff]  ;;  %v1876_v39 = vcombine.low %v1859_v27, %v1873_v28  ;;  %v358_v40 = vld [vmem:[#allocation2 + $0x5f8] sm:$0xff]  ;;  %v337_v63 = vld [vmem:[#allocation2 + $0x550] sm:$0xff] }
  0x60   :  { %6381 = vmatpush3.msra.mxu1 %v274_v41  ;;  %6347 = vmatprep.subr.mxu0 %v257_v42  ;;  %v232_v29 = vld [vmem:[#allocation2 + $0x208] sm:$0xff]  ;;  %v310_v41 = vld [vmem:[#allocation2 + $0x478] sm:$0xff]  ;;  %v333_v15 = vld [vmem:[#allocation2 + $0x530] sm:$0xff] }
  0x61   :  { %6382 = vmatprep.subr.mxu1 %v289_v43  ;;  %6348 = vmatpush3.msra.mxu0 %v241_v44  ;;  %v264_v30 = vld [vmem:[#allocation2 + $0x308] sm:$0xff]  ;;  %v342_v42 = vld [vmem:[#allocation2 + $0x578] sm:$0xff]  ;;  %v325_v43 = vld [vmem:[#allocation2 + $0x4f0] sm:$0xff] }
  0x62   :  { %6383 = vmatpush3.msra.mxu1 %v273_v45  ;;  %6349 = vmatprep.subr.mxu0 %v256_v46  ;;  %v357_v44 = vld [vmem:[#allocation2 + $0x5f0] sm:$0xff]  ;;  %v320_v0 = vld [vmem:[#allocation2 + $0x4c8] sm:$0xff]  ;;  %v350_v9 = vld [vmem:[#allocation2 + $0x5b8] sm:$0xff] }
  0x63   :  { %6384 = vmatprep.subr.mxu1 %v288_v47  ;;  %6350 = vmatpush3.msra.mxu0 %v240_v48  ;;  %v309_v45 = vld [vmem:[#allocation2 + $0x470] sm:$0xff]  ;;  %v324_v47 = vld [vmem:[#allocation2 + $0x4e8] sm:$0xff]  ;;  %v302_v10 = vld [vmem:[#allocation2 + $0x438] sm:$0xff] }
  0x64   :  { %6385 = vmatpush3.msra.mxu1 %v272_v49  ;;  %6351 = vmatprep.subr.mxu0 %v255_v50  ;;  %v341_v46 = vld [vmem:[#allocation2 + $0x570] sm:$0xff]  ;;  %v356_v48 = vld [vmem:[#allocation2 + $0x5e8] sm:$0xff]  ;;  %v299_v28 = vld [vmem:[#allocation2 + $0x420] sm:$0xff] }
  0x65   :  { %6386 = vmatprep.subr.mxu1 %v287_v51  ;;  %6352 = vmatpush3.msra.mxu0 %v239_v52  ;;  %v308_v49 = vld [vmem:[#allocation2 + $0x468] sm:$0xff]  ;;  %v323_v51 = vld [vmem:[#allocation2 + $0x4e0] sm:$0xff]  ;;  %v73_v16 = vld [vmem:[%s8551_s0 + $0x10] sm:$0xff] }
  0x66   :  { %6387 = vmatpush3.msra.mxu1 %v271_v54  ;;  %6353 = vmatprep.subr.mxu0 %v254_v55  ;;  %v340_v50 = vld [vmem:[#allocation2 + $0x568] sm:$0xff]  ;;  %v355_v52 = vld [vmem:[#allocation2 + $0x5e0] sm:$0xff] }
  0x67   :  { %6388 = vmatprep.subr.mxu1 %v286_v56  ;;  %6354 = vmatpush3.msra.mxu0 %v238_v57  ;;  %v307_v54 = vld [vmem:[#allocation2 + $0x460] sm:$0xff]  ;;  %v322_v56 = vld [vmem:[#allocation2 + $0x4d8] sm:$0xff]  ;;  %v352_v1 = vld [vmem:[#allocation2 + $0x5c8] sm:$0xff] }
  0x68   :  { %6389 = vmatpush3.msra.mxu1 %v270_v58  ;;  %6355 = vmatprep.subr.mxu0 %v253_v59  ;;  %v339_v55 = vld [vmem:[#allocation2 + $0x560] sm:$0xff]  ;;  %v354_v57 = vld [vmem:[#allocation2 + $0x5d8] sm:$0xff]  ;;  %v304_v2 = vld [vmem:[#allocation2 + $0x448] sm:$0xff] }
  0x69   :  { %6390 = vmatprep.subr.mxu1 %v285_v60  ;;  %6356 = vmatpush3.msra.mxu0 %v237_v61  ;;  %v306_v58 = vld [vmem:[#allocation2 + $0x458] sm:$0xff]  ;;  %v321_v60 = vld [vmem:[#allocation2 + $0x4d0] sm:$0xff]  ;;  %v348_v21 = vld [vmem:[#allocation2 + $0x5a8] sm:$0xff] }
  0x6a   :  { %6391 = vmatpush3.msra.mxu1 %v269_v62  ;;  %6357 = vmatprep.subr.mxu0 %v252_v3  ;;  %v338_v59 = vld [vmem:[#allocation2 + $0x558] sm:$0xff]  ;;  %v353_v61 = vld [vmem:[#allocation2 + $0x5d0] sm:$0xff]  ;;  %v336_v3 = vld [vmem:[#allocation2 + $0x548] sm:$0xff] }
  0x6b   :  { %6392 = vmatprep.subr.mxu1 %v284_v4  ;;  %6358 = vmatpush3.msra.mxu0 %v236_v5  ;;  %v305_v62 = vld [vmem:[#allocation2 + $0x450] sm:$0xff]  ;;  %v319_v4 = vld [vmem:[#allocation2 + $0x4c0] sm:$0xff]  ;;  %v300_v22 = vld [vmem:[#allocation2 + $0x428] sm:$0xff] }
  0x6c   :  { %6393 = vmatpush3.msra.mxu1 %v268_v6  ;;  %6359 = vmatprep.subr.mxu0 %v251_v7  ;;  %v351_v5 = vld [vmem:[#allocation2 + $0x5c0] sm:$0xff] }
  0x6d   :  { %6394 = vmatprep.subr.mxu1 %v283_v8  ;;  %6360 = vmatpush3.msra.mxu0 %v235_v11  ;;  %v303_v6 = vld [vmem:[#allocation2 + $0x440] sm:$0xff]  ;;  %v318_v8 = vld [vmem:[#allocation2 + $0x4b8] sm:$0xff] }
  0x6e   :  { %6395 = vmatpush3.msra.mxu1 %v267_v12  ;;  %6361 = vmatprep.subr.mxu0 %v250_v13  ;;  %v335_v7 = vld [vmem:[#allocation2 + $0x540] sm:$0xff]  ;;  %v334_v11 = vld [vmem:[#allocation2 + $0x538] sm:$0xff]  ;;  %v317_v12 = vld [vmem:[#allocation2 + $0x4b0] sm:$0xff] }
  0x6f   :  { %6396 = vmatprep.subr.mxu1 %v282_v14  ;;  %6362 = vmatpush3.msra.mxu0 %v234_v17  ;;  %v349_v13 = vld [vmem:[#allocation2 + $0x5b0] sm:$0xff] }
  0x70   :  { %6397 = vmatpush3.msra.mxu1 %v266_v18  ;;  %6363 = vmatprep.subr.mxu0 %v249_v19  ;;  %v301_v14 = vld [vmem:[#allocation2 + $0x430] sm:$0xff] }
  0x71   :  { %6398 = vmatprep.subr.mxu1 %v281_v20  ;;  %6364 = vmatpush3.msra.mxu0 %v233_v23  ;;  %v97_v17 = vld [vmem:[%s8551_s0 + $0xd0] sm:$0xff]  ;;  %v316_v20 = vld [vmem:[#allocation2 + $0x4a8] sm:$0xff] }
  0x72   :  { %6399 = vmatpush3.msra.mxu1 %v265_v24  ;;  %6365 = vmatprep.subr.mxu0 %v248_v25  ;;  %v121_v18 = vld [vmem:[%s8551_s0 + $0x190] sm:$0xff]  ;;  %v332_v23 = vld [vmem:[#allocation2 + $0x528] sm:$0xff]  ;;  %v315_v24 = vld [vmem:[#allocation2 + $0x4a0] sm:$0xff] }
  0x73   :  { %6400 = vmatprep.subr.mxu1 %v280_v26  ;;  %6366 = vmatpush3.msra.mxu0 %v232_v29  ;;  %v145_v19 = vld [vmem:[%s8551_s0 + $0x250] sm:$0xff]  ;;  %v347_v25 = vld [vmem:[#allocation2 + $0x5a0] sm:$0xff]  ;;  %v1878_v26 = vcombine.low %v73_v16, %v97_v17 }
  0x74   :  { %6401 = vmatpush3.msra.mxu1 %v264_v30  ;;  %6367 = vmatprep.subr.mxu0 %v247_v31  ;;  %v1880_v27 = vcombine.low %v121_v18, %v145_v19  ;;  %v331_v29 = vld [vmem:[#allocation2 + $0x520] sm:$0xff]  ;;  %v314_v30 = vld [vmem:[#allocation2 + $0x498] sm:$0xff] }
  0x75   :  { %6402 = vmatprep.subr.mxu1 %v279_v32  ;;  %6368 = vmatpush3.msra.mxu0 %v231_v34  ;;  %v346_v31 = vld [vmem:[#allocation2 + $0x598] sm:$0xff]  ;;  %v1879_v32 = vcombine.high %v73_v16, %v97_v17  ;;  %v401_v16 = vld [vmem:[#allocation2 + $0x750] sm:$0xff]  ;;  %v384_v17 = vld [vmem:[#allocation2 + $0x6c8] sm:$0xff] }
  0x76   :  { %2970 = vmatprep.mubr.f32.mxu0 %v1875_v33  ;;  %6403 = vmatpush3.msra.mxu1 %v263_v36  ;;  %v1881_v33 = vcombine.high %v121_v18, %v145_v19  ;;  %v298_v34 = vld [vmem:[#allocation2 + $0x418] sm:$0xff]  ;;  %v313_v36 = vld [vmem:[#allocation2 + $0x490] sm:$0xff]  ;;  %v416_v18 = vld [vmem:[#allocation2 + $0x7c8] sm:$0xff] }
  0x77   :  { %2971 = vmatmul.mubr.f32.vlgmr.msra.gmra.mxu0 %v1874_v35  ;;  %3040 = vmatprep.mubr.f32.mxu1 %v1877_v37  ;;  %v330_v35 = vld [vmem:[#allocation2 + $0x518] sm:$0xff]  ;;  %v345_v37 = vld [vmem:[#allocation2 + $0x590] sm:$0xff]  ;;  %v368_v19 = vld [vmem:[#allocation2 + $0x648] sm:$0xff] }
  0x78   :  { %6407 = vmatprep.subr.mxu0 %v326_v38  ;;  %6442 = vmatprep.subr.mxu1 %v358_v40  ;;  %v1888_v38 = vrot.slane %v1878_v26, %v8145_v53  ;;  %v297_v40 = vld [vmem:[#allocation2 + $0x410] sm:$0xff]  ;;  %v414_v26 = vld [vmem:[#allocation2 + $0x7b8] sm:$0xff] }
  0x79   :  { %3041 = vmatmul.mubr.f32.vlgmr.msra.gmra.mxu1 %v1876_v39  ;;  %6408 = vmatpush3.msra.mxu0 %v310_v41  ;;  %v1902_v39 = vrot.slane %v1880_v27, %v8145_v53  ;;  %v329_v41 = vld [vmem:[#allocation2 + $0x510] sm:$0xff]  ;;  %v366_v27 = vld [vmem:[#allocation2 + $0x638] sm:$0xff] }
  0x7a   :  { %6443 = vmatpush3.msra.mxu1 %v342_v42  ;;  %6409 = vmatprep.subr.mxu0 %v325_v43  ;;  %v312_v42 = vld [vmem:[#allocation2 + $0x488] sm:$0xff] }
  0x7b   :  { %6444 = vmatprep.subr.mxu1 %v357_v44  ;;  %6410 = vmatpush3.msra.mxu0 %v309_v45  ;;  %v344_v43 = vld [vmem:[#allocation2 + $0x588] sm:$0xff]  ;;  %v1895_v44 = vrot.slane %v1879_v32, %v8145_v53  ;;  %v1909_v45 = vrot.slane %v1881_v33, %v8145_v53  ;;  %v397_v32 = vld [vmem:[#allocation2 + $0x730] sm:$0xff]  ;;  %v74_v33 = vld [vmem:[%s8551_s0 + $0x18] sm:$0xff] }
  0x7c   :  { %6445 = vmatpush3.msra.mxu1 %v341_v46  ;;  %6411 = vmatprep.subr.mxu0 %v324_v47  ;;  %v296_v46 = vld [vmem:[#allocation2 + $0x408] sm:$0xff] }
  0x7d   :  { %6446 = vmatprep.subr.mxu1 %v356_v48  ;;  %6412 = vmatpush3.msra.mxu0 %v308_v49  ;;  %v328_v47 = vld [vmem:[#allocation2 + $0x508] sm:$0xff]  ;;  %v311_v48 = vld [vmem:[#allocation2 + $0x480] sm:$0xff] }
  0x7e   :  { %6447 = vmatpush3.msra.mxu1 %v340_v50  ;;  %6413 = vmatprep.subr.mxu0 %v323_v51  ;;  %v343_v49 = vld [vmem:[#allocation2 + $0x580] sm:$0xff]  ;;  %v1911_v50 = vcombine.high %v1888_v38, %v1902_v39 }
  0x7f   :  { %6448 = vmatprep.subr.mxu1 %v355_v52  ;;  %6414 = vmatpush3.msra.mxu0 %v307_v54  ;;  %v295_v51 = vld [vmem:[#allocation2 + $0x400] sm:$0xff]  ;;  %v1910_v52 = vcombine.low %v1888_v38, %v1902_v39  ;;  %v412_v38 = vld [vmem:[#allocation2 + $0x7a8] sm:$0xff] }
  0x80   :  { %6449 = vmatpush3.msra.mxu1 %v339_v55  ;;  %6415 = vmatprep.subr.mxu0 %v322_v56  ;;  %v327_v54 = vld [vmem:[#allocation2 + $0x500] sm:$0xff]  ;;  %v1913_v55 = vcombine.high %v1895_v44, %v1909_v45  ;;  %v390_v56 = vld [vmem:[#allocation2 + $0x6f8] sm:$0xff]  ;;  %v364_v39 = vld [vmem:[#allocation2 + $0x628] sm:$0xff] }
  0x81   :  { %6450 = vmatprep.subr.mxu1 %v354_v57  ;;  %6416 = vmatpush3.msra.mxu0 %v306_v58  ;;  %v1912_v57 = vcombine.low %v1895_v44, %v1909_v45  ;;  %v422_v58 = vld [vmem:[#allocation2 + $0x7f8] sm:$0xff]  ;;  %v363_v45 = vld [vmem:[#allocation2 + $0x620] sm:$0xff] }
  0x82   :  { %6451 = vmatpush3.msra.mxu1 %v338_v59  ;;  %6417 = vmatprep.subr.mxu0 %v321_v60  ;;  %v374_v59 = vld [vmem:[#allocation2 + $0x678] sm:$0xff] }
  0x83   :  { %6452 = vmatprep.subr.mxu1 %v353_v61  ;;  %6418 = vmatpush3.msra.mxu0 %v305_v62  ;;  %v406_v60 = vld [vmem:[#allocation2 + $0x778] sm:$0xff]  ;;  %v389_v61 = vld [vmem:[#allocation2 + $0x6f0] sm:$0xff] }
  0x84   :  { %6453 = vmatpush3.msra.mxu1 %v337_v63  ;;  %6419 = vmatprep.subr.mxu0 %v320_v0  ;;  %v421_v62 = vld [vmem:[#allocation2 + $0x7f0] sm:$0xff] }
  0x85   :  { %6454 = vmatprep.subr.mxu1 %v352_v1  ;;  %6420 = vmatpush3.msra.mxu0 %v304_v2  ;;  %v373_v63 = vld [vmem:[#allocation2 + $0x670] sm:$0xff]  ;;  %v388_v1 = vld [vmem:[#allocation2 + $0x6e8] sm:$0xff] }
  0x86   :  { %6455 = vmatpush3.msra.mxu1 %v336_v3  ;;  %6421 = vmatprep.subr.mxu0 %v319_v4  ;;  %v405_v0 = vld [vmem:[#allocation2 + $0x770] sm:$0xff]  ;;  %v420_v2 = vld [vmem:[#allocation2 + $0x7e8] sm:$0xff] }
  0x87   :  { %6456 = vmatprep.subr.mxu1 %v351_v5  ;;  %6422 = vmatpush3.msra.mxu0 %v303_v6  ;;  %v372_v3 = vld [vmem:[#allocation2 + $0x668] sm:$0xff]  ;;  %v387_v5 = vld [vmem:[#allocation2 + $0x6e0] sm:$0xff] }
  0x88   :  { %6457 = vmatpush3.msra.mxu1 %v335_v7  ;;  %6423 = vmatprep.subr.mxu0 %v318_v8  ;;  %v404_v4 = vld [vmem:[#allocation2 + $0x768] sm:$0xff]  ;;  %v419_v6 = vld [vmem:[#allocation2 + $0x7e0] sm:$0xff] }
  0x89   :  { %6458 = vmatprep.subr.mxu1 %v350_v9  ;;  %6424 = vmatpush3.msra.mxu0 %v302_v10  ;;  %v371_v7 = vld [vmem:[#allocation2 + $0x660] sm:$0xff]  ;;  %v386_v9 = vld [vmem:[#allocation2 + $0x6d8] sm:$0xff] }
  0x8a   :  { %6459 = vmatpush3.msra.mxu1 %v334_v11  ;;  %6425 = vmatprep.subr.mxu0 %v317_v12  ;;  %v403_v8 = vld [vmem:[#allocation2 + $0x760] sm:$0xff]  ;;  %v418_v10 = vld [vmem:[#allocation2 + $0x7d8] sm:$0xff] }
  0x8b   :  { %6460 = vmatprep.subr.mxu1 %v349_v13  ;;  %6426 = vmatpush3.msra.mxu0 %v301_v14  ;;  %v370_v11 = vld [vmem:[#allocation2 + $0x658] sm:$0xff]  ;;  %v385_v13 = vld [vmem:[#allocation2 + $0x6d0] sm:$0xff] }
  0x8c   :  { %6461 = vmatpush3.msra.mxu1 %v333_v15  ;;  %6427 = vmatprep.subr.mxu0 %v316_v20  ;;  %v402_v12 = vld [vmem:[#allocation2 + $0x758] sm:$0xff]  ;;  %v417_v14 = vld [vmem:[#allocation2 + $0x7d0] sm:$0xff]  ;;  %v400_v20 = vld [vmem:[#allocation2 + $0x748] sm:$0xff] }
  0x8d   :  { %6462 = vmatprep.subr.mxu1 %v348_v21  ;;  %6428 = vmatpush3.msra.mxu0 %v300_v22  ;;  %v369_v15 = vld [vmem:[#allocation2 + $0x650] sm:$0xff]  ;;  %v383_v21 = vld [vmem:[#allocation2 + $0x6c0] sm:$0xff] }
  0x8e   :  { %6463 = vmatpush3.msra.mxu1 %v332_v23  ;;  %6429 = vmatprep.subr.mxu0 %v315_v24  ;;  %v415_v22 = vld [vmem:[#allocation2 + $0x7c0] sm:$0xff] }
  0x8f   :  { %6464 = vmatprep.subr.mxu1 %v347_v25  ;;  %6430 = vmatpush3.msra.mxu0 %v299_v28  ;;  %v367_v23 = vld [vmem:[#allocation2 + $0x640] sm:$0xff]  ;;  %v382_v25 = vld [vmem:[#allocation2 + $0x6b8] sm:$0xff] }
  0x90   :  { %6465 = vmatpush3.msra.mxu1 %v331_v29  ;;  %6431 = vmatprep.subr.mxu0 %v314_v30  ;;  %v399_v24 = vld [vmem:[#allocation2 + $0x740] sm:$0xff]  ;;  %v398_v28 = vld [vmem:[#allocation2 + $0x738] sm:$0xff]  ;;  %v381_v29 = vld [vmem:[#allocation2 + $0x6b0] sm:$0xff] }
  0x91   :  { %6466 = vmatprep.subr.mxu1 %v346_v31  ;;  %6432 = vmatpush3.msra.mxu0 %v298_v34  ;;  %v413_v30 = vld [vmem:[#allocation2 + $0x7b0] sm:$0xff]  ;;  %v98_v34 = vld [vmem:[%s8551_s0 + $0xd8] sm:$0xff] }
  0x92   :  { %6467 = vmatpush3.msra.mxu1 %v330_v35  ;;  %6433 = vmatprep.subr.mxu0 %v313_v36  ;;  %v365_v31 = vld [vmem:[#allocation2 + $0x630] sm:$0xff]  ;;  %v122_v35 = vld [vmem:[%s8551_s0 + $0x198] sm:$0xff] }
  0x93   :  { %6468 = vmatprep.subr.mxu1 %v345_v37  ;;  %6434 = vmatpush3.msra.mxu0 %v297_v40  ;;  %v146_v36 = vld [vmem:[%s8551_s0 + $0x258] sm:$0xff]  ;;  %v380_v37 = vld [vmem:[#allocation2 + $0x6a8] sm:$0xff] }
  0x94   :  { %6469 = vmatpush3.msra.mxu1 %v329_v41  ;;  %6435 = vmatprep.subr.mxu0 %v312_v42  ;;  %v396_v40 = vld [vmem:[#allocation2 + $0x728] sm:$0xff]  ;;  %v379_v41 = vld [vmem:[#allocation2 + $0x6a0] sm:$0xff]  ;;  %v1916_v44 = vcombine.low %v122_v35, %v146_v36 }
  0x95   :  { %6470 = vmatprep.subr.mxu1 %v344_v43  ;;  %6436 = vmatpush3.msra.mxu0 %v296_v46  ;;  %v411_v42 = vld [vmem:[#allocation2 + $0x7a0] sm:$0xff]  ;;  %v1914_v43 = vcombine.low %v74_v33, %v98_v34 }
  0x96   :  { %6471 = vmatpush3.msra.mxu1 %v328_v47  ;;  %6437 = vmatprep.subr.mxu0 %v311_v48  ;;  %v395_v46 = vld [vmem:[#allocation2 + $0x720] sm:$0xff]  ;;  %v378_v47 = vld [vmem:[#allocation2 + $0x698] sm:$0xff] }
  0x97   :  { %6472 = vmatprep.subr.mxu1 %v343_v49  ;;  %6438 = vmatpush3.msra.mxu0 %v295_v51  ;;  %v410_v48 = vld [vmem:[#allocation2 + $0x798] sm:$0xff]  ;;  %v1915_v49 = vcombine.high %v74_v33, %v98_v34  ;;  %v465_v33 = vld [vmem:[#allocation2 + $0x950] sm:$0xff]  ;;  %v448_v34 = vld [vmem:[#allocation2 + $0x8c8] sm:$0xff] }
  0x98   :  { %3110 = vmatprep.mubr.f32.mxu0 %v1911_v50  ;;  %6473 = vmatpush3.msra.mxu1 %v327_v54  ;;  %v1917_v50 = vcombine.high %v122_v35, %v146_v36  ;;  %v362_v51 = vld [vmem:[#allocation2 + $0x618] sm:$0xff]  ;;  %v377_v54 = vld [vmem:[#allocation2 + $0x690] sm:$0xff]  ;;  %v480_v35 = vld [vmem:[#allocation2 + $0x9c8] sm:$0xff] }
  0x99   :  { %3111 = vmatmul.mubr.f32.vlgmr.msra.gmra.mxu0 %v1910_v52  ;;  %3180 = vmatprep.mubr.f32.mxu1 %v1913_v55  ;;  %v394_v52 = vld [vmem:[#allocation2 + $0x718] sm:$0xff]  ;;  %v409_v55 = vld [vmem:[#allocation2 + $0x790] sm:$0xff]  ;;  %v432_v36 = vld [vmem:[#allocation2 + $0x848] sm:$0xff] }
  0x9a   :  { %6477 = vmatprep.subr.mxu0 %v390_v56  ;;  %6512 = vmatprep.subr.mxu1 %v422_v58  ;;  %v1924_v56 = vrot.slane %v1914_v43, %v8145_v53  ;;  %v361_v58 = vld [vmem:[#allocation2 + $0x610] sm:$0xff]  ;;  %v478_v43 = vld [vmem:[#allocation2 + $0x9b8] sm:$0xff] }
  0x9b   :  { %3181 = vmatmul.mubr.f32.vlgmr.msra.gmra.mxu1 %v1912_v57  ;;  %6478 = vmatpush3.msra.mxu0 %v374_v59  ;;  %v1938_v57 = vrot.slane %v1916_v44, %v8145_v53  ;;  %v393_v59 = vld [vmem:[#allocation2 + $0x710] sm:$0xff]  ;;  %v430_v44 = vld [vmem:[#allocation2 + $0x838] sm:$0xff] }
  0x9c   :  { %6513 = vmatpush3.msra.mxu1 %v406_v60  ;;  %6479 = vmatprep.subr.mxu0 %v389_v61  ;;  %v376_v60 = vld [vmem:[#allocation2 + $0x688] sm:$0xff] }
  0x9d   :  { %6514 = vmatprep.subr.mxu1 %v421_v62  ;;  %6480 = vmatpush3.msra.mxu0 %v373_v63  ;;  %v408_v61 = vld [vmem:[#allocation2 + $0x788] sm:$0xff]  ;;  %v1931_v62 = vrot.slane %v1915_v49, %v8145_v53  ;;  %v1945_v63 = vrot.slane %v1917_v50, %v8145_v53  ;;  %v461_v49 = vld [vmem:[#allocation2 + $0x930] sm:$0xff]  ;;  %v75_v50 = vld [vmem:[%s8551_s0 + $0x20] sm:$0xff] }
  0x9e   :  { %6515 = vmatpush3.msra.mxu1 %v405_v0  ;;  %6481 = vmatprep.subr.mxu0 %v388_v1  ;;  %v360_v0 = vld [vmem:[#allocation2 + $0x608] sm:$0xff] }
  0x9f   :  { %6516 = vmatprep.subr.mxu1 %v420_v2  ;;  %6482 = vmatpush3.msra.mxu0 %v372_v3  ;;  %v392_v1 = vld [vmem:[#allocation2 + $0x708] sm:$0xff]  ;;  %v375_v2 = vld [vmem:[#allocation2 + $0x680] sm:$0xff] }
  0xa0   :  { %6517 = vmatpush3.msra.mxu1 %v404_v4  ;;  %6483 = vmatprep.subr.mxu0 %v387_v5  ;;  %v407_v3 = vld [vmem:[#allocation2 + $0x780] sm:$0xff]  ;;  %v1947_v4 = vcombine.high %v1924_v56, %v1938_v57 }
  0xa1   :  { %6518 = vmatprep.subr.mxu1 %v419_v6  ;;  %6484 = vmatpush3.msra.mxu0 %v371_v7  ;;  %v359_v5 = vld [vmem:[#allocation2 + $0x600] sm:$0xff]  ;;  %v1946_v6 = vcombine.low %v1924_v56, %v1938_v57  ;;  %v476_v56 = vld [vmem:[#allocation2 + $0x9a8] sm:$0xff] }
  0xa2   :  { %6519 = vmatpush3.msra.mxu1 %v403_v8  ;;  %6485 = vmatprep.subr.mxu0 %v386_v9  ;;  %v391_v7 = vld [vmem:[#allocation2 + $0x700] sm:$0xff]  ;;  %v1949_v8 = vcombine.high %v1931_v62, %v1945_v63  ;;  %v454_v9 = vld [vmem:[#allocation2 + $0x8f8] sm:$0xff]  ;;  %v428_v57 = vld [vmem:[#allocation2 + $0x828] sm:$0xff] }
  0xa3   :  { %6520 = vmatprep.subr.mxu1 %v418_v10  ;;  %6486 = vmatpush3.msra.mxu0 %v370_v11  ;;  %v1948_v10 = vcombine.low %v1931_v62, %v1945_v63  ;;  %v486_v11 = vld [vmem:[#allocation2 + $0x9f8] sm:$0xff]  ;;  %v427_v63 = vld [vmem:[#allocation2 + $0x820] sm:$0xff] }
  0xa4   :  { %6521 = vmatpush3.msra.mxu1 %v402_v12  ;;  %6487 = vmatprep.subr.mxu0 %v385_v13  ;;  %v438_v12 = vld [vmem:[#allocation2 + $0x878] sm:$0xff] }
  0xa5   :  { %6522 = vmatprep.subr.mxu1 %v417_v14  ;;  %6488 = vmatpush3.msra.mxu0 %v369_v15  ;;  %v470_v13 = vld [vmem:[#allocation2 + $0x978] sm:$0xff]  ;;  %v453_v14 = vld [vmem:[#allocation2 + $0x8f0] sm:$0xff] }
  0xa6   :  { %6523 = vmatpush3.msra.mxu1 %v401_v16  ;;  %6489 = vmatprep.subr.mxu0 %v384_v17  ;;  %v485_v15 = vld [vmem:[#allocation2 + $0x9f0] sm:$0xff] }
  0xa7   :  { %6524 = vmatprep.subr.mxu1 %v416_v18  ;;  %6490 = vmatpush3.msra.mxu0 %v368_v19  ;;  %v437_v16 = vld [vmem:[#allocation2 + $0x870] sm:$0xff]  ;;  %v452_v18 = vld [vmem:[#allocation2 + $0x8e8] sm:$0xff] }
  0xa8   :  { %6525 = vmatpush3.msra.mxu1 %v400_v20  ;;  %6491 = vmatprep.subr.mxu0 %v383_v21  ;;  %v469_v17 = vld [vmem:[#allocation2 + $0x970] sm:$0xff]  ;;  %v484_v19 = vld [vmem:[#allocation2 + $0x9e8] sm:$0xff] }
  0xa9   :  { %6526 = vmatprep.subr.mxu1 %v415_v22  ;;  %6492 = vmatpush3.msra.mxu0 %v367_v23  ;;  %v436_v20 = vld [vmem:[#allocation2 + $0x868] sm:$0xff]  ;;  %v451_v22 = vld [vmem:[#allocation2 + $0x8e0] sm:$0xff] }
  0xaa   :  { %6527 = vmatpush3.msra.mxu1 %v399_v24  ;;  %6493 = vmatprep.subr.mxu0 %v382_v25  ;;  %v468_v21 = vld [vmem:[#allocation2 + $0x968] sm:$0xff]  ;;  %v483_v23 = vld [vmem:[#allocation2 + $0x9e0] sm:$0xff] }
  0xab   :  { %6528 = vmatprep.subr.mxu1 %v414_v26  ;;  %6494 = vmatpush3.msra.mxu0 %v366_v27  ;;  %v435_v24 = vld [vmem:[#allocation2 + $0x860] sm:$0xff]  ;;  %v450_v26 = vld [vmem:[#allocation2 + $0x8d8] sm:$0xff] }
  0xac   :  { %6529 = vmatpush3.msra.mxu1 %v398_v28  ;;  %6495 = vmatprep.subr.mxu0 %v381_v29  ;;  %v467_v25 = vld [vmem:[#allocation2 + $0x960] sm:$0xff]  ;;  %v482_v27 = vld [vmem:[#allocation2 + $0x9d8] sm:$0xff] }
  0xad   :  { %6530 = vmatprep.subr.mxu1 %v413_v30  ;;  %6496 = vmatpush3.msra.mxu0 %v365_v31  ;;  %v434_v28 = vld [vmem:[#allocation2 + $0x858] sm:$0xff]  ;;  %v449_v30 = vld [vmem:[#allocation2 + $0x8d0] sm:$0xff] }
  0xae   :  { %6531 = vmatpush3.msra.mxu1 %v397_v32  ;;  %6497 = vmatprep.subr.mxu0 %v380_v37  ;;  %v466_v29 = vld [vmem:[#allocation2 + $0x958] sm:$0xff]  ;;  %v481_v31 = vld [vmem:[#allocation2 + $0x9d0] sm:$0xff]  ;;  %v464_v37 = vld [vmem:[#allocation2 + $0x948] sm:$0xff] }
  0xaf   :  { %6532 = vmatprep.subr.mxu1 %v412_v38  ;;  %6498 = vmatpush3.msra.mxu0 %v364_v39  ;;  %v433_v32 = vld [vmem:[#allocation2 + $0x850] sm:$0xff]  ;;  %v447_v38 = vld [vmem:[#allocation2 + $0x8c0] sm:$0xff] }
  0xb0   :  { %6533 = vmatpush3.msra.mxu1 %v396_v40  ;;  %6499 = vmatprep.subr.mxu0 %v379_v41  ;;  %v479_v39 = vld [vmem:[#allocation2 + $0x9c0] sm:$0xff] }
  0xb1   :  { %6534 = vmatprep.subr.mxu1 %v411_v42  ;;  %6500 = vmatpush3.msra.mxu0 %v363_v45  ;;  %v431_v40 = vld [vmem:[#allocation2 + $0x840] sm:$0xff]  ;;  %v446_v42 = vld [vmem:[#allocation2 + $0x8b8] sm:$0xff] }
  0xb2   :  { %6535 = vmatpush3.msra.mxu1 %v395_v46  ;;  %6501 = vmatprep.subr.mxu0 %v378_v47  ;;  %v463_v41 = vld [vmem:[#allocation2 + $0x940] sm:$0xff]  ;;  %v462_v45 = vld [vmem:[#allocation2 + $0x938] sm:$0xff]  ;;  %v445_v46 = vld [vmem:[#allocation2 + $0x8b0] sm:$0xff] }
  0xb3   :  { %6536 = vmatprep.subr.mxu1 %v410_v48  ;;  %6502 = vmatpush3.msra.mxu0 %v362_v51  ;;  %v477_v47 = vld [vmem:[#allocation2 + $0x9b0] sm:$0xff]  ;;  %v99_v51 = vld [vmem:[%s8551_s0 + $0xe0] sm:$0xff] }
  0xb4   :  { %6537 = vmatpush3.msra.mxu1 %v394_v52  ;;  %6503 = vmatprep.subr.mxu0 %v377_v54  ;;  %v429_v48 = vld [vmem:[#allocation2 + $0x830] sm:$0xff]  ;;  %v123_v52 = vld [vmem:[%s8551_s0 + $0x1a0] sm:$0xff] }
  0xb5   :  { %6538 = vmatprep.subr.mxu1 %v409_v55  ;;  %6504 = vmatpush3.msra.mxu0 %v361_v58  ;;  %v147_v54 = vld [vmem:[%s8551_s0 + $0x260] sm:$0xff]  ;;  %v444_v55 = vld [vmem:[#allocation2 + $0x8a8] sm:$0xff] }
  0xb6   :  { %6539 = vmatpush3.msra.mxu1 %v393_v59  ;;  %6505 = vmatprep.subr.mxu0 %v376_v60  ;;  %v460_v58 = vld [vmem:[#allocation2 + $0x928] sm:$0xff]  ;;  %v443_v59 = vld [vmem:[#allocation2 + $0x8a0] sm:$0xff]  ;;  %v1952_v62 = vcombine.low %v123_v52, %v147_v54 }
  0xb7   :  { %6540 = vmatprep.subr.mxu1 %v408_v61  ;;  %6506 = vmatpush3.msra.mxu0 %v360_v0  ;;  %v475_v60 = vld [vmem:[#allocation2 + $0x9a0] sm:$0xff]  ;;  %v1950_v61 = vcombine.low %v75_v50, %v99_v51 }
  0xb8   :  { %6541 = vmatpush3.msra.mxu1 %v392_v1  ;;  %6507 = vmatprep.subr.mxu0 %v375_v2  ;;  %v459_v0 = vld [vmem:[#allocation2 + $0x920] sm:$0xff]  ;;  %v442_v1 = vld [vmem:[#allocation2 + $0x898] sm:$0xff] }
  0xb9   :  { %6542 = vmatprep.subr.mxu1 %v407_v3  ;;  %6508 = vmatpush3.msra.mxu0 %v359_v5  ;;  %v474_v2 = vld [vmem:[#allocation2 + $0x998] sm:$0xff]  ;;  %v1951_v3 = vcombine.high %v75_v50, %v99_v51  ;;  %v529_v50 = vld [vmem:[#allocation2 + $0xb50] sm:$0xff]  ;;  %v512_v51 = vld [vmem:[#allocation2 + $0xac8] sm:$0xff] }
  0xba   :  { %3250 = vmatprep.mubr.f32.mxu0 %v1947_v4  ;;  %6543 = vmatpush3.msra.mxu1 %v391_v7  ;;  %v1953_v4 = vcombine.high %v123_v52, %v147_v54  ;;  %v426_v5 = vld [vmem:[#allocation2 + $0x818] sm:$0xff]  ;;  %v441_v7 = vld [vmem:[#allocation2 + $0x890] sm:$0xff]  ;;  %v544_v52 = vld [vmem:[#allocation2 + $0xbc8] sm:$0xff] }
  0xbb   :  { %3251 = vmatmul.mubr.f32.vlgmr.msra.gmra.mxu0 %v1946_v6  ;;  %3320 = vmatprep.mubr.f32.mxu1 %v1949_v8  ;;  %v458_v6 = vld [vmem:[#allocation2 + $0x918] sm:$0xff]  ;;  %v473_v8 = vld [vmem:[#allocation2 + $0x990] sm:$0xff]  ;;  %v496_v54 = vld [vmem:[#allocation2 + $0xa48] sm:$0xff] }
  0xbc   :  { %6547 = vmatprep.subr.mxu0 %v454_v9  ;;  %6582 = vmatprep.subr.mxu1 %v486_v11  ;;  %v1960_v9 = vrot.slane %v1950_v61, %v8145_v53  ;;  %v425_v11 = vld [vmem:[#allocation2 + $0x810] sm:$0xff]  ;;  %v542_v61 = vld [vmem:[#allocation2 + $0xbb8] sm:$0xff] }
  0xbd   :  { %3321 = vmatmul.mubr.f32.vlgmr.msra.gmra.mxu1 %v1948_v10  ;;  %6548 = vmatpush3.msra.mxu0 %v438_v12  ;;  %v1974_v10 = vrot.slane %v1952_v62, %v8145_v53  ;;  %v457_v12 = vld [vmem:[#allocation2 + $0x910] sm:$0xff]  ;;  %v494_v62 = vld [vmem:[#allocation2 + $0xa38] sm:$0xff] }
  0xbe   :  { %6583 = vmatpush3.msra.mxu1 %v470_v13  ;;  %6549 = vmatprep.subr.mxu0 %v453_v14  ;;  %v440_v13 = vld [vmem:[#allocation2 + $0x888] sm:$0xff] }
  0xbf   :  { %6584 = vmatprep.subr.mxu1 %v485_v15  ;;  %6550 = vmatpush3.msra.mxu0 %v437_v16  ;;  %v472_v14 = vld [vmem:[#allocation2 + $0x988] sm:$0xff]  ;;  %v1967_v15 = vrot.slane %v1951_v3, %v8145_v53  ;;  %v1981_v16 = vrot.slane %v1953_v4, %v8145_v53  ;;  %v525_v3 = vld [vmem:[#allocation2 + $0xb30] sm:$0xff] }
  0xc0   :  { %6585 = vmatpush3.msra.mxu1 %v469_v17  ;;  %6551 = vmatprep.subr.mxu0 %v452_v18  ;;  %v424_v17 = vld [vmem:[#allocation2 + $0x808] sm:$0xff] }
  0xc1   :  { %6586 = vmatprep.subr.mxu1 %v484_v19  ;;  %6552 = vmatpush3.msra.mxu0 %v436_v20  ;;  %v456_v18 = vld [vmem:[#allocation2 + $0x908] sm:$0xff]  ;;  %v439_v19 = vld [vmem:[#allocation2 + $0x880] sm:$0xff] }
  0xc2   :  { %6587 = vmatpush3.msra.mxu1 %v468_v21  ;;  %6553 = vmatprep.subr.mxu0 %v451_v22  ;;  %v471_v20 = vld [vmem:[#allocation2 + $0x980] sm:$0xff]  ;;  %v1983_v21 = vcombine.high %v1960_v9, %v1974_v10  ;;  %v76_v4 = vld [vmem:[%s8551_s0 + $0x28] sm:$0xff] }
  0xc3   :  { %6588 = vmatprep.subr.mxu1 %v483_v23  ;;  %6554 = vmatpush3.msra.mxu0 %v435_v24  ;;  %v423_v22 = vld [vmem:[#allocation2 + $0x800] sm:$0xff]  ;;  %v1982_v23 = vcombine.low %v1960_v9, %v1974_v10  ;;  %v540_v9 = vld [vmem:[#allocation2 + $0xba8] sm:$0xff] }
  0xc4   :  { %6589 = vmatpush3.msra.mxu1 %v467_v25  ;;  %6555 = vmatprep.subr.mxu0 %v450_v26  ;;  %v455_v24 = vld [vmem:[#allocation2 + $0x900] sm:$0xff]  ;;  %v1985_v25 = vcombine.high %v1967_v15, %v1981_v16  ;;  %v518_v26 = vld [vmem:[#allocation2 + $0xaf8] sm:$0xff]  ;;  %v492_v10 = vld [vmem:[#allocation2 + $0xa28] sm:$0xff] }
  0xc5   :  { %6590 = vmatprep.subr.mxu1 %v482_v27  ;;  %6556 = vmatpush3.msra.mxu0 %v434_v28  ;;  %v1984_v27 = vcombine.low %v1967_v15, %v1981_v16  ;;  %v550_v28 = vld [vmem:[#allocation2 + $0xbf8] sm:$0xff]  ;;  %v491_v16 = vld [vmem:[#allocation2 + $0xa20] sm:$0xff] }
  0xc6   :  { %6591 = vmatpush3.msra.mxu1 %v466_v29  ;;  %6557 = vmatprep.subr.mxu0 %v449_v30  ;;  %v502_v29 = vld [vmem:[#allocation2 + $0xa78] sm:$0xff] }
  0xc7   :  { %6592 = vmatprep.subr.mxu1 %v481_v31  ;;  %6558 = vmatpush3.msra.mxu0 %v433_v32  ;;  %v534_v30 = vld [vmem:[#allocation2 + $0xb78] sm:$0xff]  ;;  %v517_v31 = vld [vmem:[#allocation2 + $0xaf0] sm:$0xff] }
  0xc8   :  { %6593 = vmatpush3.msra.mxu1 %v465_v33  ;;  %6559 = vmatprep.subr.mxu0 %v448_v34  ;;  %v549_v32 = vld [vmem:[#allocation2 + $0xbf0] sm:$0xff] }
  0xc9   :  { %6594 = vmatprep.subr.mxu1 %v480_v35  ;;  %6560 = vmatpush3.msra.mxu0 %v432_v36  ;;  %v501_v33 = vld [vmem:[#allocation2 + $0xa70] sm:$0xff]  ;;  %v516_v35 = vld [vmem:[#allocation2 + $0xae8] sm:$0xff] }
  0xca   :  { %6595 = vmatpush3.msra.mxu1 %v464_v37  ;;  %6561 = vmatprep.subr.mxu0 %v447_v38  ;;  %v533_v34 = vld [vmem:[#allocation2 + $0xb70] sm:$0xff]  ;;  %v548_v36 = vld [vmem:[#allocation2 + $0xbe8] sm:$0xff] }
  0xcb   :  { %6596 = vmatprep.subr.mxu1 %v479_v39  ;;  %6562 = vmatpush3.msra.mxu0 %v431_v40  ;;  %v500_v37 = vld [vmem:[#allocation2 + $0xa68] sm:$0xff]  ;;  %v515_v39 = vld [vmem:[#allocation2 + $0xae0] sm:$0xff] }
  0xcc   :  { %6597 = vmatpush3.msra.mxu1 %v463_v41  ;;  %6563 = vmatprep.subr.mxu0 %v446_v42  ;;  %v532_v38 = vld [vmem:[#allocation2 + $0xb68] sm:$0xff]  ;;  %v547_v40 = vld [vmem:[#allocation2 + $0xbe0] sm:$0xff] }
  0xcd   :  { %6598 = vmatprep.subr.mxu1 %v478_v43  ;;  %6564 = vmatpush3.msra.mxu0 %v430_v44  ;;  %v499_v41 = vld [vmem:[#allocation2 + $0xa60] sm:$0xff]  ;;  %v514_v43 = vld [vmem:[#allocation2 + $0xad8] sm:$0xff] }
  0xce   :  { %6599 = vmatpush3.msra.mxu1 %v462_v45  ;;  %6565 = vmatprep.subr.mxu0 %v445_v46  ;;  %v531_v42 = vld [vmem:[#allocation2 + $0xb60] sm:$0xff]  ;;  %v546_v44 = vld [vmem:[#allocation2 + $0xbd8] sm:$0xff] }
  0xcf   :  { %6600 = vmatprep.subr.mxu1 %v477_v47  ;;  %6566 = vmatpush3.msra.mxu0 %v429_v48  ;;  %v498_v45 = vld [vmem:[#allocation2 + $0xa58] sm:$0xff]  ;;  %v513_v47 = vld [vmem:[#allocation2 + $0xad0] sm:$0xff] }
  0xd0   :  { %6601 = vmatpush3.msra.mxu1 %v461_v49  ;;  %6567 = vmatprep.subr.mxu0 %v444_v55  ;;  %v530_v46 = vld [vmem:[#allocation2 + $0xb58] sm:$0xff]  ;;  %v545_v48 = vld [vmem:[#allocation2 + $0xbd0] sm:$0xff]  ;;  %v528_v55 = vld [vmem:[#allocation2 + $0xb48] sm:$0xff] }
  0xd1   :  { %6602 = vmatprep.subr.mxu1 %v476_v56  ;;  %6568 = vmatpush3.msra.mxu0 %v428_v57  ;;  %v497_v49 = vld [vmem:[#allocation2 + $0xa50] sm:$0xff]  ;;  %v511_v56 = vld [vmem:[#allocation2 + $0xac0] sm:$0xff] }
  0xd2   :  { %6603 = vmatpush3.msra.mxu1 %v460_v58  ;;  %6569 = vmatprep.subr.mxu0 %v443_v59  ;;  %v543_v57 = vld [vmem:[#allocation2 + $0xbc0] sm:$0xff] }
  0xd3   :  { %6604 = vmatprep.subr.mxu1 %v475_v60  ;;  %6570 = vmatpush3.msra.mxu0 %v427_v63  ;;  %v495_v58 = vld [vmem:[#allocation2 + $0xa40] sm:$0xff]  ;;  %v510_v60 = vld [vmem:[#allocation2 + $0xab8] sm:$0xff] }
  0xd4   :  { %6605 = vmatpush3.msra.mxu1 %v459_v0  ;;  %6571 = vmatprep.subr.mxu0 %v442_v1  ;;  %v527_v59 = vld [vmem:[#allocation2 + $0xb40] sm:$0xff]  ;;  %v526_v63 = vld [vmem:[#allocation2 + $0xb38] sm:$0xff]  ;;  %v509_v0 = vld [vmem:[#allocation2 + $0xab0] sm:$0xff] }
  0xd5   :  { %6606 = vmatprep.subr.mxu1 %v474_v2  ;;  %6572 = vmatpush3.msra.mxu0 %v426_v5  ;;  %v541_v1 = vld [vmem:[#allocation2 + $0xbb0] sm:$0xff]  ;;  %v100_v5 = vld [vmem:[%s8551_s0 + $0xe8] sm:$0xff] }
  0xd6   :  { %6607 = vmatpush3.msra.mxu1 %v458_v6  ;;  %6573 = vmatprep.subr.mxu0 %v441_v7  ;;  %v493_v2 = vld [vmem:[#allocation2 + $0xa30] sm:$0xff]  ;;  %v124_v6 = vld [vmem:[%s8551_s0 + $0x1a8] sm:$0xff] }
  0xd7   :  { %6608 = vmatprep.subr.mxu1 %v473_v8  ;;  %6574 = vmatpush3.msra.mxu0 %v425_v11  ;;  %v148_v7 = vld [vmem:[%s8551_s0 + $0x268] sm:$0xff] }
  0xd8   :  { %6609 = vmatpush3.msra.mxu1 %v457_v12  ;;  %6575 = vmatprep.subr.mxu0 %v440_v13  ;;  %v508_v8 = vld [vmem:[#allocation2 + $0xaa8] sm:$0xff]  ;;  %v507_v12 = vld [vmem:[#allocation2 + $0xaa0] sm:$0xff]  ;;  %v1988_v15 = vcombine.low %v124_v6, %v148_v7 }
  0xd9   :  { %6610 = vmatprep.subr.mxu1 %v472_v14  ;;  %6576 = vmatpush3.msra.mxu0 %v424_v17  ;;  %v524_v11 = vld [vmem:[#allocation2 + $0xb28] sm:$0xff]  ;;  %v539_v13 = vld [vmem:[#allocation2 + $0xba0] sm:$0xff]  ;;  %v1986_v14 = vcombine.low %v76_v4, %v100_v5 }
  0xda   :  { %6611 = vmatpush3.msra.mxu1 %v456_v18  ;;  %6577 = vmatprep.subr.mxu0 %v439_v19  ;;  %v523_v17 = vld [vmem:[#allocation2 + $0xb20] sm:$0xff]  ;;  %v506_v18 = vld [vmem:[#allocation2 + $0xa98] sm:$0xff] }
  0xdb   :  { %6612 = vmatprep.subr.mxu1 %v471_v20  ;;  %6578 = vmatpush3.msra.mxu0 %v423_v22  ;;  %v538_v19 = vld [vmem:[#allocation2 + $0xb98] sm:$0xff]  ;;  %v1987_v20 = vcombine.high %v76_v4, %v100_v5  ;;  %v593_v4 = vld [vmem:[#allocation2 + $0xd50] sm:$0xff]  ;;  %v576_v5 = vld [vmem:[#allocation2 + $0xcc8] sm:$0xff] }
  0xdc   :  { %3390 = vmatprep.mubr.f32.mxu0 %v1983_v21  ;;  %6613 = vmatpush3.msra.mxu1 %v455_v24  ;;  %v1989_v21 = vcombine.high %v124_v6, %v148_v7  ;;  %v490_v22 = vld [vmem:[#allocation2 + $0xa18] sm:$0xff]  ;;  %v505_v24 = vld [vmem:[#allocation2 + $0xa90] sm:$0xff]  ;;  %v608_v6 = vld [vmem:[#allocation2 + $0xdc8] sm:$0xff] }
  0xdd   :  { %3391 = vmatmul.mubr.f32.vlgmr.msra.gmra.mxu0 %v1982_v23  ;;  %3460 = vmatprep.mubr.f32.mxu1 %v1985_v25  ;;  %v522_v23 = vld [vmem:[#allocation2 + $0xb18] sm:$0xff]  ;;  %v537_v25 = vld [vmem:[#allocation2 + $0xb90] sm:$0xff]  ;;  %v560_v7 = vld [vmem:[#allocation2 + $0xc48] sm:$0xff] }
  0xde   :  { %6617 = vmatprep.subr.mxu0 %v518_v26  ;;  %6652 = vmatprep.subr.mxu1 %v550_v28  ;;  %v1996_v26 = vrot.slane %v1986_v14, %v8145_v53  ;;  %v489_v28 = vld [vmem:[#allocation2 + $0xa10] sm:$0xff]  ;;  %v606_v14 = vld [vmem:[#allocation2 + $0xdb8] sm:$0xff] }
  0xdf   :  { %3461 = vmatmul.mubr.f32.vlgmr.msra.gmra.mxu1 %v1984_v27  ;;  %6618 = vmatpush3.msra.mxu0 %v502_v29  ;;  %v2010_v27 = vrot.slane %v1988_v15, %v8145_v53  ;;  %v521_v29 = vld [vmem:[#allocation2 + $0xb10] sm:$0xff]  ;;  %v558_v15 = vld [vmem:[#allocation2 + $0xc38] sm:$0xff] }
  0xe0   :  { %6653 = vmatpush3.msra.mxu1 %v534_v30  ;;  %6619 = vmatprep.subr.mxu0 %v517_v31  ;;  %v504_v30 = vld [vmem:[#allocation2 + $0xa88] sm:$0xff] }
  0xe1   :  { %6654 = vmatprep.subr.mxu1 %v549_v32  ;;  %6620 = vmatpush3.msra.mxu0 %v501_v33  ;;  %v536_v31 = vld [vmem:[#allocation2 + $0xb88] sm:$0xff]  ;;  %v2003_v32 = vrot.slane %v1987_v20, %v8145_v53  ;;  %v2017_v33 = vrot.slane %v1989_v21, %v8145_v53  ;;  %v589_v20 = vld [vmem:[#allocation2 + $0xd30] sm:$0xff] }
  0xe2   :  { %6655 = vmatpush3.msra.mxu1 %v533_v34  ;;  %6621 = vmatprep.subr.mxu0 %v516_v35  ;;  %v488_v34 = vld [vmem:[#allocation2 + $0xa08] sm:$0xff]  ;;  %v77_v21 = vld [vmem:[%s8551_s0 + $0x30] sm:$0xff] }
  0xe3   :  { %6656 = vmatprep.subr.mxu1 %v548_v36  ;;  %6622 = vmatpush3.msra.mxu0 %v500_v37  ;;  %v520_v35 = vld [vmem:[#allocation2 + $0xb08] sm:$0xff]  ;;  %v503_v36 = vld [vmem:[#allocation2 + $0xa80] sm:$0xff] }
  0xe4   :  { %6657 = vmatpush3.msra.mxu1 %v532_v38  ;;  %6623 = vmatprep.subr.mxu0 %v515_v39  ;;  %v535_v37 = vld [vmem:[#allocation2 + $0xb80] sm:$0xff]  ;;  %v2019_v38 = vcombine.high %v1996_v26, %v2010_v27 }
  0xe5   :  { %6658 = vmatprep.subr.mxu1 %v547_v40  ;;  %6624 = vmatpush3.msra.mxu0 %v499_v41  ;;  %v487_v39 = vld [vmem:[#allocation2 + $0xa00] sm:$0xff]  ;;  %v2018_v40 = vcombine.low %v1996_v26, %v2010_v27  ;;  %v604_v26 = vld [vmem:[#allocation2 + $0xda8] sm:$0xff] }
  0xe6   :  { %6659 = vmatpush3.msra.mxu1 %v531_v42  ;;  %6625 = vmatprep.subr.mxu0 %v514_v43  ;;  %v519_v41 = vld [vmem:[#allocation2 + $0xb00] sm:$0xff]  ;;  %v2021_v42 = vcombine.high %v2003_v32, %v2017_v33  ;;  %v582_v43 = vld [vmem:[#allocation2 + $0xcf8] sm:$0xff]  ;;  %v556_v27 = vld [vmem:[#allocation2 + $0xc28] sm:$0xff] }
  0xe7   :  { %6660 = vmatprep.subr.mxu1 %v546_v44  ;;  %6626 = vmatpush3.msra.mxu0 %v498_v45  ;;  %v2020_v44 = vcombine.low %v2003_v32, %v2017_v33  ;;  %v614_v45 = vld [vmem:[#allocation2 + $0xdf8] sm:$0xff]  ;;  %v555_v33 = vld [vmem:[#allocation2 + $0xc20] sm:$0xff] }
  0xe8   :  { %6661 = vmatpush3.msra.mxu1 %v530_v46  ;;  %6627 = vmatprep.subr.mxu0 %v513_v47  ;;  %v566_v46 = vld [vmem:[#allocation2 + $0xc78] sm:$0xff] }
  0xe9   :  { %6662 = vmatprep.subr.mxu1 %v545_v48  ;;  %6628 = vmatpush3.msra.mxu0 %v497_v49  ;;  %v598_v47 = vld [vmem:[#allocation2 + $0xd78] sm:$0xff]  ;;  %v581_v48 = vld [vmem:[#allocation2 + $0xcf0] sm:$0xff] }
  0xea   :  { %6663 = vmatpush3.msra.mxu1 %v529_v50  ;;  %6629 = vmatprep.subr.mxu0 %v512_v51  ;;  %v613_v49 = vld [vmem:[#allocation2 + $0xdf0] sm:$0xff] }
  0xeb   :  { %6664 = vmatprep.subr.mxu1 %v544_v52  ;;  %6630 = vmatpush3.msra.mxu0 %v496_v54  ;;  %v565_v50 = vld [vmem:[#allocation2 + $0xc70] sm:$0xff]  ;;  %v580_v52 = vld [vmem:[#allocation2 + $0xce8] sm:$0xff] }
  0xec   :  { %6665 = vmatpush3.msra.mxu1 %v528_v55  ;;  %6631 = vmatprep.subr.mxu0 %v511_v56  ;;  %v597_v51 = vld [vmem:[#allocation2 + $0xd70] sm:$0xff]  ;;  %v612_v54 = vld [vmem:[#allocation2 + $0xde8] sm:$0xff] }
  0xed   :  { %6666 = vmatprep.subr.mxu1 %v543_v57  ;;  %6632 = vmatpush3.msra.mxu0 %v495_v58  ;;  %v564_v55 = vld [vmem:[#allocation2 + $0xc68] sm:$0xff]  ;;  %v579_v57 = vld [vmem:[#allocation2 + $0xce0] sm:$0xff] }
  0xee   :  { %6667 = vmatpush3.msra.mxu1 %v527_v59  ;;  %6633 = vmatprep.subr.mxu0 %v510_v60  ;;  %v596_v56 = vld [vmem:[#allocation2 + $0xd68] sm:$0xff]  ;;  %v611_v58 = vld [vmem:[#allocation2 + $0xde0] sm:$0xff] }
  0xef   :  { %6668 = vmatprep.subr.mxu1 %v542_v61  ;;  %6634 = vmatpush3.msra.mxu0 %v494_v62  ;;  %v563_v59 = vld [vmem:[#allocation2 + $0xc60] sm:$0xff]  ;;  %v578_v61 = vld [vmem:[#allocation2 + $0xcd8] sm:$0xff] }
  0xf0   :  { %6669 = vmatpush3.msra.mxu1 %v526_v63  ;;  %6635 = vmatprep.subr.mxu0 %v509_v0  ;;  %v595_v60 = vld [vmem:[#allocation2 + $0xd60] sm:$0xff]  ;;  %v610_v62 = vld [vmem:[#allocation2 + $0xdd8] sm:$0xff] }
  0xf1   :  { %6670 = vmatprep.subr.mxu1 %v541_v1  ;;  %6636 = vmatpush3.msra.mxu0 %v493_v2  ;;  %v562_v63 = vld [vmem:[#allocation2 + $0xc58] sm:$0xff]  ;;  %v577_v1 = vld [vmem:[#allocation2 + $0xcd0] sm:$0xff] }
  0xf2   :  { %6671 = vmatpush3.msra.mxu1 %v525_v3  ;;  %6637 = vmatprep.subr.mxu0 %v508_v8  ;;  %v594_v0 = vld [vmem:[#allocation2 + $0xd58] sm:$0xff]  ;;  %v609_v2 = vld [vmem:[#allocation2 + $0xdd0] sm:$0xff]  ;;  %v592_v8 = vld [vmem:[#allocation2 + $0xd48] sm:$0xff] }
  0xf3   :  { %6672 = vmatprep.subr.mxu1 %v540_v9  ;;  %6638 = vmatpush3.msra.mxu0 %v492_v10  ;;  %v561_v3 = vld [vmem:[#allocation2 + $0xc50] sm:$0xff]  ;;  %v575_v9 = vld [vmem:[#allocation2 + $0xcc0] sm:$0xff] }
  0xf4   :  { %6673 = vmatpush3.msra.mxu1 %v524_v11  ;;  %6639 = vmatprep.subr.mxu0 %v507_v12  ;;  %v607_v10 = vld [vmem:[#allocation2 + $0xdc0] sm:$0xff] }
  0xf5   :  { %6674 = vmatprep.subr.mxu1 %v539_v13  ;;  %6640 = vmatpush3.msra.mxu0 %v491_v16  ;;  %v559_v11 = vld [vmem:[#allocation2 + $0xc40] sm:$0xff]  ;;  %v574_v13 = vld [vmem:[#allocation2 + $0xcb8] sm:$0xff] }
  0xf6   :  { %6675 = vmatpush3.msra.mxu1 %v523_v17  ;;  %6641 = vmatprep.subr.mxu0 %v506_v18  ;;  %v591_v12 = vld [vmem:[#allocation2 + $0xd40] sm:$0xff]  ;;  %v590_v16 = vld [vmem:[#allocation2 + $0xd38] sm:$0xff]  ;;  %v573_v17 = vld [vmem:[#allocation2 + $0xcb0] sm:$0xff] }
  0xf7   :  { %6676 = vmatprep.subr.mxu1 %v538_v19  ;;  %6642 = vmatpush3.msra.mxu0 %v490_v22  ;;  %v605_v18 = vld [vmem:[#allocation2 + $0xdb0] sm:$0xff] }
  0xf8   :  { %6677 = vmatpush3.msra.mxu1 %v522_v23  ;;  %6643 = vmatprep.subr.mxu0 %v505_v24  ;;  %v557_v19 = vld [vmem:[#allocation2 + $0xc30] sm:$0xff] }
  0xf9   :  { %6678 = vmatprep.subr.mxu1 %v537_v25  ;;  %6644 = vmatpush3.msra.mxu0 %v489_v28  ;;  %v101_v22 = vld [vmem:[%s8551_s0 + $0xf0] sm:$0xff]  ;;  %v572_v25 = vld [vmem:[#allocation2 + $0xca8] sm:$0xff] }
  0xfa   :  { %6679 = vmatpush3.msra.mxu1 %v521_v29  ;;  %6645 = vmatprep.subr.mxu0 %v504_v30  ;;  %v125_v23 = vld [vmem:[%s8551_s0 + $0x1b0] sm:$0xff]  ;;  %v588_v28 = vld [vmem:[#allocation2 + $0xd28] sm:$0xff]  ;;  %v571_v29 = vld [vmem:[#allocation2 + $0xca0] sm:$0xff] }
  0xfb   :  { %6680 = vmatprep.subr.mxu1 %v536_v31  ;;  %6646 = vmatpush3.msra.mxu0 %v488_v34  ;;  %v149_v24 = vld [vmem:[%s8551_s0 + $0x270] sm:$0xff]  ;;  %v603_v30 = vld [vmem:[#allocation2 + $0xda0] sm:$0xff]  ;;  %v2022_v31 = vcombine.low %v77_v21, %v101_v22 }
  0xfc   :  { %6681 = vmatpush3.msra.mxu1 %v520_v35  ;;  %6647 = vmatprep.subr.mxu0 %v503_v36  ;;  %v2024_v32 = vcombine.low %v125_v23, %v149_v24  ;;  %v587_v34 = vld [vmem:[#allocation2 + $0xd20] sm:$0xff]  ;;  %v570_v35 = vld [vmem:[#allocation2 + $0xc98] sm:$0xff] }
  0xfd   :  { %6682 = vmatprep.subr.mxu1 %v535_v37  ;;  %6648 = vmatpush3.msra.mxu0 %v487_v39  ;;  %v602_v36 = vld [vmem:[#allocation2 + $0xd98] sm:$0xff]  ;;  %v2023_v37 = vcombine.high %v77_v21, %v101_v22  ;;  %v657_v21 = vld [vmem:[#allocation2 + $0xf50] sm:$0xff]  ;;  %v640_v22 = vld [vmem:[#allocation2 + $0xec8] sm:$0xff] }
  0xfe   :  { %3530 = vmatprep.mubr.f32.mxu0 %v2019_v38  ;;  %6683 = vmatpush3.msra.mxu1 %v519_v41  ;;  %v2025_v38 = vcombine.high %v125_v23, %v149_v24  ;;  %v554_v39 = vld [vmem:[#allocation2 + $0xc18] sm:$0xff]  ;;  %v569_v41 = vld [vmem:[#allocation2 + $0xc90] sm:$0xff]  ;;  %v672_v23 = vld [vmem:[#allocation2 + $0xfc8] sm:$0xff] }
  0xff   :  { %3531 = vmatmul.mubr.f32.vlgmr.msra.gmra.mxu0 %v2018_v40  ;;  %3600 = vmatprep.mubr.f32.mxu1 %v2021_v42  ;;  %v586_v40 = vld [vmem:[#allocation2 + $0xd18] sm:$0xff]  ;;  %v601_v42 = vld [vmem:[#allocation2 + $0xd90] sm:$0xff]  ;;  %v624_v24 = vld [vmem:[#allocation2 + $0xe48] sm:$0xff] }
 0x100   :  { %6687 = vmatprep.subr.mxu0 %v582_v43  ;;  %6722 = vmatprep.subr.mxu1 %v614_v45  ;;  %v2032_v43 = vrot.slane %v2022_v31, %v8145_v53  ;;  %v553_v45 = vld [vmem:[#allocation2 + $0xc10] sm:$0xff]  ;;  %v670_v31 = vld [vmem:[#allocation2 + $0xfb8] sm:$0xff] }
 0x101   :  { %3601 = vmatmul.mubr.f32.vlgmr.msra.gmra.mxu1 %v2020_v44  ;;  %6688 = vmatpush3.msra.mxu0 %v566_v46  ;;  %v2046_v44 = vrot.slane %v2024_v32, %v8145_v53  ;;  %v585_v46 = vld [vmem:[#allocation2 + $0xd10] sm:$0xff]  ;;  %v622_v32 = vld [vmem:[#allocation2 + $0xe38] sm:$0xff] }
 0x102   :  { %6723 = vmatpush3.msra.mxu1 %v598_v47  ;;  %6689 = vmatprep.subr.mxu0 %v581_v48  ;;  %v568_v47 = vld [vmem:[#allocation2 + $0xc88] sm:$0xff] }
 0x103   :  { %6724 = vmatprep.subr.mxu1 %v613_v49  ;;  %6690 = vmatpush3.msra.mxu0 %v565_v50  ;;  %v600_v48 = vld [vmem:[#allocation2 + $0xd88] sm:$0xff]  ;;  %v2039_v49 = vrot.slane %v2023_v37, %v8145_v53  ;;  %v2053_v50 = vrot.slane %v2025_v38, %v8145_v53  ;;  %v653_v37 = vld [vmem:[#allocation2 + $0xf30] sm:$0xff]  ;;  %v78_v38 = vld [vmem:[%s8551_s0 + $0x38] sm:$0xff] }
 0x104   :  { %6725 = vmatpush3.msra.mxu1 %v597_v51  ;;  %6691 = vmatprep.subr.mxu0 %v580_v52  ;;  %v552_v51 = vld [vmem:[#allocation2 + $0xc08] sm:$0xff] }
 0x105   :  { %6726 = vmatprep.subr.mxu1 %v612_v54  ;;  %6692 = vmatpush3.msra.mxu0 %v564_v55  ;;  %v584_v52 = vld [vmem:[#allocation2 + $0xd08] sm:$0xff]  ;;  %v567_v54 = vld [vmem:[#allocation2 + $0xc80] sm:$0xff] }
 0x106   :  { %6727 = vmatpush3.msra.mxu1 %v596_v56  ;;  %6693 = vmatprep.subr.mxu0 %v579_v57  ;;  %v599_v55 = vld [vmem:[#allocation2 + $0xd80] sm:$0xff]  ;;  %v2055_v56 = vcombine.high %v2032_v43, %v2046_v44 }
 0x107   :  { %6728 = vmatprep.subr.mxu1 %v611_v58  ;;  %6694 = vmatpush3.msra.mxu0 %v563_v59  ;;  %v551_v57 = vld [vmem:[#allocation2 + $0xc00] sm:$0xff]  ;;  %v2054_v58 = vcombine.low %v2032_v43, %v2046_v44  ;;  %v668_v43 = vld [vmem:[#allocation2 + $0xfa8] sm:$0xff] }
 0x108   :  { %6729 = vmatpush3.msra.mxu1 %v595_v60  ;;  %6695 = vmatprep.subr.mxu0 %v578_v61  ;;  %v583_v59 = vld [vmem:[#allocation2 + $0xd00] sm:$0xff]  ;;  %v2057_v60 = vcombine.high %v2039_v49, %v2053_v50  ;;  %v646_v61 = vld [vmem:[#allocation2 + $0xef8] sm:$0xff]  ;;  %v620_v44 = vld [vmem:[#allocation2 + $0xe28] sm:$0xff] }
 0x109   :  { %6730 = vmatprep.subr.mxu1 %v610_v62  ;;  %6696 = vmatpush3.msra.mxu0 %v562_v63  ;;  %v2056_v62 = vcombine.low %v2039_v49, %v2053_v50  ;;  %v678_v63 = vld [vmem:[#allocation2 + $0xff8] sm:$0xff]  ;;  %v619_v50 = vld [vmem:[#allocation2 + $0xe20] sm:$0xff] }
 0x10a   :  { %6731 = vmatpush3.msra.mxu1 %v594_v0  ;;  %6697 = vmatprep.subr.mxu0 %v577_v1  ;;  %v630_v0 = vld [vmem:[#allocation2 + $0xe78] sm:$0xff] }
 0x10b   :  { %6732 = vmatprep.subr.mxu1 %v609_v2  ;;  %6698 = vmatpush3.msra.mxu0 %v561_v3  ;;  %v662_v1 = vld [vmem:[#allocation2 + $0xf78] sm:$0xff]  ;;  %v645_v2 = vld [vmem:[#allocation2 + $0xef0] sm:$0xff] }
 0x10c   :  { %6733 = vmatpush3.msra.mxu1 %v593_v4  ;;  %6699 = vmatprep.subr.mxu0 %v576_v5  ;;  %v677_v3 = vld [vmem:[#allocation2 + $0xff0] sm:$0xff] }
 0x10d   :  { %6734 = vmatprep.subr.mxu1 %v608_v6  ;;  %6700 = vmatpush3.msra.mxu0 %v560_v7  ;;  %v629_v4 = vld [vmem:[#allocation2 + $0xe70] sm:$0xff]  ;;  %v644_v6 = vld [vmem:[#allocation2 + $0xee8] sm:$0xff] }
 0x10e   :  { %6735 = vmatpush3.msra.mxu1 %v592_v8  ;;  %6701 = vmatprep.subr.mxu0 %v575_v9  ;;  %v661_v5 = vld [vmem:[#allocation2 + $0xf70] sm:$0xff]  ;;  %v676_v7 = vld [vmem:[#allocation2 + $0xfe8] sm:$0xff] }
 0x10f   :  { %6736 = vmatprep.subr.mxu1 %v607_v10  ;;  %6702 = vmatpush3.msra.mxu0 %v559_v11  ;;  %v628_v8 = vld [vmem:[#allocation2 + $0xe68] sm:$0xff]  ;;  %v643_v10 = vld [vmem:[#allocation2 + $0xee0] sm:$0xff] }
 0x110   :  { %6737 = vmatpush3.msra.mxu1 %v591_v12  ;;  %6703 = vmatprep.subr.mxu0 %v574_v13  ;;  %v660_v9 = vld [vmem:[#allocation2 + $0xf68] sm:$0xff]  ;;  %v675_v11 = vld [vmem:[#allocation2 + $0xfe0] sm:$0xff] }
 0x111   :  { %6738 = vmatprep.subr.mxu1 %v606_v14  ;;  %6704 = vmatpush3.msra.mxu0 %v558_v15  ;;  %v627_v12 = vld [vmem:[#allocation2 + $0xe60] sm:$0xff]  ;;  %v642_v14 = vld [vmem:[#allocation2 + $0xed8] sm:$0xff] }
 0x112   :  { %6739 = vmatpush3.msra.mxu1 %v590_v16  ;;  %6705 = vmatprep.subr.mxu0 %v573_v17  ;;  %v659_v13 = vld [vmem:[#allocation2 + $0xf60] sm:$0xff]  ;;  %v674_v15 = vld [vmem:[#allocation2 + $0xfd8] sm:$0xff] }
 0x113   :  { %6740 = vmatprep.subr.mxu1 %v605_v18  ;;  %6706 = vmatpush3.msra.mxu0 %v557_v19  ;;  %v626_v16 = vld [vmem:[#allocation2 + $0xe58] sm:$0xff]  ;;  %v641_v18 = vld [vmem:[#allocation2 + $0xed0] sm:$0xff] }
 0x114   :  { %6741 = vmatpush3.msra.mxu1 %v589_v20  ;;  %6707 = vmatprep.subr.mxu0 %v572_v25  ;;  %v658_v17 = vld [vmem:[#allocation2 + $0xf58] sm:$0xff]  ;;  %v673_v19 = vld [vmem:[#allocation2 + $0xfd0] sm:$0xff]  ;;  %v656_v25 = vld [vmem:[#allocation2 + $0xf48] sm:$0xff] }
 0x115   :  { %6742 = vmatprep.subr.mxu1 %v604_v26  ;;  %6708 = vmatpush3.msra.mxu0 %v556_v27  ;;  %v625_v20 = vld [vmem:[#allocation2 + $0xe50] sm:$0xff]  ;;  %v639_v26 = vld [vmem:[#allocation2 + $0xec0] sm:$0xff] }
 0x116   :  { %6743 = vmatpush3.msra.mxu1 %v588_v28  ;;  %6709 = vmatprep.subr.mxu0 %v571_v29  ;;  %v671_v27 = vld [vmem:[#allocation2 + $0xfc0] sm:$0xff] }
 0x117   :  { %6744 = vmatprep.subr.mxu1 %v603_v30  ;;  %6710 = vmatpush3.msra.mxu0 %v555_v33  ;;  %v623_v28 = vld [vmem:[#allocation2 + $0xe40] sm:$0xff]  ;;  %v638_v30 = vld [vmem:[#allocation2 + $0xeb8] sm:$0xff] }
 0x118   :  { %6745 = vmatpush3.msra.mxu1 %v587_v34  ;;  %6711 = vmatprep.subr.mxu0 %v570_v35  ;;  %v655_v29 = vld [vmem:[#allocation2 + $0xf40] sm:$0xff]  ;;  %v654_v33 = vld [vmem:[#allocation2 + $0xf38] sm:$0xff]  ;;  %v637_v34 = vld [vmem:[#allocation2 + $0xeb0] sm:$0xff] }
 0x119   :  { %6746 = vmatprep.subr.mxu1 %v602_v36  ;;  %6712 = vmatpush3.msra.mxu0 %v554_v39  ;;  %v669_v35 = vld [vmem:[#allocation2 + $0xfb0] sm:$0xff]  ;;  %v102_v39 = vld [vmem:[%s8551_s0 + $0xf8] sm:$0xff] }
 0x11a   :  { %6747 = vmatpush3.msra.mxu1 %v586_v40  ;;  %6713 = vmatprep.subr.mxu0 %v569_v41  ;;  %v621_v36 = vld [vmem:[#allocation2 + $0xe30] sm:$0xff]  ;;  %v126_v40 = vld [vmem:[%s8551_s0 + $0x1b8] sm:$0xff] }
 0x11b   :  { %6748 = vmatprep.subr.mxu1 %v601_v42  ;;  %6714 = vmatpush3.msra.mxu0 %v553_v45  ;;  %v150_v41 = vld [vmem:[%s8551_s0 + $0x278] sm:$0xff]  ;;  %v636_v42 = vld [vmem:[#allocation2 + $0xea8] sm:$0xff] }
 0x11c   :  { %6749 = vmatpush3.msra.mxu1 %v585_v46  ;;  %6715 = vmatprep.subr.mxu0 %v568_v47  ;;  %v652_v45 = vld [vmem:[#allocation2 + $0xf28] sm:$0xff]  ;;  %v635_v46 = vld [vmem:[#allocation2 + $0xea0] sm:$0xff]  ;;  %v2060_v49 = vcombine.low %v126_v40, %v150_v41 }
 0x11d   :  { %6750 = vmatprep.subr.mxu1 %v600_v48  ;;  %6716 = vmatpush3.msra.mxu0 %v552_v51  ;;  %v667_v47 = vld [vmem:[#allocation2 + $0xfa0] sm:$0xff]  ;;  %v2058_v48 = vcombine.low %v78_v38, %v102_v39 }
 0x11e   :  { %6751 = vmatpush3.msra.mxu1 %v584_v52  ;;  %6717 = vmatprep.subr.mxu0 %v567_v54  ;;  %v651_v51 = vld [vmem:[#allocation2 + $0xf20] sm:$0xff]  ;;  %v634_v52 = vld [vmem:[#allocation2 + $0xe98] sm:$0xff] }
 0x11f   :  { %6752 = vmatprep.subr.mxu1 %v599_v55  ;;  %6718 = vmatpush3.msra.mxu0 %v551_v57  ;;  %v666_v54 = vld [vmem:[#allocation2 + $0xf98] sm:$0xff]  ;;  %v2059_v55 = vcombine.high %v78_v38, %v102_v39  ;;  %v721_v38 = vld [vmem:[#allocation2 + $0x1150] sm:$0xff]  ;;  %v704_v39 = vld [vmem:[#allocation2 + $0x10c8] sm:$0xff] }
 0x120   :  { %3670 = vmatprep.mubr.f32.mxu0 %v2055_v56  ;;  %6753 = vmatpush3.msra.mxu1 %v583_v59  ;;  %v2061_v56 = vcombine.high %v126_v40, %v150_v41  ;;  %v618_v57 = vld [vmem:[#allocation2 + $0xe18] sm:$0xff]  ;;  %v633_v59 = vld [vmem:[#allocation2 + $0xe90] sm:$0xff]  ;;  %v736_v40 = vld [vmem:[#allocation2 + $0x11c8] sm:$0xff] }
 0x121   :  { %3671 = vmatmul.mubr.f32.vlgmr.msra.gmra.mxu0 %v2054_v58  ;;  %3740 = vmatprep.mubr.f32.mxu1 %v2057_v60  ;;  %v650_v58 = vld [vmem:[#allocation2 + $0xf18] sm:$0xff]  ;;  %v665_v60 = vld [vmem:[#allocation2 + $0xf90] sm:$0xff]  ;;  %v688_v41 = vld [vmem:[#allocation2 + $0x1048] sm:$0xff] }
 0x122   :  { %6757 = vmatprep.subr.mxu0 %v646_v61  ;;  %6792 = vmatprep.subr.mxu1 %v678_v63  ;;  %v2068_v61 = vrot.slane %v2058_v48, %v8145_v53  ;;  %v617_v63 = vld [vmem:[#allocation2 + $0xe10] sm:$0xff]  ;;  %v734_v48 = vld [vmem:[#allocation2 + $0x11b8] sm:$0xff] }
 0x123   :  { %3741 = vmatmul.mubr.f32.vlgmr.msra.gmra.mxu1 %v2056_v62  ;;  %6758 = vmatpush3.msra.mxu0 %v630_v0  ;;  %v2082_v62 = vrot.slane %v2060_v49, %v8145_v53  ;;  %v649_v0 = vld [vmem:[#allocation2 + $0xf10] sm:$0xff]  ;;  %v686_v49 = vld [vmem:[#allocation2 + $0x1038] sm:$0xff] }
 0x124   :  { %6793 = vmatpush3.msra.mxu1 %v662_v1  ;;  %6759 = vmatprep.subr.mxu0 %v645_v2  ;;  %v632_v1 = vld [vmem:[#allocation2 + $0xe88] sm:$0xff] }
 0x125   :  { %6794 = vmatprep.subr.mxu1 %v677_v3  ;;  %6760 = vmatpush3.msra.mxu0 %v629_v4  ;;  %v664_v2 = vld [vmem:[#allocation2 + $0xf88] sm:$0xff]  ;;  %v2075_v3 = vrot.slane %v2059_v55, %v8145_v53  ;;  %v2089_v4 = vrot.slane %v2061_v56, %v8145_v53  ;;  %v717_v55 = vld [vmem:[#allocation2 + $0x1130] sm:$0xff]  ;;  %v79_v56 = vld [vmem:[%s8551_s0 + $0x40] sm:$0xff] }
 0x126   :  { %6795 = vmatpush3.msra.mxu1 %v661_v5  ;;  %6761 = vmatprep.subr.mxu0 %v644_v6  ;;  %v616_v5 = vld [vmem:[#allocation2 + $0xe08] sm:$0xff] }
 0x127   :  { %6796 = vmatprep.subr.mxu1 %v676_v7  ;;  %6762 = vmatpush3.msra.mxu0 %v628_v8  ;;  %v648_v6 = vld [vmem:[#allocation2 + $0xf08] sm:$0xff]  ;;  %v631_v7 = vld [vmem:[#allocation2 + $0xe80] sm:$0xff] }
 0x128   :  { %6797 = vmatpush3.msra.mxu1 %v660_v9  ;;  %6763 = vmatprep.subr.mxu0 %v643_v10  ;;  %v663_v8 = vld [vmem:[#allocation2 + $0xf80] sm:$0xff]  ;;  %v2091_v9 = vcombine.high %v2068_v61, %v2082_v62 }
 0x129   :  { %6798 = vmatprep.subr.mxu1 %v675_v11  ;;  %6764 = vmatpush3.msra.mxu0 %v627_v12  ;;  %v615_v10 = vld [vmem:[#allocation2 + $0xe00] sm:$0xff]  ;;  %v2090_v11 = vcombine.low %v2068_v61, %v2082_v62  ;;  %v732_v61 = vld [vmem:[#allocation2 + $0x11a8] sm:$0xff] }
 0x12a   :  { %6799 = vmatpush3.msra.mxu1 %v659_v13  ;;  %6765 = vmatprep.subr.mxu0 %v642_v14  ;;  %v647_v12 = vld [vmem:[#allocation2 + $0xf00] sm:$0xff]  ;;  %v2093_v13 = vcombine.high %v2075_v3, %v2089_v4  ;;  %v710_v14 = vld [vmem:[#allocation2 + $0x10f8] sm:$0xff]  ;;  %v684_v62 = vld [vmem:[#allocation2 + $0x1028] sm:$0xff] }
 0x12b   :  { %6800 = vmatprep.subr.mxu1 %v674_v15  ;;  %6766 = vmatpush3.msra.mxu0 %v626_v16  ;;  %v2092_v15 = vcombine.low %v2075_v3, %v2089_v4  ;;  %v742_v16 = vld [vmem:[#allocation2 + $0x11f8] sm:$0xff]  ;;  %v683_v4 = vld [vmem:[#allocation2 + $0x1020] sm:$0xff] }
 0x12c   :  { %6801 = vmatpush3.msra.mxu1 %v658_v17  ;;  %6767 = vmatprep.subr.mxu0 %v641_v18  ;;  %v694_v17 = vld [vmem:[#allocation2 + $0x1078] sm:$0xff] }
 0x12d   :  { %6802 = vmatprep.subr.mxu1 %v673_v19  ;;  %6768 = vmatpush3.msra.mxu0 %v625_v20  ;;  %v726_v18 = vld [vmem:[#allocation2 + $0x1178] sm:$0xff]  ;;  %v709_v19 = vld [vmem:[#allocation2 + $0x10f0] sm:$0xff] }
 0x12e   :  { %6803 = vmatpush3.msra.mxu1 %v657_v21  ;;  %6769 = vmatprep.subr.mxu0 %v640_v22  ;;  %v741_v20 = vld [vmem:[#allocation2 + $0x11f0] sm:$0xff] }
 0x12f   :  { %6804 = vmatprep.subr.mxu1 %v672_v23  ;;  %6770 = vmatpush3.msra.mxu0 %v624_v24  ;;  %v693_v21 = vld [vmem:[#allocation2 + $0x1070] sm:$0xff]  ;;  %v708_v23 = vld [vmem:[#allocation2 + $0x10e8] sm:$0xff] }
 0x130   :  { %6805 = vmatpush3.msra.mxu1 %v656_v25  ;;  %6771 = vmatprep.subr.mxu0 %v639_v26  ;;  %v725_v22 = vld [vmem:[#allocation2 + $0x1170] sm:$0xff]  ;;  %v740_v24 = vld [vmem:[#allocation2 + $0x11e8] sm:$0xff] }
 0x131   :  { %6806 = vmatprep.subr.mxu1 %v671_v27  ;;  %6772 = vmatpush3.msra.mxu0 %v623_v28  ;;  %v692_v25 = vld [vmem:[#allocation2 + $0x1068] sm:$0xff]  ;;  %v707_v27 = vld [vmem:[#allocation2 + $0x10e0] sm:$0xff] }
 0x132   :  { %6807 = vmatpush3.msra.mxu1 %v655_v29  ;;  %6773 = vmatprep.subr.mxu0 %v638_v30  ;;  %v724_v26 = vld [vmem:[#allocation2 + $0x1168] sm:$0xff]  ;;  %v739_v28 = vld [vmem:[#allocation2 + $0x11e0] sm:$0xff] }
 0x133   :  { %6808 = vmatprep.subr.mxu1 %v670_v31  ;;  %6774 = vmatpush3.msra.mxu0 %v622_v32  ;;  %v691_v29 = vld [vmem:[#allocation2 + $0x1060] sm:$0xff]  ;;  %v706_v31 = vld [vmem:[#allocation2 + $0x10d8] sm:$0xff] }
 0x134   :  { %6809 = vmatpush3.msra.mxu1 %v654_v33  ;;  %6775 = vmatprep.subr.mxu0 %v637_v34  ;;  %v723_v30 = vld [vmem:[#allocation2 + $0x1160] sm:$0xff]  ;;  %v738_v32 = vld [vmem:[#allocation2 + $0x11d8] sm:$0xff] }
 0x135   :  { %6810 = vmatprep.subr.mxu1 %v669_v35  ;;  %6776 = vmatpush3.msra.mxu0 %v621_v36  ;;  %v690_v33 = vld [vmem:[#allocation2 + $0x1058] sm:$0xff]  ;;  %v705_v35 = vld [vmem:[#allocation2 + $0x10d0] sm:$0xff] }
 0x136   :  { %6811 = vmatpush3.msra.mxu1 %v653_v37  ;;  %6777 = vmatprep.subr.mxu0 %v636_v42  ;;  %v722_v34 = vld [vmem:[#allocation2 + $0x1158] sm:$0xff]  ;;  %v737_v36 = vld [vmem:[#allocation2 + $0x11d0] sm:$0xff]  ;;  %v720_v42 = vld [vmem:[#allocation2 + $0x1148] sm:$0xff] }
 0x137   :  { %6812 = vmatprep.subr.mxu1 %v668_v43  ;;  %6778 = vmatpush3.msra.mxu0 %v620_v44  ;;  %v689_v37 = vld [vmem:[#allocation2 + $0x1050] sm:$0xff]  ;;  %v703_v43 = vld [vmem:[#allocation2 + $0x10c0] sm:$0xff] }
 0x138   :  { %6813 = vmatpush3.msra.mxu1 %v652_v45  ;;  %6779 = vmatprep.subr.mxu0 %v635_v46  ;;  %v735_v44 = vld [vmem:[#allocation2 + $0x11c0] sm:$0xff] }
 0x139   :  { %6814 = vmatprep.subr.mxu1 %v667_v47  ;;  %6780 = vmatpush3.msra.mxu0 %v619_v50  ;;  %v687_v45 = vld [vmem:[#allocation2 + $0x1040] sm:$0xff]  ;;  %v702_v47 = vld [vmem:[#allocation2 + $0x10b8] sm:$0xff] }
 0x13a   :  { %6815 = vmatpush3.msra.mxu1 %v651_v51  ;;  %6781 = vmatprep.subr.mxu0 %v634_v52  ;;  %v719_v46 = vld [vmem:[#allocation2 + $0x1140] sm:$0xff]  ;;  %v718_v50 = vld [vmem:[#allocation2 + $0x1138] sm:$0xff]  ;;  %v701_v51 = vld [vmem:[#allocation2 + $0x10b0] sm:$0xff] }
 0x13b   :  { %6816 = vmatprep.subr.mxu1 %v666_v54  ;;  %6782 = vmatpush3.msra.mxu0 %v618_v57  ;;  %v733_v52 = vld [vmem:[#allocation2 + $0x11b0] sm:$0xff]  ;;  %v103_v57 = vld [vmem:[%s8551_s0 + $0x100] sm:$0xff] }
 0x13c   :  { %6817 = vmatpush3.msra.mxu1 %v650_v58  ;;  %6783 = vmatprep.subr.mxu0 %v633_v59  ;;  %v685_v54 = vld [vmem:[#allocation2 + $0x1030] sm:$0xff]  ;;  %v127_v58 = vld [vmem:[%s8551_s0 + $0x1c0] sm:$0xff] }
 0x13d   :  { %6818 = vmatprep.subr.mxu1 %v665_v60  ;;  %6784 = vmatpush3.msra.mxu0 %v617_v63  ;;  %v151_v59 = vld [vmem:[%s8551_s0 + $0x280] sm:$0xff]  ;;  %v700_v60 = vld [vmem:[#allocation2 + $0x10a8] sm:$0xff] }
 0x13e   :  { %6819 = vmatpush3.msra.mxu1 %v649_v0  ;;  %6785 = vmatprep.subr.mxu0 %v632_v1  ;;  %v716_v63 = vld [vmem:[#allocation2 + $0x1128] sm:$0xff]  ;;  %v699_v0 = vld [vmem:[#allocation2 + $0x10a0] sm:$0xff]  ;;  %v2096_v3 = vcombine.low %v127_v58, %v151_v59 }
 0x13f   :  { %6820 = vmatprep.subr.mxu1 %v664_v2  ;;  %6786 = vmatpush3.msra.mxu0 %v616_v5  ;;  %v731_v1 = vld [vmem:[#allocation2 + $0x11a0] sm:$0xff]  ;;  %v2094_v2 = vcombine.low %v79_v56, %v103_v57 }
 0x140   :  { %6821 = vmatpush3.msra.mxu1 %v648_v6  ;;  %6787 = vmatprep.subr.mxu0 %v631_v7  ;;  %v715_v5 = vld [vmem:[#allocation2 + $0x1120] sm:$0xff]  ;;  %v698_v6 = vld [vmem:[#allocation2 + $0x1098] sm:$0xff] }
 0x141   :  { %6822 = vmatprep.subr.mxu1 %v663_v8  ;;  %6788 = vmatpush3.msra.mxu0 %v615_v10  ;;  %v730_v7 = vld [vmem:[#allocation2 + $0x1198] sm:$0xff]  ;;  %v2095_v8 = vcombine.high %v79_v56, %v103_v57  ;;  %v785_v56 = vld [vmem:[#allocation2 + $0x1350] sm:$0xff]  ;;  %v768_v57 = vld [vmem:[#allocation2 + $0x12c8] sm:$0xff] }
 0x142   :  { %3810 = vmatprep.mubr.f32.mxu0 %v2091_v9  ;;  %6823 = vmatpush3.msra.mxu1 %v647_v12  ;;  %v2097_v9 = vcombine.high %v127_v58, %v151_v59  ;;  %v682_v10 = vld [vmem:[#allocation2 + $0x1018] sm:$0xff]  ;;  %v697_v12 = vld [vmem:[#allocation2 + $0x1090] sm:$0xff]  ;;  %v800_v58 = vld [vmem:[#allocation2 + $0x13c8] sm:$0xff] }
 0x143   :  { %3811 = vmatmul.mubr.f32.vlgmr.msra.gmra.mxu0 %v2090_v11  ;;  %3880 = vmatprep.mubr.f32.mxu1 %v2093_v13  ;;  %v714_v11 = vld [vmem:[#allocation2 + $0x1118] sm:$0xff]  ;;  %v729_v13 = vld [vmem:[#allocation2 + $0x1190] sm:$0xff]  ;;  %v752_v59 = vld [vmem:[#allocation2 + $0x1248] sm:$0xff] }
 0x144   :  { %6827 = vmatprep.subr.mxu0 %v710_v14  ;;  %6862 = vmatprep.subr.mxu1 %v742_v16  ;;  %v2104_v14 = vrot.slane %v2094_v2, %v8145_v53  ;;  %v681_v16 = vld [vmem:[#allocation2 + $0x1010] sm:$0xff]  ;;  %v798_v2 = vld [vmem:[#allocation2 + $0x13b8] sm:$0xff] }
 0x145   :  { %3881 = vmatmul.mubr.f32.vlgmr.msra.gmra.mxu1 %v2092_v15  ;;  %6828 = vmatpush3.msra.mxu0 %v694_v17  ;;  %v2118_v15 = vrot.slane %v2096_v3, %v8145_v53  ;;  %v713_v17 = vld [vmem:[#allocation2 + $0x1110] sm:$0xff]  ;;  %v750_v3 = vld [vmem:[#allocation2 + $0x1238] sm:$0xff] }
 0x146   :  { %6863 = vmatpush3.msra.mxu1 %v726_v18  ;;  %6829 = vmatprep.subr.mxu0 %v709_v19  ;;  %v696_v18 = vld [vmem:[#allocation2 + $0x1088] sm:$0xff] }
 0x147   :  { %6864 = vmatprep.subr.mxu1 %v741_v20  ;;  %6830 = vmatpush3.msra.mxu0 %v693_v21  ;;  %v728_v19 = vld [vmem:[#allocation2 + $0x1188] sm:$0xff]  ;;  %v2111_v20 = vrot.slane %v2095_v8, %v8145_v53  ;;  %v2125_v21 = vrot.slane %v2097_v9, %v8145_v53  ;;  %v781_v8 = vld [vmem:[#allocation2 + $0x1330] sm:$0xff] }
 0x148   :  { %6865 = vmatpush3.msra.mxu1 %v725_v22  ;;  %6831 = vmatprep.subr.mxu0 %v708_v23  ;;  %v680_v22 = vld [vmem:[#allocation2 + $0x1008] sm:$0xff] }
 0x149   :  { %6866 = vmatprep.subr.mxu1 %v740_v24  ;;  %6832 = vmatpush3.msra.mxu0 %v692_v25  ;;  %v712_v23 = vld [vmem:[#allocation2 + $0x1108] sm:$0xff]  ;;  %v695_v24 = vld [vmem:[#allocation2 + $0x1080] sm:$0xff] }
 0x14a   :  { %6867 = vmatpush3.msra.mxu1 %v724_v26  ;;  %6833 = vmatprep.subr.mxu0 %v707_v27  ;;  %v727_v25 = vld [vmem:[#allocation2 + $0x1180] sm:$0xff]  ;;  %v2127_v26 = vcombine.high %v2104_v14, %v2118_v15  ;;  %v80_v9 = vld [vmem:[%s8551_s0 + $0x48] sm:$0xff] }
 0x14b   :  { %6868 = vmatprep.subr.mxu1 %v739_v28  ;;  %6834 = vmatpush3.msra.mxu0 %v691_v29  ;;  %v679_v27 = vld [vmem:[#allocation2 + $0x1000] sm:$0xff]  ;;  %v2126_v28 = vcombine.low %v2104_v14, %v2118_v15  ;;  %v796_v14 = vld [vmem:[#allocation2 + $0x13a8] sm:$0xff] }
 0x14c   :  { %6869 = vmatpush3.msra.mxu1 %v723_v30  ;;  %6835 = vmatprep.subr.mxu0 %v706_v31  ;;  %v711_v29 = vld [vmem:[#allocation2 + $0x1100] sm:$0xff]  ;;  %v2129_v30 = vcombine.high %v2111_v20, %v2125_v21  ;;  %v774_v31 = vld [vmem:[#allocation2 + $0x12f8] sm:$0xff]  ;;  %v748_v15 = vld [vmem:[#allocation2 + $0x1228] sm:$0xff] }
 0x14d   :  { %6870 = vmatprep.subr.mxu1 %v738_v32  ;;  %6836 = vmatpush3.msra.mxu0 %v690_v33  ;;  %v2128_v32 = vcombine.low %v2111_v20, %v2125_v21  ;;  %v806_v33 = vld [vmem:[#allocation2 + $0x13f8] sm:$0xff]  ;;  %v747_v21 = vld [vmem:[#allocation2 + $0x1220] sm:$0xff] }
 0x14e   :  { %6871 = vmatpush3.msra.mxu1 %v722_v34  ;;  %6837 = vmatprep.subr.mxu0 %v705_v35  ;;  %v758_v34 = vld [vmem:[#allocation2 + $0x1278] sm:$0xff] }
 0x14f   :  { %6872 = vmatprep.subr.mxu1 %v737_v36  ;;  %6838 = vmatpush3.msra.mxu0 %v689_v37  ;;  %v790_v35 = vld [vmem:[#allocation2 + $0x1378] sm:$0xff]  ;;  %v773_v36 = vld [vmem:[#allocation2 + $0x12f0] sm:$0xff] }
 0x150   :  { %6873 = vmatpush3.msra.mxu1 %v721_v38  ;;  %6839 = vmatprep.subr.mxu0 %v704_v39  ;;  %v805_v37 = vld [vmem:[#allocation2 + $0x13f0] sm:$0xff] }
 0x151   :  { %6874 = vmatprep.subr.mxu1 %v736_v40  ;;  %6840 = vmatpush3.msra.mxu0 %v688_v41  ;;  %v757_v38 = vld [vmem:[#allocation2 + $0x1270] sm:$0xff]  ;;  %v772_v40 = vld [vmem:[#allocation2 + $0x12e8] sm:$0xff] }
 0x152   :  { %6875 = vmatpush3.msra.mxu1 %v720_v42  ;;  %6841 = vmatprep.subr.mxu0 %v703_v43  ;;  %v789_v39 = vld [vmem:[#allocation2 + $0x1370] sm:$0xff]  ;;  %v804_v41 = vld [vmem:[#allocation2 + $0x13e8] sm:$0xff] }
 0x153   :  { %6876 = vmatprep.subr.mxu1 %v735_v44  ;;  %6842 = vmatpush3.msra.mxu0 %v687_v45  ;;  %v756_v42 = vld [vmem:[#allocation2 + $0x1268] sm:$0xff]  ;;  %v771_v44 = vld [vmem:[#allocation2 + $0x12e0] sm:$0xff] }
 0x154   :  { %6877 = vmatpush3.msra.mxu1 %v719_v46  ;;  %6843 = vmatprep.subr.mxu0 %v702_v47  ;;  %v788_v43 = vld [vmem:[#allocation2 + $0x1368] sm:$0xff]  ;;  %v803_v45 = vld [vmem:[#allocation2 + $0x13e0] sm:$0xff] }
 0x155   :  { %6878 = vmatprep.subr.mxu1 %v734_v48  ;;  %6844 = vmatpush3.msra.mxu0 %v686_v49  ;;  %v755_v46 = vld [vmem:[#allocation2 + $0x1260] sm:$0xff]  ;;  %v770_v48 = vld [vmem:[#allocation2 + $0x12d8] sm:$0xff] }
 0x156   :  { %6879 = vmatpush3.msra.mxu1 %v718_v50  ;;  %6845 = vmatprep.subr.mxu0 %v701_v51  ;;  %v787_v47 = vld [vmem:[#allocation2 + $0x1360] sm:$0xff]  ;;  %v802_v49 = vld [vmem:[#allocation2 + $0x13d8] sm:$0xff] }
 0x157   :  { %6880 = vmatprep.subr.mxu1 %v733_v52  ;;  %6846 = vmatpush3.msra.mxu0 %v685_v54  ;;  %v754_v50 = vld [vmem:[#allocation2 + $0x1258] sm:$0xff]  ;;  %v769_v52 = vld [vmem:[#allocation2 + $0x12d0] sm:$0xff] }
 0x158   :  { %6881 = vmatpush3.msra.mxu1 %v717_v55  ;;  %6847 = vmatprep.subr.mxu0 %v700_v60  ;;  %v786_v51 = vld [vmem:[#allocation2 + $0x1358] sm:$0xff]  ;;  %v801_v54 = vld [vmem:[#allocation2 + $0x13d0] sm:$0xff]  ;;  %v784_v60 = vld [vmem:[#allocation2 + $0x1348] sm:$0xff] }
 0x159   :  { %6882 = vmatprep.subr.mxu1 %v732_v61  ;;  %6848 = vmatpush3.msra.mxu0 %v684_v62  ;;  %v753_v55 = vld [vmem:[#allocation2 + $0x1250] sm:$0xff]  ;;  %v767_v61 = vld [vmem:[#allocation2 + $0x12c0] sm:$0xff] }
 0x15a   :  { %6883 = vmatpush3.msra.mxu1 %v716_v63  ;;  %6849 = vmatprep.subr.mxu0 %v699_v0  ;;  %v799_v62 = vld [vmem:[#allocation2 + $0x13c0] sm:$0xff] }
 0x15b   :  { %6884 = vmatprep.subr.mxu1 %v731_v1  ;;  %6850 = vmatpush3.msra.mxu0 %v683_v4  ;;  %v751_v63 = vld [vmem:[#allocation2 + $0x1240] sm:$0xff]  ;;  %v766_v1 = vld [vmem:[#allocation2 + $0x12b8] sm:$0xff] }
 0x15c   :  { %6885 = vmatpush3.msra.mxu1 %v715_v5  ;;  %6851 = vmatprep.subr.mxu0 %v698_v6  ;;  %v783_v0 = vld [vmem:[#allocation2 + $0x1340] sm:$0xff]  ;;  %v782_v4 = vld [vmem:[#allocation2 + $0x1338] sm:$0xff]  ;;  %v765_v5 = vld [vmem:[#allocation2 + $0x12b0] sm:$0xff] }
 0x15d   :  { %6886 = vmatprep.subr.mxu1 %v730_v7  ;;  %6852 = vmatpush3.msra.mxu0 %v682_v10  ;;  %v797_v6 = vld [vmem:[#allocation2 + $0x13b0] sm:$0xff]  ;;  %v104_v10 = vld [vmem:[%s8551_s0 + $0x108] sm:$0xff] }
 0x15e   :  { %6887 = vmatpush3.msra.mxu1 %v714_v11  ;;  %6853 = vmatprep.subr.mxu0 %v697_v12  ;;  %v749_v7 = vld [vmem:[#allocation2 + $0x1230] sm:$0xff]  ;;  %v128_v11 = vld [vmem:[%s8551_s0 + $0x1c8] sm:$0xff] }
 0x15f   :  { %6888 = vmatprep.subr.mxu1 %v729_v13  ;;  %6854 = vmatpush3.msra.mxu0 %v681_v16  ;;  %v152_v12 = vld [vmem:[%s8551_s0 + $0x288] sm:$0xff] }
 0x160   :  { %6889 = vmatpush3.msra.mxu1 %v713_v17  ;;  %6855 = vmatprep.subr.mxu0 %v696_v18  ;;  %v764_v13 = vld [vmem:[#allocation2 + $0x12a8] sm:$0xff]  ;;  %v763_v17 = vld [vmem:[#allocation2 + $0x12a0] sm:$0xff]  ;;  %v2132_v20 = vcombine.low %v128_v11, %v152_v12 }
 0x161   :  { %6890 = vmatprep.subr.mxu1 %v728_v19  ;;  %6856 = vmatpush3.msra.mxu0 %v680_v22  ;;  %v780_v16 = vld [vmem:[#allocation2 + $0x1328] sm:$0xff]  ;;  %v795_v18 = vld [vmem:[#allocation2 + $0x13a0] sm:$0xff]  ;;  %v2130_v19 = vcombine.low %v80_v9, %v104_v10 }
 0x162   :  { %6891 = vmatpush3.msra.mxu1 %v712_v23  ;;  %6857 = vmatprep.subr.mxu0 %v695_v24  ;;  %v779_v22 = vld [vmem:[#allocation2 + $0x1320] sm:$0xff]  ;;  %v762_v23 = vld [vmem:[#allocation2 + $0x1298] sm:$0xff] }
 0x163   :  { %6892 = vmatprep.subr.mxu1 %v727_v25  ;;  %6858 = vmatpush3.msra.mxu0 %v679_v27  ;;  %v794_v24 = vld [vmem:[#allocation2 + $0x1398] sm:$0xff]  ;;  %v2131_v25 = vcombine.high %v80_v9, %v104_v10  ;;  %v849_v9 = vld [vmem:[#allocation2 + $0x1550] sm:$0xff]  ;;  %v832_v10 = vld [vmem:[#allocation2 + $0x14c8] sm:$0xff] }
 0x164   :  { %3950 = vmatprep.mubr.f32.mxu0 %v2127_v26  ;;  %6893 = vmatpush3.msra.mxu1 %v711_v29  ;;  %v2133_v26 = vcombine.high %v128_v11, %v152_v12  ;;  %v746_v27 = vld [vmem:[#allocation2 + $0x1218] sm:$0xff]  ;;  %v761_v29 = vld [vmem:[#allocation2 + $0x1290] sm:$0xff]  ;;  %v864_v11 = vld [vmem:[#allocation2 + $0x15c8] sm:$0xff] }
 0x165   :  { %3951 = vmatmul.mubr.f32.vlgmr.msra.gmra.mxu0 %v2126_v28  ;;  %4020 = vmatprep.mubr.f32.mxu1 %v2129_v30  ;;  %v778_v28 = vld [vmem:[#allocation2 + $0x1318] sm:$0xff]  ;;  %v793_v30 = vld [vmem:[#allocation2 + $0x1390] sm:$0xff]  ;;  %v816_v12 = vld [vmem:[#allocation2 + $0x1448] sm:$0xff] }
 0x166   :  { %6897 = vmatprep.subr.mxu0 %v774_v31  ;;  %6932 = vmatprep.subr.mxu1 %v806_v33  ;;  %v2140_v31 = vrot.slane %v2130_v19, %v8145_v53  ;;  %v745_v33 = vld [vmem:[#allocation2 + $0x1210] sm:$0xff]  ;;  %v862_v19 = vld [vmem:[#allocation2 + $0x15b8] sm:$0xff] }
 0x167   :  { %4021 = vmatmul.mubr.f32.vlgmr.msra.gmra.mxu1 %v2128_v32  ;;  %6898 = vmatpush3.msra.mxu0 %v758_v34  ;;  %v2154_v32 = vrot.slane %v2132_v20, %v8145_v53  ;;  %v777_v34 = vld [vmem:[#allocation2 + $0x1310] sm:$0xff]  ;;  %v814_v20 = vld [vmem:[#allocation2 + $0x1438] sm:$0xff] }
 0x168   :  { %6933 = vmatpush3.msra.mxu1 %v790_v35  ;;  %6899 = vmatprep.subr.mxu0 %v773_v36  ;;  %v760_v35 = vld [vmem:[#allocation2 + $0x1288] sm:$0xff] }
 0x169   :  { %6934 = vmatprep.subr.mxu1 %v805_v37  ;;  %6900 = vmatpush3.msra.mxu0 %v757_v38  ;;  %v792_v36 = vld [vmem:[#allocation2 + $0x1388] sm:$0xff]  ;;  %v2147_v37 = vrot.slane %v2131_v25, %v8145_v53  ;;  %v2161_v38 = vrot.slane %v2133_v26, %v8145_v53  ;;  %v845_v25 = vld [vmem:[#allocation2 + $0x1530] sm:$0xff] }
 0x16a   :  { %6935 = vmatpush3.msra.mxu1 %v789_v39  ;;  %6901 = vmatprep.subr.mxu0 %v772_v40  ;;  %v744_v39 = vld [vmem:[#allocation2 + $0x1208] sm:$0xff]  ;;  %v81_v26 = vld [vmem:[%s8551_s0 + $0x50] sm:$0xff] }
 0x16b   :  { %6936 = vmatprep.subr.mxu1 %v804_v41  ;;  %6902 = vmatpush3.msra.mxu0 %v756_v42  ;;  %v776_v40 = vld [vmem:[#allocation2 + $0x1308] sm:$0xff]  ;;  %v759_v41 = vld [vmem:[#allocation2 + $0x1280] sm:$0xff] }
 0x16c   :  { %6937 = vmatpush3.msra.mxu1 %v788_v43  ;;  %6903 = vmatprep.subr.mxu0 %v771_v44  ;;  %v791_v42 = vld [vmem:[#allocation2 + $0x1380] sm:$0xff]  ;;  %v2163_v43 = vcombine.high %v2140_v31, %v2154_v32 }
 0x16d   :  { %6938 = vmatprep.subr.mxu1 %v803_v45  ;;  %6904 = vmatpush3.msra.mxu0 %v755_v46  ;;  %v743_v44 = vld [vmem:[#allocation2 + $0x1200] sm:$0xff]  ;;  %v2162_v45 = vcombine.low %v2140_v31, %v2154_v32  ;;  %v860_v31 = vld [vmem:[#allocation2 + $0x15a8] sm:$0xff] }
 0x16e   :  { %6939 = vmatpush3.msra.mxu1 %v787_v47  ;;  %6905 = vmatprep.subr.mxu0 %v770_v48  ;;  %v775_v46 = vld [vmem:[#allocation2 + $0x1300] sm:$0xff]  ;;  %v2165_v47 = vcombine.high %v2147_v37, %v2161_v38  ;;  %v838_v48 = vld [vmem:[#allocation2 + $0x14f8] sm:$0xff]  ;;  %v812_v32 = vld [vmem:[#allocation2 + $0x1428] sm:$0xff] }
 0x16f   :  { %6940 = vmatprep.subr.mxu1 %v802_v49  ;;  %6906 = vmatpush3.msra.mxu0 %v754_v50  ;;  %v2164_v49 = vcombine.low %v2147_v37, %v2161_v38  ;;  %v870_v50 = vld [vmem:[#allocation2 + $0x15f8] sm:$0xff]  ;;  %v811_v38 = vld [vmem:[#allocation2 + $0x1420] sm:$0xff] }
 0x170   :  { %6941 = vmatpush3.msra.mxu1 %v786_v51  ;;  %6907 = vmatprep.subr.mxu0 %v769_v52  ;;  %v822_v51 = vld [vmem:[#allocation2 + $0x1478] sm:$0xff] }
 0x171   :  { %6942 = vmatprep.subr.mxu1 %v801_v54  ;;  %6908 = vmatpush3.msra.mxu0 %v753_v55  ;;  %v854_v52 = vld [vmem:[#allocation2 + $0x1578] sm:$0xff]  ;;  %v837_v54 = vld [vmem:[#allocation2 + $0x14f0] sm:$0xff] }
 0x172   :  { %6943 = vmatpush3.msra.mxu1 %v785_v56  ;;  %6909 = vmatprep.subr.mxu0 %v768_v57  ;;  %v869_v55 = vld [vmem:[#allocation2 + $0x15f0] sm:$0xff] }
 0x173   :  { %6944 = vmatprep.subr.mxu1 %v800_v58  ;;  %6910 = vmatpush3.msra.mxu0 %v752_v59  ;;  %v821_v56 = vld [vmem:[#allocation2 + $0x1470] sm:$0xff]  ;;  %v836_v58 = vld [vmem:[#allocation2 + $0x14e8] sm:$0xff] }
 0x174   :  { %6945 = vmatpush3.msra.mxu1 %v784_v60  ;;  %6911 = vmatprep.subr.mxu0 %v767_v61  ;;  %v853_v57 = vld [vmem:[#allocation2 + $0x1570] sm:$0xff]  ;;  %v868_v59 = vld [vmem:[#allocation2 + $0x15e8] sm:$0xff] }
 0x175   :  { %6946 = vmatprep.subr.mxu1 %v799_v62  ;;  %6912 = vmatpush3.msra.mxu0 %v751_v63  ;;  %v820_v60 = vld [vmem:[#allocation2 + $0x1468] sm:$0xff]  ;;  %v835_v62 = vld [vmem:[#allocation2 + $0x14e0] sm:$0xff] }
 0x176   :  { %6947 = vmatpush3.msra.mxu1 %v783_v0  ;;  %6913 = vmatprep.subr.mxu0 %v766_v1  ;;  %v852_v61 = vld [vmem:[#allocation2 + $0x1568] sm:$0xff]  ;;  %v867_v63 = vld [vmem:[#allocation2 + $0x15e0] sm:$0xff] }
 0x177   :  { %6948 = vmatprep.subr.mxu1 %v798_v2  ;;  %6914 = vmatpush3.msra.mxu0 %v750_v3  ;;  %v819_v0 = vld [vmem:[#allocation2 + $0x1460] sm:$0xff]  ;;  %v834_v2 = vld [vmem:[#allocation2 + $0x14d8] sm:$0xff] }
 0x178   :  { %6949 = vmatpush3.msra.mxu1 %v782_v4  ;;  %6915 = vmatprep.subr.mxu0 %v765_v5  ;;  %v851_v1 = vld [vmem:[#allocation2 + $0x1560] sm:$0xff]  ;;  %v866_v3 = vld [vmem:[#allocation2 + $0x15d8] sm:$0xff] }
 0x179   :  { %6950 = vmatprep.subr.mxu1 %v797_v6  ;;  %6916 = vmatpush3.msra.mxu0 %v749_v7  ;;  %v818_v4 = vld [vmem:[#allocation2 + $0x1458] sm:$0xff]  ;;  %v833_v6 = vld [vmem:[#allocation2 + $0x14d0] sm:$0xff] }
 0x17a   :  { %6951 = vmatpush3.msra.mxu1 %v781_v8  ;;  %6917 = vmatprep.subr.mxu0 %v764_v13  ;;  %v850_v5 = vld [vmem:[#allocation2 + $0x1558] sm:$0xff]  ;;  %v865_v7 = vld [vmem:[#allocation2 + $0x15d0] sm:$0xff]  ;;  %v848_v13 = vld [vmem:[#allocation2 + $0x1548] sm:$0xff] }
 0x17b   :  { %6952 = vmatprep.subr.mxu1 %v796_v14  ;;  %6918 = vmatpush3.msra.mxu0 %v748_v15  ;;  %v817_v8 = vld [vmem:[#allocation2 + $0x1450] sm:$0xff]  ;;  %v831_v14 = vld [vmem:[#allocation2 + $0x14c0] sm:$0xff] }
 0x17c   :  { %6953 = vmatpush3.msra.mxu1 %v780_v16  ;;  %6919 = vmatprep.subr.mxu0 %v763_v17  ;;  %v863_v15 = vld [vmem:[#allocation2 + $0x15c0] sm:$0xff] }
 0x17d   :  { %6954 = vmatprep.subr.mxu1 %v795_v18  ;;  %6920 = vmatpush3.msra.mxu0 %v747_v21  ;;  %v815_v16 = vld [vmem:[#allocation2 + $0x1440] sm:$0xff]  ;;  %v830_v18 = vld [vmem:[#allocation2 + $0x14b8] sm:$0xff] }
 0x17e   :  { %6955 = vmatpush3.msra.mxu1 %v779_v22  ;;  %6921 = vmatprep.subr.mxu0 %v762_v23  ;;  %v847_v17 = vld [vmem:[#allocation2 + $0x1540] sm:$0xff]  ;;  %v846_v21 = vld [vmem:[#allocation2 + $0x1538] sm:$0xff]  ;;  %v829_v22 = vld [vmem:[#allocation2 + $0x14b0] sm:$0xff] }
 0x17f   :  { %6956 = vmatprep.subr.mxu1 %v794_v24  ;;  %6922 = vmatpush3.msra.mxu0 %v746_v27  ;;  %v861_v23 = vld [vmem:[#allocation2 + $0x15b0] sm:$0xff] }
 0x180   :  { %6957 = vmatpush3.msra.mxu1 %v778_v28  ;;  %6923 = vmatprep.subr.mxu0 %v761_v29  ;;  %v813_v24 = vld [vmem:[#allocation2 + $0x1430] sm:$0xff] }
 0x181   :  { %6958 = vmatprep.subr.mxu1 %v793_v30  ;;  %6924 = vmatpush3.msra.mxu0 %v745_v33  ;;  %v105_v27 = vld [vmem:[%s8551_s0 + $0x110] sm:$0xff]  ;;  %v828_v30 = vld [vmem:[#allocation2 + $0x14a8] sm:$0xff] }
 0x182   :  { %6959 = vmatpush3.msra.mxu1 %v777_v34  ;;  %6925 = vmatprep.subr.mxu0 %v760_v35  ;;  %v129_v28 = vld [vmem:[%s8551_s0 + $0x1d0] sm:$0xff]  ;;  %v844_v33 = vld [vmem:[#allocation2 + $0x1528] sm:$0xff]  ;;  %v827_v34 = vld [vmem:[#allocation2 + $0x14a0] sm:$0xff] }
 0x183   :  { %6960 = vmatprep.subr.mxu1 %v792_v36  ;;  %6926 = vmatpush3.msra.mxu0 %v744_v39  ;;  %v153_v29 = vld [vmem:[%s8551_s0 + $0x290] sm:$0xff]  ;;  %v859_v35 = vld [vmem:[#allocation2 + $0x15a0] sm:$0xff]  ;;  %v2166_v36 = vcombine.low %v81_v26, %v105_v27 }
 0x184   :  { %6961 = vmatpush3.msra.mxu1 %v776_v40  ;;  %6927 = vmatprep.subr.mxu0 %v759_v41  ;;  %v2168_v37 = vcombine.low %v129_v28, %v153_v29  ;;  %v843_v39 = vld [vmem:[#allocation2 + $0x1520] sm:$0xff]  ;;  %v826_v40 = vld [vmem:[#allocation2 + $0x1498] sm:$0xff] }
 0x185   :  { %6962 = vmatprep.subr.mxu1 %v791_v42  ;;  %6928 = vmatpush3.msra.mxu0 %v743_v44  ;;  %v858_v41 = vld [vmem:[#allocation2 + $0x1598] sm:$0xff]  ;;  %v2167_v42 = vcombine.high %v81_v26, %v105_v27  ;;  %v913_v26 = vld [vmem:[#allocation2 + $0x1750] sm:$0xff]  ;;  %v896_v27 = vld [vmem:[#allocation2 + $0x16c8] sm:$0xff] }
 0x186   :  { %4090 = vmatprep.mubr.f32.mxu0 %v2163_v43  ;;  %6963 = vmatpush3.msra.mxu1 %v775_v46  ;;  %v2169_v43 = vcombine.high %v129_v28, %v153_v29  ;;  %v810_v44 = vld [vmem:[#allocation2 + $0x1418] sm:$0xff]  ;;  %v825_v46 = vld [vmem:[#allocation2 + $0x1490] sm:$0xff]  ;;  %v928_v28 = vld [vmem:[#allocation2 + $0x17c8] sm:$0xff] }
 0x187   :  { %4091 = vmatmul.mubr.f32.vlgmr.msra.gmra.mxu0 %v2162_v45  ;;  %4160 = vmatprep.mubr.f32.mxu1 %v2165_v47  ;;  %v842_v45 = vld [vmem:[#allocation2 + $0x1518] sm:$0xff]  ;;  %v857_v47 = vld [vmem:[#allocation2 + $0x1590] sm:$0xff]  ;;  %v880_v29 = vld [vmem:[#allocation2 + $0x1648] sm:$0xff] }
 0x188   :  { %6967 = vmatprep.subr.mxu0 %v838_v48  ;;  %7002 = vmatprep.subr.mxu1 %v870_v50  ;;  %v2176_v48 = vrot.slane %v2166_v36, %v8145_v53  ;;  %v809_v50 = vld [vmem:[#allocation2 + $0x1410] sm:$0xff]  ;;  %v926_v36 = vld [vmem:[#allocation2 + $0x17b8] sm:$0xff] }
 0x189   :  { %4161 = vmatmul.mubr.f32.vlgmr.msra.gmra.mxu1 %v2164_v49  ;;  %6968 = vmatpush3.msra.mxu0 %v822_v51  ;;  %v2190_v49 = vrot.slane %v2168_v37, %v8145_v53  ;;  %v841_v51 = vld [vmem:[#allocation2 + $0x1510] sm:$0xff]  ;;  %v878_v37 = vld [vmem:[#allocation2 + $0x1638] sm:$0xff] }
 0x18a   :  { %7003 = vmatpush3.msra.mxu1 %v854_v52  ;;  %6969 = vmatprep.subr.mxu0 %v837_v54  ;;  %v824_v52 = vld [vmem:[#allocation2 + $0x1488] sm:$0xff] }
 0x18b   :  { %7004 = vmatprep.subr.mxu1 %v869_v55  ;;  %6970 = vmatpush3.msra.mxu0 %v821_v56  ;;  %v856_v54 = vld [vmem:[#allocation2 + $0x1588] sm:$0xff]  ;;  %v2183_v55 = vrot.slane %v2167_v42, %v8145_v53  ;;  %v2197_v56 = vrot.slane %v2169_v43, %v8145_v53  ;;  %v909_v42 = vld [vmem:[#allocation2 + $0x1730] sm:$0xff]  ;;  %v82_v43 = vld [vmem:[%s8551_s0 + $0x58] sm:$0xff] }
 0x18c   :  { %7005 = vmatpush3.msra.mxu1 %v853_v57  ;;  %6971 = vmatprep.subr.mxu0 %v836_v58  ;;  %v808_v57 = vld [vmem:[#allocation2 + $0x1408] sm:$0xff] }
 0x18d   :  { %7006 = vmatprep.subr.mxu1 %v868_v59  ;;  %6972 = vmatpush3.msra.mxu0 %v820_v60  ;;  %v840_v58 = vld [vmem:[#allocation2 + $0x1508] sm:$0xff]  ;;  %v823_v59 = vld [vmem:[#allocation2 + $0x1480] sm:$0xff] }
 0x18e   :  { %7007 = vmatpush3.msra.mxu1 %v852_v61  ;;  %6973 = vmatprep.subr.mxu0 %v835_v62  ;;  %v855_v60 = vld [vmem:[#allocation2 + $0x1580] sm:$0xff]  ;;  %v2199_v61 = vcombine.high %v2176_v48, %v2190_v49 }
 0x18f   :  { %7008 = vmatprep.subr.mxu1 %v867_v63  ;;  %6974 = vmatpush3.msra.mxu0 %v819_v0  ;;  %v807_v62 = vld [vmem:[#allocation2 + $0x1400] sm:$0xff]  ;;  %v2198_v63 = vcombine.low %v2176_v48, %v2190_v49  ;;  %v924_v48 = vld [vmem:[#allocation2 + $0x17a8] sm:$0xff] }
 0x190   :  { %7009 = vmatpush3.msra.mxu1 %v851_v1  ;;  %6975 = vmatprep.subr.mxu0 %v834_v2  ;;  %v839_v0 = vld [vmem:[#allocation2 + $0x1500] sm:$0xff]  ;;  %v2201_v1 = vcombine.high %v2183_v55, %v2197_v56  ;;  %v902_v2 = vld [vmem:[#allocation2 + $0x16f8] sm:$0xff]  ;;  %v876_v49 = vld [vmem:[#allocation2 + $0x1628] sm:$0xff] }
 0x191   :  { %7010 = vmatprep.subr.mxu1 %v866_v3  ;;  %6976 = vmatpush3.msra.mxu0 %v818_v4  ;;  %v2200_v3 = vcombine.low %v2183_v55, %v2197_v56  ;;  %v934_v4 = vld [vmem:[#allocation2 + $0x17f8] sm:$0xff]  ;;  %v875_v56 = vld [vmem:[#allocation2 + $0x1620] sm:$0xff] }
 0x192   :  { %7011 = vmatpush3.msra.mxu1 %v850_v5  ;;  %6977 = vmatprep.subr.mxu0 %v833_v6  ;;  %v886_v5 = vld [vmem:[#allocation2 + $0x1678] sm:$0xff] }
 0x193   :  { %7012 = vmatprep.subr.mxu1 %v865_v7  ;;  %6978 = vmatpush3.msra.mxu0 %v817_v8  ;;  %v918_v6 = vld [vmem:[#allocation2 + $0x1778] sm:$0xff]  ;;  %v901_v7 = vld [vmem:[#allocation2 + $0x16f0] sm:$0xff] }
 0x194   :  { %7013 = vmatpush3.msra.mxu1 %v849_v9  ;;  %6979 = vmatprep.subr.mxu0 %v832_v10  ;;  %v933_v8 = vld [vmem:[#allocation2 + $0x17f0] sm:$0xff] }
 0x195   :  { %7014 = vmatprep.subr.mxu1 %v864_v11  ;;  %6980 = vmatpush3.msra.mxu0 %v816_v12  ;;  %v885_v9 = vld [vmem:[#allocation2 + $0x1670] sm:$0xff]  ;;  %v900_v11 = vld [vmem:[#allocation2 + $0x16e8] sm:$0xff] }
 0x196   :  { %7015 = vmatpush3.msra.mxu1 %v848_v13  ;;  %6981 = vmatprep.subr.mxu0 %v831_v14  ;;  %v917_v10 = vld [vmem:[#allocation2 + $0x1770] sm:$0xff]  ;;  %v932_v12 = vld [vmem:[#allocation2 + $0x17e8] sm:$0xff] }
 0x197   :  { %7016 = vmatprep.subr.mxu1 %v863_v15  ;;  %6982 = vmatpush3.msra.mxu0 %v815_v16  ;;  %v884_v13 = vld [vmem:[#allocation2 + $0x1668] sm:$0xff]  ;;  %v899_v15 = vld [vmem:[#allocation2 + $0x16e0] sm:$0xff] }
 0x198   :  { %7017 = vmatpush3.msra.mxu1 %v847_v17  ;;  %6983 = vmatprep.subr.mxu0 %v830_v18  ;;  %v916_v14 = vld [vmem:[#allocation2 + $0x1768] sm:$0xff]  ;;  %v931_v16 = vld [vmem:[#allocation2 + $0x17e0] sm:$0xff] }
 0x199   :  { %7018 = vmatprep.subr.mxu1 %v862_v19  ;;  %6984 = vmatpush3.msra.mxu0 %v814_v20  ;;  %v883_v17 = vld [vmem:[#allocation2 + $0x1660] sm:$0xff]  ;;  %v898_v19 = vld [vmem:[#allocation2 + $0x16d8] sm:$0xff] }
 0x19a   :  { %7019 = vmatpush3.msra.mxu1 %v846_v21  ;;  %6985 = vmatprep.subr.mxu0 %v829_v22  ;;  %v915_v18 = vld [vmem:[#allocation2 + $0x1760] sm:$0xff]  ;;  %v930_v20 = vld [vmem:[#allocation2 + $0x17d8] sm:$0xff] }
 0x19b   :  { %7020 = vmatprep.subr.mxu1 %v861_v23  ;;  %6986 = vmatpush3.msra.mxu0 %v813_v24  ;;  %v882_v21 = vld [vmem:[#allocation2 + $0x1658] sm:$0xff]  ;;  %v897_v23 = vld [vmem:[#allocation2 + $0x16d0] sm:$0xff] }
 0x19c   :  { %7021 = vmatpush3.msra.mxu1 %v845_v25  ;;  %6987 = vmatprep.subr.mxu0 %v828_v30  ;;  %v914_v22 = vld [vmem:[#allocation2 + $0x1758] sm:$0xff]  ;;  %v929_v24 = vld [vmem:[#allocation2 + $0x17d0] sm:$0xff]  ;;  %v912_v30 = vld [vmem:[#allocation2 + $0x1748] sm:$0xff] }
 0x19d   :  { %7022 = vmatprep.subr.mxu1 %v860_v31  ;;  %6988 = vmatpush3.msra.mxu0 %v812_v32  ;;  %v881_v25 = vld [vmem:[#allocation2 + $0x1650] sm:$0xff]  ;;  %v895_v31 = vld [vmem:[#allocation2 + $0x16c0] sm:$0xff] }
 0x19e   :  { %7023 = vmatpush3.msra.mxu1 %v844_v33  ;;  %6989 = vmatprep.subr.mxu0 %v827_v34  ;;  %v927_v32 = vld [vmem:[#allocation2 + $0x17c0] sm:$0xff] }
 0x19f   :  { %7024 = vmatprep.subr.mxu1 %v859_v35  ;;  %6990 = vmatpush3.msra.mxu0 %v811_v38  ;;  %v879_v33 = vld [vmem:[#allocation2 + $0x1640] sm:$0xff]  ;;  %v894_v35 = vld [vmem:[#allocation2 + $0x16b8] sm:$0xff] }
 0x1a0   :  { %7025 = vmatpush3.msra.mxu1 %v843_v39  ;;  %6991 = vmatprep.subr.mxu0 %v826_v40  ;;  %v911_v34 = vld [vmem:[#allocation2 + $0x1740] sm:$0xff]  ;;  %v910_v38 = vld [vmem:[#allocation2 + $0x1738] sm:$0xff]  ;;  %v893_v39 = vld [vmem:[#allocation2 + $0x16b0] sm:$0xff] }
 0x1a1   :  { %7026 = vmatprep.subr.mxu1 %v858_v41  ;;  %6992 = vmatpush3.msra.mxu0 %v810_v44  ;;  %v925_v40 = vld [vmem:[#allocation2 + $0x17b0] sm:$0xff]  ;;  %v106_v44 = vld [vmem:[%s8551_s0 + $0x118] sm:$0xff] }
 0x1a2   :  { %7027 = vmatpush3.msra.mxu1 %v842_v45  ;;  %6993 = vmatprep.subr.mxu0 %v825_v46  ;;  %v877_v41 = vld [vmem:[#allocation2 + $0x1630] sm:$0xff]  ;;  %v130_v45 = vld [vmem:[%s8551_s0 + $0x1d8] sm:$0xff] }
 0x1a3   :  { %7028 = vmatprep.subr.mxu1 %v857_v47  ;;  %6994 = vmatpush3.msra.mxu0 %v809_v50  ;;  %v154_v46 = vld [vmem:[%s8551_s0 + $0x298] sm:$0xff]  ;;  %v892_v47 = vld [vmem:[#allocation2 + $0x16a8] sm:$0xff] }
 0x1a4   :  { %7029 = vmatpush3.msra.mxu1 %v841_v51  ;;  %6995 = vmatprep.subr.mxu0 %v824_v52  ;;  %v908_v50 = vld [vmem:[#allocation2 + $0x1728] sm:$0xff]  ;;  %v891_v51 = vld [vmem:[#allocation2 + $0x16a0] sm:$0xff]  ;;  %v2204_v55 = vcombine.low %v130_v45, %v154_v46 }
 0x1a5   :  { %7030 = vmatprep.subr.mxu1 %v856_v54  ;;  %6996 = vmatpush3.msra.mxu0 %v808_v57  ;;  %v923_v52 = vld [vmem:[#allocation2 + $0x17a0] sm:$0xff]  ;;  %v2202_v54 = vcombine.low %v82_v43, %v106_v44 }
 0x1a6   :  { %7031 = vmatpush3.msra.mxu1 %v840_v58  ;;  %6997 = vmatprep.subr.mxu0 %v823_v59  ;;  %v907_v57 = vld [vmem:[#allocation2 + $0x1720] sm:$0xff]  ;;  %v890_v58 = vld [vmem:[#allocation2 + $0x1698] sm:$0xff] }
 0x1a7   :  { %7032 = vmatprep.subr.mxu1 %v855_v60  ;;  %6998 = vmatpush3.msra.mxu0 %v807_v62  ;;  %v922_v59 = vld [vmem:[#allocation2 + $0x1798] sm:$0xff]  ;;  %v2203_v60 = vcombine.high %v82_v43, %v106_v44  ;;  %v977_v43 = vld [vmem:[#allocation2 + $0x1950] sm:$0xff]  ;;  %v960_v44 = vld [vmem:[#allocation2 + $0x18c8] sm:$0xff] }
 0x1a8   :  { %4230 = vmatprep.mubr.f32.mxu0 %v2199_v61  ;;  %7033 = vmatpush3.msra.mxu1 %v839_v0  ;;  %v2205_v61 = vcombine.high %v130_v45, %v154_v46  ;;  %v874_v62 = vld [vmem:[#allocation2 + $0x1618] sm:$0xff]  ;;  %v889_v0 = vld [vmem:[#allocation2 + $0x1690] sm:$0xff]  ;;  %v992_v45 = vld [vmem:[#allocation2 + $0x19c8] sm:$0xff] }
 0x1a9   :  { %4231 = vmatmul.mubr.f32.vlgmr.msra.gmra.mxu0 %v2198_v63  ;;  %4300 = vmatprep.mubr.f32.mxu1 %v2201_v1  ;;  %v906_v63 = vld [vmem:[#allocation2 + $0x1718] sm:$0xff]  ;;  %v921_v1 = vld [vmem:[#allocation2 + $0x1790] sm:$0xff]  ;;  %v944_v46 = vld [vmem:[#allocation2 + $0x1848] sm:$0xff] }
 0x1aa   :  { %7037 = vmatprep.subr.mxu0 %v902_v2  ;;  %7072 = vmatprep.subr.mxu1 %v934_v4  ;;  %v2212_v2 = vrot.slane %v2202_v54, %v8145_v53  ;;  %v873_v4 = vld [vmem:[#allocation2 + $0x1610] sm:$0xff]  ;;  %v990_v54 = vld [vmem:[#allocation2 + $0x19b8] sm:$0xff] }
 0x1ab   :  { %4301 = vmatmul.mubr.f32.vlgmr.msra.gmra.mxu1 %v2200_v3  ;;  %7038 = vmatpush3.msra.mxu0 %v886_v5  ;;  %v2226_v3 = vrot.slane %v2204_v55, %v8145_v53  ;;  %v905_v5 = vld [vmem:[#allocation2 + $0x1710] sm:$0xff]  ;;  %v942_v55 = vld [vmem:[#allocation2 + $0x1838] sm:$0xff] }
 0x1ac   :  { %7073 = vmatpush3.msra.mxu1 %v918_v6  ;;  %7039 = vmatprep.subr.mxu0 %v901_v7  ;;  %v888_v6 = vld [vmem:[#allocation2 + $0x1688] sm:$0xff] }
 0x1ad   :  { %7074 = vmatprep.subr.mxu1 %v933_v8  ;;  %7040 = vmatpush3.msra.mxu0 %v885_v9  ;;  %v920_v7 = vld [vmem:[#allocation2 + $0x1788] sm:$0xff]  ;;  %v2219_v8 = vrot.slane %v2203_v60, %v8145_v53  ;;  %v2233_v9 = vrot.slane %v2205_v61, %v8145_v53  ;;  %v973_v60 = vld [vmem:[#allocation2 + $0x1930] sm:$0xff]  ;;  %v83_v61 = vld [vmem:[%s8551_s0 + $0x60] sm:$0xff] }
 0x1ae   :  { %7075 = vmatpush3.msra.mxu1 %v917_v10  ;;  %7041 = vmatprep.subr.mxu0 %v900_v11  ;;  %v872_v10 = vld [vmem:[#allocation2 + $0x1608] sm:$0xff] }
 0x1af   :  { %7076 = vmatprep.subr.mxu1 %v932_v12  ;;  %7042 = vmatpush3.msra.mxu0 %v884_v13  ;;  %v904_v11 = vld [vmem:[#allocation2 + $0x1708] sm:$0xff]  ;;  %v887_v12 = vld [vmem:[#allocation2 + $0x1680] sm:$0xff] }
 0x1b0   :  { %7077 = vmatpush3.msra.mxu1 %v916_v14  ;;  %7043 = vmatprep.subr.mxu0 %v899_v15  ;;  %v919_v13 = vld [vmem:[#allocation2 + $0x1780] sm:$0xff]  ;;  %v2235_v14 = vcombine.high %v2212_v2, %v2226_v3 }
 0x1b1   :  { %7078 = vmatprep.subr.mxu1 %v931_v16  ;;  %7044 = vmatpush3.msra.mxu0 %v883_v17  ;;  %v871_v15 = vld [vmem:[#allocation2 + $0x1600] sm:$0xff]  ;;  %v2234_v16 = vcombine.low %v2212_v2, %v2226_v3  ;;  %v988_v2 = vld [vmem:[#allocation2 + $0x19a8] sm:$0xff] }
 0x1b2   :  { %7079 = vmatpush3.msra.mxu1 %v915_v18  ;;  %7045 = vmatprep.subr.mxu0 %v898_v19  ;;  %v903_v17 = vld [vmem:[#allocation2 + $0x1700] sm:$0xff]  ;;  %v2237_v18 = vcombine.high %v2219_v8, %v2233_v9  ;;  %v966_v19 = vld [vmem:[#allocation2 + $0x18f8] sm:$0xff]  ;;  %v940_v3 = vld [vmem:[#allocation2 + $0x1828] sm:$0xff] }
 0x1b3   :  { %7080 = vmatprep.subr.mxu1 %v930_v20  ;;  %7046 = vmatpush3.msra.mxu0 %v882_v21  ;;  %v2236_v20 = vcombine.low %v2219_v8, %v2233_v9  ;;  %v998_v21 = vld [vmem:[#allocation2 + $0x19f8] sm:$0xff]  ;;  %v939_v9 = vld [vmem:[#allocation2 + $0x1820] sm:$0xff] }
 0x1b4   :  { %7081 = vmatpush3.msra.mxu1 %v914_v22  ;;  %7047 = vmatprep.subr.mxu0 %v897_v23  ;;  %v950_v22 = vld [vmem:[#allocation2 + $0x1878] sm:$0xff] }
 0x1b5   :  { %7082 = vmatprep.subr.mxu1 %v929_v24  ;;  %7048 = vmatpush3.msra.mxu0 %v881_v25  ;;  %v982_v23 = vld [vmem:[#allocation2 + $0x1978] sm:$0xff]  ;;  %v965_v24 = vld [vmem:[#allocation2 + $0x18f0] sm:$0xff] }
 0x1b6   :  { %7083 = vmatpush3.msra.mxu1 %v913_v26  ;;  %7049 = vmatprep.subr.mxu0 %v896_v27  ;;  %v997_v25 = vld [vmem:[#allocation2 + $0x19f0] sm:$0xff] }
 0x1b7   :  { %7084 = vmatprep.subr.mxu1 %v928_v28  ;;  %7050 = vmatpush3.msra.mxu0 %v880_v29  ;;  %v949_v26 = vld [vmem:[#allocation2 + $0x1870] sm:$0xff]  ;;  %v964_v28 = vld [vmem:[#allocation2 + $0x18e8] sm:$0xff] }
 0x1b8   :  { %7085 = vmatpush3.msra.mxu1 %v912_v30  ;;  %7051 = vmatprep.subr.mxu0 %v895_v31  ;;  %v981_v27 = vld [vmem:[#allocation2 + $0x1970] sm:$0xff]  ;;  %v996_v29 = vld [vmem:[#allocation2 + $0x19e8] sm:$0xff] }
 0x1b9   :  { %7086 = vmatprep.subr.mxu1 %v927_v32  ;;  %7052 = vmatpush3.msra.mxu0 %v879_v33  ;;  %v948_v30 = vld [vmem:[#allocation2 + $0x1868] sm:$0xff]  ;;  %v963_v32 = vld [vmem:[#allocation2 + $0x18e0] sm:$0xff] }
 0x1ba   :  { %7087 = vmatpush3.msra.mxu1 %v911_v34  ;;  %7053 = vmatprep.subr.mxu0 %v894_v35  ;;  %v980_v31 = vld [vmem:[#allocation2 + $0x1968] sm:$0xff]  ;;  %v995_v33 = vld [vmem:[#allocation2 + $0x19e0] sm:$0xff] }
 0x1bb   :  { %7088 = vmatprep.subr.mxu1 %v926_v36  ;;  %7054 = vmatpush3.msra.mxu0 %v878_v37  ;;  %v947_v34 = vld [vmem:[#allocation2 + $0x1860] sm:$0xff]  ;;  %v962_v36 = vld [vmem:[#allocation2 + $0x18d8] sm:$0xff] }
 0x1bc   :  { %7089 = vmatpush3.msra.mxu1 %v910_v38  ;;  %7055 = vmatprep.subr.mxu0 %v893_v39  ;;  %v979_v35 = vld [vmem:[#allocation2 + $0x1960] sm:$0xff]  ;;  %v994_v37 = vld [vmem:[#allocation2 + $0x19d8] sm:$0xff] }
 0x1bd   :  { %7090 = vmatprep.subr.mxu1 %v925_v40  ;;  %7056 = vmatpush3.msra.mxu0 %v877_v41  ;;  %v946_v38 = vld [vmem:[#allocation2 + $0x1858] sm:$0xff]  ;;  %v961_v40 = vld [vmem:[#allocation2 + $0x18d0] sm:$0xff] }
 0x1be   :  { %7091 = vmatpush3.msra.mxu1 %v909_v42  ;;  %7057 = vmatprep.subr.mxu0 %v892_v47  ;;  %v978_v39 = vld [vmem:[#allocation2 + $0x1958] sm:$0xff]  ;;  %v993_v41 = vld [vmem:[#allocation2 + $0x19d0] sm:$0xff]  ;;  %v976_v47 = vld [vmem:[#allocation2 + $0x1948] sm:$0xff] }
 0x1bf   :  { %7092 = vmatprep.subr.mxu1 %v924_v48  ;;  %7058 = vmatpush3.msra.mxu0 %v876_v49  ;;  %v945_v42 = vld [vmem:[#allocation2 + $0x1850] sm:$0xff]  ;;  %v959_v48 = vld [vmem:[#allocation2 + $0x18c0] sm:$0xff] }
 0x1c0   :  { %7093 = vmatpush3.msra.mxu1 %v908_v50  ;;  %7059 = vmatprep.subr.mxu0 %v891_v51  ;;  %v991_v49 = vld [vmem:[#allocation2 + $0x19c0] sm:$0xff] }
 0x1c1   :  { %7094 = vmatprep.subr.mxu1 %v923_v52  ;;  %7060 = vmatpush3.msra.mxu0 %v875_v56  ;;  %v943_v50 = vld [vmem:[#allocation2 + $0x1840] sm:$0xff]  ;;  %v958_v52 = vld [vmem:[#allocation2 + $0x18b8] sm:$0xff] }
 0x1c2   :  { %7095 = vmatpush3.msra.mxu1 %v907_v57  ;;  %7061 = vmatprep.subr.mxu0 %v890_v58  ;;  %v975_v51 = vld [vmem:[#allocation2 + $0x1940] sm:$0xff]  ;;  %v974_v56 = vld [vmem:[#allocation2 + $0x1938] sm:$0xff]  ;;  %v957_v57 = vld [vmem:[#allocation2 + $0x18b0] sm:$0xff] }
 0x1c3   :  { %7096 = vmatprep.subr.mxu1 %v922_v59  ;;  %7062 = vmatpush3.msra.mxu0 %v874_v62  ;;  %v989_v58 = vld [vmem:[#allocation2 + $0x19b0] sm:$0xff]  ;;  %v107_v62 = vld [vmem:[%s8551_s0 + $0x120] sm:$0xff] }
 0x1c4   :  { %7097 = vmatpush3.msra.mxu1 %v906_v63  ;;  %7063 = vmatprep.subr.mxu0 %v889_v0  ;;  %v941_v59 = vld [vmem:[#allocation2 + $0x1830] sm:$0xff]  ;;  %v131_v63 = vld [vmem:[%s8551_s0 + $0x1e0] sm:$0xff] }
 0x1c5   :  { %7098 = vmatprep.subr.mxu1 %v921_v1  ;;  %7064 = vmatpush3.msra.mxu0 %v873_v4  ;;  %v155_v0 = vld [vmem:[%s8551_s0 + $0x2a0] sm:$0xff]  ;;  %v956_v1 = vld [vmem:[#allocation2 + $0x18a8] sm:$0xff] }
 0x1c6   :  { %7099 = vmatpush3.msra.mxu1 %v905_v5  ;;  %7065 = vmatprep.subr.mxu0 %v888_v6  ;;  %v972_v4 = vld [vmem:[#allocation2 + $0x1928] sm:$0xff]  ;;  %v955_v5 = vld [vmem:[#allocation2 + $0x18a0] sm:$0xff]  ;;  %v2240_v8 = vcombine.low %v131_v63, %v155_v0 }
 0x1c7   :  { %7100 = vmatprep.subr.mxu1 %v920_v7  ;;  %7066 = vmatpush3.msra.mxu0 %v872_v10  ;;  %v987_v6 = vld [vmem:[#allocation2 + $0x19a0] sm:$0xff]  ;;  %v2238_v7 = vcombine.low %v83_v61, %v107_v62 }
 0x1c8   :  { %7101 = vmatpush3.msra.mxu1 %v904_v11  ;;  %7067 = vmatprep.subr.mxu0 %v887_v12  ;;  %v971_v10 = vld [vmem:[#allocation2 + $0x1920] sm:$0xff]  ;;  %v954_v11 = vld [vmem:[#allocation2 + $0x1898] sm:$0xff] }
 0x1c9   :  { %7102 = vmatprep.subr.mxu1 %v919_v13  ;;  %7068 = vmatpush3.msra.mxu0 %v871_v15  ;;  %v986_v12 = vld [vmem:[#allocation2 + $0x1998] sm:$0xff]  ;;  %v2239_v13 = vcombine.high %v83_v61, %v107_v62  ;;  %v1041_v61 = vld [vmem:[#allocation2 + $0x1b50] sm:$0xff]  ;;  %v1024_v62 = vld [vmem:[#allocation2 + $0x1ac8] sm:$0xff] }
 0x1ca   :  { %4370 = vmatprep.mubr.f32.mxu0 %v2235_v14  ;;  %7103 = vmatpush3.msra.mxu1 %v903_v17  ;;  %v2241_v14 = vcombine.high %v131_v63, %v155_v0  ;;  %v938_v15 = vld [vmem:[#allocation2 + $0x1818] sm:$0xff]  ;;  %v953_v17 = vld [vmem:[#allocation2 + $0x1890] sm:$0xff]  ;;  %v1056_v63 = vld [vmem:[#allocation2 + $0x1bc8] sm:$0xff] }
 0x1cb   :  { %4371 = vmatmul.mubr.f32.vlgmr.msra.gmra.mxu0 %v2234_v16  ;;  %4440 = vmatprep.mubr.f32.mxu1 %v2237_v18  ;;  %v970_v16 = vld [vmem:[#allocation2 + $0x1918] sm:$0xff]  ;;  %v985_v18 = vld [vmem:[#allocation2 + $0x1990] sm:$0xff]  ;;  %v1008_v0 = vld [vmem:[#allocation2 + $0x1a48] sm:$0xff] }
 0x1cc   :  { %7107 = vmatprep.subr.mxu0 %v966_v19  ;;  %7142 = vmatprep.subr.mxu1 %v998_v21  ;;  %v2248_v19 = vrot.slane %v2238_v7, %v8145_v53  ;;  %v937_v21 = vld [vmem:[#allocation2 + $0x1810] sm:$0xff]  ;;  %v1054_v7 = vld [vmem:[#allocation2 + $0x1bb8] sm:$0xff] }
 0x1cd   :  { %4441 = vmatmul.mubr.f32.vlgmr.msra.gmra.mxu1 %v2236_v20  ;;  %7108 = vmatpush3.msra.mxu0 %v950_v22  ;;  %v2262_v20 = vrot.slane %v2240_v8, %v8145_v53  ;;  %v969_v22 = vld [vmem:[#allocation2 + $0x1910] sm:$0xff]  ;;  %v1006_v8 = vld [vmem:[#allocation2 + $0x1a38] sm:$0xff] }
 0x1ce   :  { %7143 = vmatpush3.msra.mxu1 %v982_v23  ;;  %7109 = vmatprep.subr.mxu0 %v965_v24  ;;  %v952_v23 = vld [vmem:[#allocation2 + $0x1888] sm:$0xff] }
 0x1cf   :  { %7144 = vmatprep.subr.mxu1 %v997_v25  ;;  %7110 = vmatpush3.msra.mxu0 %v949_v26  ;;  %v984_v24 = vld [vmem:[#allocation2 + $0x1988] sm:$0xff]  ;;  %v2255_v25 = vrot.slane %v2239_v13, %v8145_v53  ;;  %v2269_v26 = vrot.slane %v2241_v14, %v8145_v53  ;;  %v1037_v13 = vld [vmem:[#allocation2 + $0x1b30] sm:$0xff] }
 0x1d0   :  { %7145 = vmatpush3.msra.mxu1 %v981_v27  ;;  %7111 = vmatprep.subr.mxu0 %v964_v28  ;;  %v936_v27 = vld [vmem:[#allocation2 + $0x1808] sm:$0xff] }
 0x1d1   :  { %7146 = vmatprep.subr.mxu1 %v996_v29  ;;  %7112 = vmatpush3.msra.mxu0 %v948_v30  ;;  %v968_v28 = vld [vmem:[#allocation2 + $0x1908] sm:$0xff]  ;;  %v951_v29 = vld [vmem:[#allocation2 + $0x1880] sm:$0xff] }
 0x1d2   :  { %7147 = vmatpush3.msra.mxu1 %v980_v31  ;;  %7113 = vmatprep.subr.mxu0 %v963_v32  ;;  %v983_v30 = vld [vmem:[#allocation2 + $0x1980] sm:$0xff]  ;;  %v2271_v31 = vcombine.high %v2248_v19, %v2262_v20  ;;  %v84_v14 = vld [vmem:[%s8551_s0 + $0x68] sm:$0xff] }
 0x1d3   :  { %7148 = vmatprep.subr.mxu1 %v995_v33  ;;  %7114 = vmatpush3.msra.mxu0 %v947_v34  ;;  %v935_v32 = vld [vmem:[#allocation2 + $0x1800] sm:$0xff]  ;;  %v2270_v33 = vcombine.low %v2248_v19, %v2262_v20  ;;  %v1052_v19 = vld [vmem:[#allocation2 + $0x1ba8] sm:$0xff] }
 0x1d4   :  { %7149 = vmatpush3.msra.mxu1 %v979_v35  ;;  %7115 = vmatprep.subr.mxu0 %v962_v36  ;;  %v967_v34 = vld [vmem:[#allocation2 + $0x1900] sm:$0xff]  ;;  %v2273_v35 = vcombine.high %v2255_v25, %v2269_v26  ;;  %v1030_v36 = vld [vmem:[#allocation2 + $0x1af8] sm:$0xff]  ;;  %v1004_v20 = vld [vmem:[#allocation2 + $0x1a28] sm:$0xff] }
 0x1d5   :  { %7150 = vmatprep.subr.mxu1 %v994_v37  ;;  %7116 = vmatpush3.msra.mxu0 %v946_v38  ;;  %v2272_v37 = vcombine.low %v2255_v25, %v2269_v26  ;;  %v1062_v38 = vld [vmem:[#allocation2 + $0x1bf8] sm:$0xff]  ;;  %v1003_v26 = vld [vmem:[#allocation2 + $0x1a20] sm:$0xff] }
 0x1d6   :  { %7151 = vmatpush3.msra.mxu1 %v978_v39  ;;  %7117 = vmatprep.subr.mxu0 %v961_v40  ;;  %v1014_v39 = vld [vmem:[#allocation2 + $0x1a78] sm:$0xff] }
 0x1d7   :  { %7152 = vmatprep.subr.mxu1 %v993_v41  ;;  %7118 = vmatpush3.msra.mxu0 %v945_v42  ;;  %v1046_v40 = vld [vmem:[#allocation2 + $0x1b78] sm:$0xff]  ;;  %v1029_v41 = vld [vmem:[#allocation2 + $0x1af0] sm:$0xff] }
 0x1d8   :  { %7153 = vmatpush3.msra.mxu1 %v977_v43  ;;  %7119 = vmatprep.subr.mxu0 %v960_v44  ;;  %v1061_v42 = vld [vmem:[#allocation2 + $0x1bf0] sm:$0xff] }
 0x1d9   :  { %7154 = vmatprep.subr.mxu1 %v992_v45  ;;  %7120 = vmatpush3.msra.mxu0 %v944_v46  ;;  %v1013_v43 = vld [vmem:[#allocation2 + $0x1a70] sm:$0xff]  ;;  %v1028_v45 = vld [vmem:[#allocation2 + $0x1ae8] sm:$0xff] }
 0x1da   :  { %7155 = vmatpush3.msra.mxu1 %v976_v47  ;;  %7121 = vmatprep.subr.mxu0 %v959_v48  ;;  %v1045_v44 = vld [vmem:[#allocation2 + $0x1b70] sm:$0xff]  ;;  %v1060_v46 = vld [vmem:[#allocation2 + $0x1be8] sm:$0xff] }
 0x1db   :  { %7156 = vmatprep.subr.mxu1 %v991_v49  ;;  %7122 = vmatpush3.msra.mxu0 %v943_v50  ;;  %v1012_v47 = vld [vmem:[#allocation2 + $0x1a68] sm:$0xff]  ;;  %v1027_v49 = vld [vmem:[#allocation2 + $0x1ae0] sm:$0xff] }
 0x1dc   :  { %7157 = vmatpush3.msra.mxu1 %v975_v51  ;;  %7123 = vmatprep.subr.mxu0 %v958_v52  ;;  %v1044_v48 = vld [vmem:[#allocation2 + $0x1b68] sm:$0xff]  ;;  %v1059_v50 = vld [vmem:[#allocation2 + $0x1be0] sm:$0xff] }
 0x1dd   :  { %7158 = vmatprep.subr.mxu1 %v990_v54  ;;  %7124 = vmatpush3.msra.mxu0 %v942_v55  ;;  %v1011_v51 = vld [vmem:[#allocation2 + $0x1a60] sm:$0xff]  ;;  %v1026_v54 = vld [vmem:[#allocation2 + $0x1ad8] sm:$0xff] }
 0x1de   :  { %7159 = vmatpush3.msra.mxu1 %v974_v56  ;;  %7125 = vmatprep.subr.mxu0 %v957_v57  ;;  %v1043_v52 = vld [vmem:[#allocation2 + $0x1b60] sm:$0xff]  ;;  %v1058_v55 = vld [vmem:[#allocation2 + $0x1bd8] sm:$0xff] }
 0x1df   :  { %7160 = vmatprep.subr.mxu1 %v989_v58  ;;  %7126 = vmatpush3.msra.mxu0 %v941_v59  ;;  %v1010_v56 = vld [vmem:[#allocation2 + $0x1a58] sm:$0xff]  ;;  %v1025_v58 = vld [vmem:[#allocation2 + $0x1ad0] sm:$0xff] }
 0x1e0   :  { %7161 = vmatpush3.msra.mxu1 %v973_v60  ;;  %7127 = vmatprep.subr.mxu0 %v956_v1  ;;  %v1042_v57 = vld [vmem:[#allocation2 + $0x1b58] sm:$0xff]  ;;  %v1057_v59 = vld [vmem:[#allocation2 + $0x1bd0] sm:$0xff]  ;;  %v1040_v1 = vld [vmem:[#allocation2 + $0x1b48] sm:$0xff] }
 0x1e1   :  { %7162 = vmatprep.subr.mxu1 %v988_v2  ;;  %7128 = vmatpush3.msra.mxu0 %v940_v3  ;;  %v1009_v60 = vld [vmem:[#allocation2 + $0x1a50] sm:$0xff]  ;;  %v1023_v2 = vld [vmem:[#allocation2 + $0x1ac0] sm:$0xff] }
 0x1e2   :  { %7163 = vmatpush3.msra.mxu1 %v972_v4  ;;  %7129 = vmatprep.subr.mxu0 %v955_v5  ;;  %v1055_v3 = vld [vmem:[#allocation2 + $0x1bc0] sm:$0xff] }
 0x1e3   :  { %7164 = vmatprep.subr.mxu1 %v987_v6  ;;  %7130 = vmatpush3.msra.mxu0 %v939_v9  ;;  %v1007_v4 = vld [vmem:[#allocation2 + $0x1a40] sm:$0xff]  ;;  %v1022_v6 = vld [vmem:[#allocation2 + $0x1ab8] sm:$0xff] }
 0x1e4   :  { %7165 = vmatpush3.msra.mxu1 %v971_v10  ;;  %7131 = vmatprep.subr.mxu0 %v954_v11  ;;  %v1039_v5 = vld [vmem:[#allocation2 + $0x1b40] sm:$0xff]  ;;  %v1038_v9 = vld [vmem:[#allocation2 + $0x1b38] sm:$0xff]  ;;  %v1021_v10 = vld [vmem:[#allocation2 + $0x1ab0] sm:$0xff] }
 0x1e5   :  { %7166 = vmatprep.subr.mxu1 %v986_v12  ;;  %7132 = vmatpush3.msra.mxu0 %v938_v15  ;;  %v1053_v11 = vld [vmem:[#allocation2 + $0x1bb0] sm:$0xff]  ;;  %v108_v15 = vld [vmem:[%s8551_s0 + $0x128] sm:$0xff] }
 0x1e6   :  { %7167 = vmatpush3.msra.mxu1 %v970_v16  ;;  %7133 = vmatprep.subr.mxu0 %v953_v17  ;;  %v1005_v12 = vld [vmem:[#allocation2 + $0x1a30] sm:$0xff]  ;;  %v132_v16 = vld [vmem:[%s8551_s0 + $0x1e8] sm:$0xff] }
 0x1e7   :  { %7168 = vmatprep.subr.mxu1 %v985_v18  ;;  %7134 = vmatpush3.msra.mxu0 %v937_v21  ;;  %v156_v17 = vld [vmem:[%s8551_s0 + $0x2a8] sm:$0xff] }
 0x1e8   :  { %7169 = vmatpush3.msra.mxu1 %v969_v22  ;;  %7135 = vmatprep.subr.mxu0 %v952_v23  ;;  %v1020_v18 = vld [vmem:[#allocation2 + $0x1aa8] sm:$0xff]  ;;  %v1019_v22 = vld [vmem:[#allocation2 + $0x1aa0] sm:$0xff]  ;;  %v2276_v25 = vcombine.low %v132_v16, %v156_v17 }
 0x1e9   :  { %7170 = vmatprep.subr.mxu1 %v984_v24  ;;  %7136 = vmatpush3.msra.mxu0 %v936_v27  ;;  %v1036_v21 = vld [vmem:[#allocation2 + $0x1b28] sm:$0xff]  ;;  %v1051_v23 = vld [vmem:[#allocation2 + $0x1ba0] sm:$0xff]  ;;  %v2274_v24 = vcombine.low %v84_v14, %v108_v15 }
 0x1ea   :  { %7171 = vmatpush3.msra.mxu1 %v968_v28  ;;  %7137 = vmatprep.subr.mxu0 %v951_v29  ;;  %v1035_v27 = vld [vmem:[#allocation2 + $0x1b20] sm:$0xff]  ;;  %v1018_v28 = vld [vmem:[#allocation2 + $0x1a98] sm:$0xff] }
 0x1eb   :  { %7172 = vmatprep.subr.mxu1 %v983_v30  ;;  %7138 = vmatpush3.msra.mxu0 %v935_v32  ;;  %v1050_v29 = vld [vmem:[#allocation2 + $0x1b98] sm:$0xff]  ;;  %v2275_v30 = vcombine.high %v84_v14, %v108_v15  ;;  %v1105_v14 = vld [vmem:[#allocation2 + $0x1d50] sm:$0xff]  ;;  %v1088_v15 = vld [vmem:[#allocation2 + $0x1cc8] sm:$0xff] }
 0x1ec   :  { %4510 = vmatprep.mubr.f32.mxu0 %v2271_v31  ;;  %7173 = vmatpush3.msra.mxu1 %v967_v34  ;;  %v2277_v31 = vcombine.high %v132_v16, %v156_v17  ;;  %v1002_v32 = vld [vmem:[#allocation2 + $0x1a18] sm:$0xff]  ;;  %v1017_v34 = vld [vmem:[#allocation2 + $0x1a90] sm:$0xff]  ;;  %v1120_v16 = vld [vmem:[#allocation2 + $0x1dc8] sm:$0xff] }
 0x1ed   :  { %4511 = vmatmul.mubr.f32.vlgmr.msra.gmra.mxu0 %v2270_v33  ;;  %4580 = vmatprep.mubr.f32.mxu1 %v2273_v35  ;;  %v1034_v33 = vld [vmem:[#allocation2 + $0x1b18] sm:$0xff]  ;;  %v1049_v35 = vld [vmem:[#allocation2 + $0x1b90] sm:$0xff]  ;;  %v1072_v17 = vld [vmem:[#allocation2 + $0x1c48] sm:$0xff] }
 0x1ee   :  { %7177 = vmatprep.subr.mxu0 %v1030_v36  ;;  %7212 = vmatprep.subr.mxu1 %v1062_v38  ;;  %v2284_v36 = vrot.slane %v2274_v24, %v8145_v53  ;;  %v1001_v38 = vld [vmem:[#allocation2 + $0x1a10] sm:$0xff]  ;;  %v1118_v24 = vld [vmem:[#allocation2 + $0x1db8] sm:$0xff] }
 0x1ef   :  { %4581 = vmatmul.mubr.f32.vlgmr.msra.gmra.mxu1 %v2272_v37  ;;  %7178 = vmatpush3.msra.mxu0 %v1014_v39  ;;  %v2298_v37 = vrot.slane %v2276_v25, %v8145_v53  ;;  %v1033_v39 = vld [vmem:[#allocation2 + $0x1b10] sm:$0xff]  ;;  %v1070_v25 = vld [vmem:[#allocation2 + $0x1c38] sm:$0xff] }
 0x1f0   :  { %7213 = vmatpush3.msra.mxu1 %v1046_v40  ;;  %7179 = vmatprep.subr.mxu0 %v1029_v41  ;;  %v1016_v40 = vld [vmem:[#allocation2 + $0x1a88] sm:$0xff] }
 0x1f1   :  { %7214 = vmatprep.subr.mxu1 %v1061_v42  ;;  %7180 = vmatpush3.msra.mxu0 %v1013_v43  ;;  %v1048_v41 = vld [vmem:[#allocation2 + $0x1b88] sm:$0xff]  ;;  %v2291_v42 = vrot.slane %v2275_v30, %v8145_v53  ;;  %v2305_v43 = vrot.slane %v2277_v31, %v8145_v53  ;;  %v1101_v30 = vld [vmem:[#allocation2 + $0x1d30] sm:$0xff] }
 0x1f2   :  { %7215 = vmatpush3.msra.mxu1 %v1045_v44  ;;  %7181 = vmatprep.subr.mxu0 %v1028_v45  ;;  %v1000_v44 = vld [vmem:[#allocation2 + $0x1a08] sm:$0xff]  ;;  %v85_v31 = vld [vmem:[%s8551_s0 + $0x70] sm:$0xff] }
 0x1f3   :  { %7216 = vmatprep.subr.mxu1 %v1060_v46  ;;  %7182 = vmatpush3.msra.mxu0 %v1012_v47  ;;  %v1032_v45 = vld [vmem:[#allocation2 + $0x1b08] sm:$0xff]  ;;  %v1015_v46 = vld [vmem:[#allocation2 + $0x1a80] sm:$0xff] }
 0x1f4   :  { %7217 = vmatpush3.msra.mxu1 %v1044_v48  ;;  %7183 = vmatprep.subr.mxu0 %v1027_v49  ;;  %v1047_v47 = vld [vmem:[#allocation2 + $0x1b80] sm:$0xff]  ;;  %v2307_v48 = vcombine.high %v2284_v36, %v2298_v37 }
 0x1f5   :  { %7218 = vmatprep.subr.mxu1 %v1059_v50  ;;  %7184 = vmatpush3.msra.mxu0 %v1011_v51  ;;  %v999_v49 = vld [vmem:[#allocation2 + $0x1a00] sm:$0xff]  ;;  %v2306_v50 = vcombine.low %v2284_v36, %v2298_v37  ;;  %v1116_v36 = vld [vmem:[#allocation2 + $0x1da8] sm:$0xff] }
 0x1f6   :  { %7219 = vmatpush3.msra.mxu1 %v1043_v52  ;;  %7185 = vmatprep.subr.mxu0 %v1026_v54  ;;  %v1031_v51 = vld [vmem:[#allocation2 + $0x1b00] sm:$0xff]  ;;  %v2309_v52 = vcombine.high %v2291_v42, %v2305_v43  ;;  %v1094_v54 = vld [vmem:[#allocation2 + $0x1cf8] sm:$0xff]  ;;  %v1068_v37 = vld [vmem:[#allocation2 + $0x1c28] sm:$0xff] }
 0x1f7   :  { %7220 = vmatprep.subr.mxu1 %v1058_v55  ;;  %7186 = vmatpush3.msra.mxu0 %v1010_v56  ;;  %v2308_v55 = vcombine.low %v2291_v42, %v2305_v43  ;;  %v1126_v56 = vld [vmem:[#allocation2 + $0x1df8] sm:$0xff]  ;;  %v1067_v43 = vld [vmem:[#allocation2 + $0x1c20] sm:$0xff] }
 0x1f8   :  { %7221 = vmatpush3.msra.mxu1 %v1042_v57  ;;  %7187 = vmatprep.subr.mxu0 %v1025_v58  ;;  %v1078_v57 = vld [vmem:[#allocation2 + $0x1c78] sm:$0xff] }
 0x1f9   :  { %7222 = vmatprep.subr.mxu1 %v1057_v59  ;;  %7188 = vmatpush3.msra.mxu0 %v1009_v60  ;;  %v1110_v58 = vld [vmem:[#allocation2 + $0x1d78] sm:$0xff]  ;;  %v1093_v59 = vld [vmem:[#allocation2 + $0x1cf0] sm:$0xff] }
 0x1fa   :  { %7223 = vmatpush3.msra.mxu1 %v1041_v61  ;;  %7189 = vmatprep.subr.mxu0 %v1024_v62  ;;  %v1125_v60 = vld [vmem:[#allocation2 + $0x1df0] sm:$0xff] }
 0x1fb   :  { %7224 = vmatprep.subr.mxu1 %v1056_v63  ;;  %7190 = vmatpush3.msra.mxu0 %v1008_v0  ;;  %v1077_v61 = vld [vmem:[#allocation2 + $0x1c70] sm:$0xff]  ;;  %v1092_v63 = vld [vmem:[#allocation2 + $0x1ce8] sm:$0xff] }
 0x1fc   :  { %7225 = vmatpush3.msra.mxu1 %v1040_v1  ;;  %7191 = vmatprep.subr.mxu0 %v1023_v2  ;;  %v1109_v62 = vld [vmem:[#allocation2 + $0x1d70] sm:$0xff]  ;;  %v1124_v0 = vld [vmem:[#allocation2 + $0x1de8] sm:$0xff] }
 0x1fd   :  { %7226 = vmatprep.subr.mxu1 %v1055_v3  ;;  %7192 = vmatpush3.msra.mxu0 %v1007_v4  ;;  %v1076_v1 = vld [vmem:[#allocation2 + $0x1c68] sm:$0xff]  ;;  %v1091_v3 = vld [vmem:[#allocation2 + $0x1ce0] sm:$0xff] }
 0x1fe   :  { %7227 = vmatpush3.msra.mxu1 %v1039_v5  ;;  %7193 = vmatprep.subr.mxu0 %v1022_v6  ;;  %v1108_v2 = vld [vmem:[#allocation2 + $0x1d68] sm:$0xff]  ;;  %v1123_v4 = vld [vmem:[#allocation2 + $0x1de0] sm:$0xff] }
 0x1ff   :  { %7228 = vmatprep.subr.mxu1 %v1054_v7  ;;  %7194 = vmatpush3.msra.mxu0 %v1006_v8  ;;  %v1075_v5 = vld [vmem:[#allocation2 + $0x1c60] sm:$0xff]  ;;  %v1090_v7 = vld [vmem:[#allocation2 + $0x1cd8] sm:$0xff] }
 0x200   :  { %7229 = vmatpush3.msra.mxu1 %v1038_v9  ;;  %7195 = vmatprep.subr.mxu0 %v1021_v10  ;;  %v1107_v6 = vld [vmem:[#allocation2 + $0x1d60] sm:$0xff]  ;;  %v1122_v8 = vld [vmem:[#allocation2 + $0x1dd8] sm:$0xff] }
 0x201   :  { %7230 = vmatprep.subr.mxu1 %v1053_v11  ;;  %7196 = vmatpush3.msra.mxu0 %v1005_v12  ;;  %v1074_v9 = vld [vmem:[#allocation2 + $0x1c58] sm:$0xff]  ;;  %v1089_v11 = vld [vmem:[#allocation2 + $0x1cd0] sm:$0xff] }
 0x202   :  { %7231 = vmatpush3.msra.mxu1 %v1037_v13  ;;  %7197 = vmatprep.subr.mxu0 %v1020_v18  ;;  %v1106_v10 = vld [vmem:[#allocation2 + $0x1d58] sm:$0xff]  ;;  %v1121_v12 = vld [vmem:[#allocation2 + $0x1dd0] sm:$0xff]  ;;  %v1104_v18 = vld [vmem:[#allocation2 + $0x1d48] sm:$0xff] }
 0x203   :  { %7232 = vmatprep.subr.mxu1 %v1052_v19  ;;  %7198 = vmatpush3.msra.mxu0 %v1004_v20  ;;  %v1073_v13 = vld [vmem:[#allocation2 + $0x1c50] sm:$0xff]  ;;  %v1087_v19 = vld [vmem:[#allocation2 + $0x1cc0] sm:$0xff] }
 0x204   :  { %7233 = vmatpush3.msra.mxu1 %v1036_v21  ;;  %7199 = vmatprep.subr.mxu0 %v1019_v22  ;;  %v1119_v20 = vld [vmem:[#allocation2 + $0x1dc0] sm:$0xff] }
 0x205   :  { %7234 = vmatprep.subr.mxu1 %v1051_v23  ;;  %7200 = vmatpush3.msra.mxu0 %v1003_v26  ;;  %v1071_v21 = vld [vmem:[#allocation2 + $0x1c40] sm:$0xff]  ;;  %v1086_v23 = vld [vmem:[#allocation2 + $0x1cb8] sm:$0xff] }
 0x206   :  { %7235 = vmatpush3.msra.mxu1 %v1035_v27  ;;  %7201 = vmatprep.subr.mxu0 %v1018_v28  ;;  %v1103_v22 = vld [vmem:[#allocation2 + $0x1d40] sm:$0xff]  ;;  %v1102_v26 = vld [vmem:[#allocation2 + $0x1d38] sm:$0xff]  ;;  %v1085_v27 = vld [vmem:[#allocation2 + $0x1cb0] sm:$0xff] }
 0x207   :  { %7236 = vmatprep.subr.mxu1 %v1050_v29  ;;  %7202 = vmatpush3.msra.mxu0 %v1002_v32  ;;  %v1117_v28 = vld [vmem:[#allocation2 + $0x1db0] sm:$0xff] }
 0x208   :  { %7237 = vmatpush3.msra.mxu1 %v1034_v33  ;;  %7203 = vmatprep.subr.mxu0 %v1017_v34  ;;  %v1069_v29 = vld [vmem:[#allocation2 + $0x1c30] sm:$0xff] }
 0x209   :  { %7238 = vmatprep.subr.mxu1 %v1049_v35  ;;  %7204 = vmatpush3.msra.mxu0 %v1001_v38  ;;  %v109_v32 = vld [vmem:[%s8551_s0 + $0x130] sm:$0xff]  ;;  %v1084_v35 = vld [vmem:[#allocation2 + $0x1ca8] sm:$0xff] }
 0x20a   :  { %7239 = vmatpush3.msra.mxu1 %v1033_v39  ;;  %7205 = vmatprep.subr.mxu0 %v1016_v40  ;;  %v133_v33 = vld [vmem:[%s8551_s0 + $0x1f0] sm:$0xff]  ;;  %v1100_v38 = vld [vmem:[#allocation2 + $0x1d28] sm:$0xff]  ;;  %v1083_v39 = vld [vmem:[#allocation2 + $0x1ca0] sm:$0xff] }
 0x20b   :  { %7240 = vmatprep.subr.mxu1 %v1048_v41  ;;  %7206 = vmatpush3.msra.mxu0 %v1000_v44  ;;  %v157_v34 = vld [vmem:[%s8551_s0 + $0x2b0] sm:$0xff]  ;;  %v1115_v40 = vld [vmem:[#allocation2 + $0x1da0] sm:$0xff]  ;;  %v2310_v41 = vcombine.low %v85_v31, %v109_v32 }
 0x20c   :  { %7241 = vmatpush3.msra.mxu1 %v1032_v45  ;;  %7207 = vmatprep.subr.mxu0 %v1015_v46  ;;  %v2312_v42 = vcombine.low %v133_v33, %v157_v34  ;;  %v1099_v44 = vld [vmem:[#allocation2 + $0x1d20] sm:$0xff]  ;;  %v1082_v45 = vld [vmem:[#allocation2 + $0x1c98] sm:$0xff] }
 0x20d   :  { %7242 = vmatprep.subr.mxu1 %v1047_v47  ;;  %7208 = vmatpush3.msra.mxu0 %v999_v49  ;;  %v1114_v46 = vld [vmem:[#allocation2 + $0x1d98] sm:$0xff]  ;;  %v2311_v47 = vcombine.high %v85_v31, %v109_v32  ;;  %v1169_v31 = vld [vmem:[#allocation2 + $0x1f50] sm:$0xff]  ;;  %v1152_v32 = vld [vmem:[#allocation2 + $0x1ec8] sm:$0xff] }
 0x20e   :  { %4650 = vmatprep.mubr.f32.mxu0 %v2307_v48  ;;  %7243 = vmatpush3.msra.mxu1 %v1031_v51  ;;  %v2313_v48 = vcombine.high %v133_v33, %v157_v34  ;;  %v1066_v49 = vld [vmem:[#allocation2 + $0x1c18] sm:$0xff]  ;;  %v1081_v51 = vld [vmem:[#allocation2 + $0x1c90] sm:$0xff]  ;;  %v1184_v33 = vld [vmem:[#allocation2 + $0x1fc8] sm:$0xff] }
 0x20f   :  { %4651 = vmatmul.mubr.f32.vlgmr.msra.gmra.mxu0 %v2306_v50  ;;  %4720 = vmatprep.mubr.f32.mxu1 %v2309_v52  ;;  %v1098_v50 = vld [vmem:[#allocation2 + $0x1d18] sm:$0xff]  ;;  %v1113_v52 = vld [vmem:[#allocation2 + $0x1d90] sm:$0xff]  ;;  %v1136_v34 = vld [vmem:[#allocation2 + $0x1e48] sm:$0xff] }
 0x210   :  { %7247 = vmatprep.subr.mxu0 %v1094_v54  ;;  %7282 = vmatprep.subr.mxu1 %v1126_v56  ;;  %v2320_v54 = vrot.slane %v2310_v41, %v8145_v53  ;;  %v1065_v56 = vld [vmem:[#allocation2 + $0x1c10] sm:$0xff]  ;;  %v1182_v41 = vld [vmem:[#allocation2 + $0x1fb8] sm:$0xff] }
 0x211   :  { %4721 = vmatmul.mubr.f32.vlgmr.msra.gmra.mxu1 %v2308_v55  ;;  %7248 = vmatpush3.msra.mxu0 %v1078_v57  ;;  %v2334_v55 = vrot.slane %v2312_v42, %v8145_v53  ;;  %v1097_v57 = vld [vmem:[#allocation2 + $0x1d10] sm:$0xff]  ;;  %v1134_v42 = vld [vmem:[#allocation2 + $0x1e38] sm:$0xff] }
 0x212   :  { %7283 = vmatpush3.msra.mxu1 %v1110_v58  ;;  %7249 = vmatprep.subr.mxu0 %v1093_v59  ;;  %v1080_v58 = vld [vmem:[#allocation2 + $0x1c88] sm:$0xff] }
 0x213   :  { %7284 = vmatprep.subr.mxu1 %v1125_v60  ;;  %7250 = vmatpush3.msra.mxu0 %v1077_v61  ;;  %v1112_v59 = vld [vmem:[#allocation2 + $0x1d88] sm:$0xff]  ;;  %v2327_v60 = vrot.slane %v2311_v47, %v8145_v53  ;;  %v2341_v61 = vrot.slane %v2313_v48, %v8145_v53  ;;  %v1165_v47 = vld [vmem:[#allocation2 + $0x1f30] sm:$0xff]  ;;  %v86_v48 = vld [vmem:[%s8551_s0 + $0x78] sm:$0xff] }
 0x214   :  { %7285 = vmatpush3.msra.mxu1 %v1109_v62  ;;  %7251 = vmatprep.subr.mxu0 %v1092_v63  ;;  %v1064_v62 = vld [vmem:[#allocation2 + $0x1c08] sm:$0xff] }
 0x215   :  { %7286 = vmatprep.subr.mxu1 %v1124_v0  ;;  %7252 = vmatpush3.msra.mxu0 %v1076_v1  ;;  %v1096_v63 = vld [vmem:[#allocation2 + $0x1d08] sm:$0xff]  ;;  %v1079_v0 = vld [vmem:[#allocation2 + $0x1c80] sm:$0xff] }
 0x216   :  { %7287 = vmatpush3.msra.mxu1 %v1108_v2  ;;  %7253 = vmatprep.subr.mxu0 %v1091_v3  ;;  %v1111_v1 = vld [vmem:[#allocation2 + $0x1d80] sm:$0xff]  ;;  %v2343_v2 = vcombine.high %v2320_v54, %v2334_v55 }
 0x217   :  { %7288 = vmatprep.subr.mxu1 %v1123_v4  ;;  %7254 = vmatpush3.msra.mxu0 %v1075_v5  ;;  %v1063_v3 = vld [vmem:[#allocation2 + $0x1c00] sm:$0xff]  ;;  %v2342_v4 = vcombine.low %v2320_v54, %v2334_v55  ;;  %v1180_v54 = vld [vmem:[#allocation2 + $0x1fa8] sm:$0xff] }
 0x218   :  { %7289 = vmatpush3.msra.mxu1 %v1107_v6  ;;  %7255 = vmatprep.subr.mxu0 %v1090_v7  ;;  %v1095_v5 = vld [vmem:[#allocation2 + $0x1d00] sm:$0xff]  ;;  %v2345_v6 = vcombine.high %v2327_v60, %v2341_v61  ;;  %v1158_v7 = vld [vmem:[#allocation2 + $0x1ef8] sm:$0xff]  ;;  %v1132_v55 = vld [vmem:[#allocation2 + $0x1e28] sm:$0xff] }
 0x219   :  { %7290 = vmatprep.subr.mxu1 %v1122_v8  ;;  %7256 = vmatpush3.msra.mxu0 %v1074_v9  ;;  %v2344_v8 = vcombine.low %v2327_v60, %v2341_v61  ;;  %v1190_v9 = vld [vmem:[#allocation2 + $0x1ff8] sm:$0xff]  ;;  %v1131_v61 = vld [vmem:[#allocation2 + $0x1e20] sm:$0xff] }
 0x21a   :  { %7291 = vmatpush3.msra.mxu1 %v1106_v10  ;;  %7257 = vmatprep.subr.mxu0 %v1089_v11  ;;  %v1142_v10 = vld [vmem:[#allocation2 + $0x1e78] sm:$0xff] }
 0x21b   :  { %7292 = vmatprep.subr.mxu1 %v1121_v12  ;;  %7258 = vmatpush3.msra.mxu0 %v1073_v13  ;;  %v1174_v11 = vld [vmem:[#allocation2 + $0x1f78] sm:$0xff]  ;;  %v1157_v12 = vld [vmem:[#allocation2 + $0x1ef0] sm:$0xff] }
 0x21c   :  { %7293 = vmatpush3.msra.mxu1 %v1105_v14  ;;  %7259 = vmatprep.subr.mxu0 %v1088_v15  ;;  %v1189_v13 = vld [vmem:[#allocation2 + $0x1ff0] sm:$0xff] }
 0x21d   :  { %7294 = vmatprep.subr.mxu1 %v1120_v16  ;;  %7260 = vmatpush3.msra.mxu0 %v1072_v17  ;;  %v1141_v14 = vld [vmem:[#allocation2 + $0x1e70] sm:$0xff]  ;;  %v1156_v16 = vld [vmem:[#allocation2 + $0x1ee8] sm:$0xff] }
 0x21e   :  { %7295 = vmatpush3.msra.mxu1 %v1104_v18  ;;  %7261 = vmatprep.subr.mxu0 %v1087_v19  ;;  %v1173_v15 = vld [vmem:[#allocation2 + $0x1f70] sm:$0xff]  ;;  %v1188_v17 = vld [vmem:[#allocation2 + $0x1fe8] sm:$0xff] }
 0x21f   :  { %7296 = vmatprep.subr.mxu1 %v1119_v20  ;;  %7262 = vmatpush3.msra.mxu0 %v1071_v21  ;;  %v1140_v18 = vld [vmem:[#allocation2 + $0x1e68] sm:$0xff]  ;;  %v1155_v20 = vld [vmem:[#allocation2 + $0x1ee0] sm:$0xff] }
 0x220   :  { %7297 = vmatpush3.msra.mxu1 %v1103_v22  ;;  %7263 = vmatprep.subr.mxu0 %v1086_v23  ;;  %v1172_v19 = vld [vmem:[#allocation2 + $0x1f68] sm:$0xff]  ;;  %v1187_v21 = vld [vmem:[#allocation2 + $0x1fe0] sm:$0xff] }
 0x221   :  { %7298 = vmatprep.subr.mxu1 %v1118_v24  ;;  %7264 = vmatpush3.msra.mxu0 %v1070_v25  ;;  %v1139_v22 = vld [vmem:[#allocation2 + $0x1e60] sm:$0xff]  ;;  %v1154_v24 = vld [vmem:[#allocation2 + $0x1ed8] sm:$0xff] }
 0x222   :  { %7299 = vmatpush3.msra.mxu1 %v1102_v26  ;;  %7265 = vmatprep.subr.mxu0 %v1085_v27  ;;  %v1171_v23 = vld [vmem:[#allocation2 + $0x1f60] sm:$0xff]  ;;  %v1186_v25 = vld [vmem:[#allocation2 + $0x1fd8] sm:$0xff] }
 0x223   :  { %7300 = vmatprep.subr.mxu1 %v1117_v28  ;;  %7266 = vmatpush3.msra.mxu0 %v1069_v29  ;;  %v1138_v26 = vld [vmem:[#allocation2 + $0x1e58] sm:$0xff]  ;;  %v1153_v28 = vld [vmem:[#allocation2 + $0x1ed0] sm:$0xff] }
 0x224   :  { %7301 = vmatpush3.msra.mxu1 %v1101_v30  ;;  %7267 = vmatprep.subr.mxu0 %v1084_v35  ;;  %v1170_v27 = vld [vmem:[#allocation2 + $0x1f58] sm:$0xff]  ;;  %v1185_v29 = vld [vmem:[#allocation2 + $0x1fd0] sm:$0xff]  ;;  %v1168_v35 = vld [vmem:[#allocation2 + $0x1f48] sm:$0xff] }
 0x225   :  { %7302 = vmatprep.subr.mxu1 %v1116_v36  ;;  %7268 = vmatpush3.msra.mxu0 %v1068_v37  ;;  %v1137_v30 = vld [vmem:[#allocation2 + $0x1e50] sm:$0xff]  ;;  %v1151_v36 = vld [vmem:[#allocation2 + $0x1ec0] sm:$0xff] }
 0x226   :  { %7303 = vmatpush3.msra.mxu1 %v1100_v38  ;;  %7269 = vmatprep.subr.mxu0 %v1083_v39  ;;  %v1183_v37 = vld [vmem:[#allocation2 + $0x1fc0] sm:$0xff] }
 0x227   :  { %7304 = vmatprep.subr.mxu1 %v1115_v40  ;;  %7270 = vmatpush3.msra.mxu0 %v1067_v43  ;;  %v1135_v38 = vld [vmem:[#allocation2 + $0x1e40] sm:$0xff]  ;;  %v1150_v40 = vld [vmem:[#allocation2 + $0x1eb8] sm:$0xff] }
 0x228   :  { %7305 = vmatpush3.msra.mxu1 %v1099_v44  ;;  %7271 = vmatprep.subr.mxu0 %v1082_v45  ;;  %v1167_v39 = vld [vmem:[#allocation2 + $0x1f40] sm:$0xff]  ;;  %v1166_v43 = vld [vmem:[#allocation2 + $0x1f38] sm:$0xff]  ;;  %v1149_v44 = vld [vmem:[#allocation2 + $0x1eb0] sm:$0xff] }
 0x229   :  { %7306 = vmatprep.subr.mxu1 %v1114_v46  ;;  %7272 = vmatpush3.msra.mxu0 %v1066_v49  ;;  %v1181_v45 = vld [vmem:[#allocation2 + $0x1fb0] sm:$0xff]  ;;  %v110_v49 = vld [vmem:[%s8551_s0 + $0x138] sm:$0xff] }
 0x22a   :  { %7307 = vmatpush3.msra.mxu1 %v1098_v50  ;;  %7273 = vmatprep.subr.mxu0 %v1081_v51  ;;  %v1133_v46 = vld [vmem:[#allocation2 + $0x1e30] sm:$0xff]  ;;  %v134_v50 = vld [vmem:[%s8551_s0 + $0x1f8] sm:$0xff] }
 0x22b   :  { %7308 = vmatprep.subr.mxu1 %v1113_v52  ;;  %7274 = vmatpush3.msra.mxu0 %v1065_v56  ;;  %v158_v51 = vld [vmem:[%s8551_s0 + $0x2b8] sm:$0xff]  ;;  %v1148_v52 = vld [vmem:[#allocation2 + $0x1ea8] sm:$0xff] }
 0x22c   :  { %7309 = vmatpush3.msra.mxu1 %v1097_v57  ;;  %7275 = vmatprep.subr.mxu0 %v1080_v58  ;;  %v1164_v56 = vld [vmem:[#allocation2 + $0x1f28] sm:$0xff]  ;;  %v1147_v57 = vld [vmem:[#allocation2 + $0x1ea0] sm:$0xff]  ;;  %v2348_v60 = vcombine.low %v134_v50, %v158_v51 }
 0x22d   :  { %7310 = vmatprep.subr.mxu1 %v1112_v59  ;;  %7276 = vmatpush3.msra.mxu0 %v1064_v62  ;;  %v1179_v58 = vld [vmem:[#allocation2 + $0x1fa0] sm:$0xff]  ;;  %v2346_v59 = vcombine.low %v86_v48, %v110_v49 }
 0x22e   :  { %7311 = vmatpush3.msra.mxu1 %v1096_v63  ;;  %7277 = vmatprep.subr.mxu0 %v1079_v0  ;;  %v1163_v62 = vld [vmem:[#allocation2 + $0x1f20] sm:$0xff]  ;;  %v1146_v63 = vld [vmem:[#allocation2 + $0x1e98] sm:$0xff] }
 0x22f   :  { %7312 = vmatprep.subr.mxu1 %v1111_v1  ;;  %7278 = vmatpush3.msra.mxu0 %v1063_v3  ;;  %v1178_v0 = vld [vmem:[#allocation2 + $0x1f98] sm:$0xff]  ;;  %v2347_v1 = vcombine.high %v86_v48, %v110_v49  ;;  %v1233_v48 = vld [vmem:[#allocation2 + $0x2150] sm:$0xff]  ;;  %v1216_v49 = vld [vmem:[#allocation2 + $0x20c8] sm:$0xff] }
 0x230   :  { %4790 = vmatprep.mubr.f32.mxu0 %v2343_v2  ;;  %7313 = vmatpush3.msra.mxu1 %v1095_v5  ;;  %v2349_v2 = vcombine.high %v134_v50, %v158_v51  ;;  %v1130_v3 = vld [vmem:[#allocation2 + $0x1e18] sm:$0xff]  ;;  %v1145_v5 = vld [vmem:[#allocation2 + $0x1e90] sm:$0xff]  ;;  %v1248_v50 = vld [vmem:[#allocation2 + $0x21c8] sm:$0xff] }
 0x231   :  { %4791 = vmatmul.mubr.f32.vlgmr.msra.gmra.mxu0 %v2342_v4  ;;  %4860 = vmatprep.mubr.f32.mxu1 %v2345_v6  ;;  %v1162_v4 = vld [vmem:[#allocation2 + $0x1f18] sm:$0xff]  ;;  %v1177_v6 = vld [vmem:[#allocation2 + $0x1f90] sm:$0xff]  ;;  %v1200_v51 = vld [vmem:[#allocation2 + $0x2048] sm:$0xff] }
 0x232   :  { %7317 = vmatprep.subr.mxu0 %v1158_v7  ;;  %7352 = vmatprep.subr.mxu1 %v1190_v9  ;;  %v2356_v7 = vrot.slane %v2346_v59, %v8145_v53  ;;  %v1129_v9 = vld [vmem:[#allocation2 + $0x1e10] sm:$0xff]  ;;  %v1246_v59 = vld [vmem:[#allocation2 + $0x21b8] sm:$0xff] }
 0x233   :  { %4861 = vmatmul.mubr.f32.vlgmr.msra.gmra.mxu1 %v2344_v8  ;;  %7318 = vmatpush3.msra.mxu0 %v1142_v10  ;;  %v2370_v8 = vrot.slane %v2348_v60, %v8145_v53  ;;  %v1161_v10 = vld [vmem:[#allocation2 + $0x1f10] sm:$0xff]  ;;  %v1198_v60 = vld [vmem:[#allocation2 + $0x2038] sm:$0xff] }
 0x234   :  { %7353 = vmatpush3.msra.mxu1 %v1174_v11  ;;  %7319 = vmatprep.subr.mxu0 %v1157_v12  ;;  %v1144_v11 = vld [vmem:[#allocation2 + $0x1e88] sm:$0xff] }
 0x235   :  { %7354 = vmatprep.subr.mxu1 %v1189_v13  ;;  %7320 = vmatpush3.msra.mxu0 %v1141_v14  ;;  %v1176_v12 = vld [vmem:[#allocation2 + $0x1f88] sm:$0xff]  ;;  %v2363_v13 = vrot.slane %v2347_v1, %v8145_v53  ;;  %v2377_v14 = vrot.slane %v2349_v2, %v8145_v53  ;;  %v1229_v1 = vld [vmem:[#allocation2 + $0x2130] sm:$0xff]  ;;  %v87_v2 = vld [vmem:[%s8551_s0 + $0x80] sm:$0xff] }
 0x236   :  { %7355 = vmatpush3.msra.mxu1 %v1173_v15  ;;  %7321 = vmatprep.subr.mxu0 %v1156_v16  ;;  %v1128_v15 = vld [vmem:[#allocation2 + $0x1e08] sm:$0xff] }
 0x237   :  { %7356 = vmatprep.subr.mxu1 %v1188_v17  ;;  %7322 = vmatpush3.msra.mxu0 %v1140_v18  ;;  %v1160_v16 = vld [vmem:[#allocation2 + $0x1f08] sm:$0xff]  ;;  %v1143_v17 = vld [vmem:[#allocation2 + $0x1e80] sm:$0xff] }
 0x238   :  { %7357 = vmatpush3.msra.mxu1 %v1172_v19  ;;  %7323 = vmatprep.subr.mxu0 %v1155_v20  ;;  %v1175_v18 = vld [vmem:[#allocation2 + $0x1f80] sm:$0xff]  ;;  %v2379_v19 = vcombine.high %v2356_v7, %v2370_v8 }
 0x239   :  { %7358 = vmatprep.subr.mxu1 %v1187_v21  ;;  %7324 = vmatpush3.msra.mxu0 %v1139_v22  ;;  %v1127_v20 = vld [vmem:[#allocation2 + $0x1e00] sm:$0xff]  ;;  %v2378_v21 = vcombine.low %v2356_v7, %v2370_v8  ;;  %v1244_v7 = vld [vmem:[#allocation2 + $0x21a8] sm:$0xff] }
 0x23a   :  { %7359 = vmatpush3.msra.mxu1 %v1171_v23  ;;  %7325 = vmatprep.subr.mxu0 %v1154_v24  ;;  %v1159_v22 = vld [vmem:[#allocation2 + $0x1f00] sm:$0xff]  ;;  %v2381_v23 = vcombine.high %v2363_v13, %v2377_v14  ;;  %v1222_v24 = vld [vmem:[#allocation2 + $0x20f8] sm:$0xff]  ;;  %v1196_v8 = vld [vmem:[#allocation2 + $0x2028] sm:$0xff] }
 0x23b   :  { %7360 = vmatprep.subr.mxu1 %v1186_v25  ;;  %7326 = vmatpush3.msra.mxu0 %v1138_v26  ;;  %v2380_v25 = vcombine.low %v2363_v13, %v2377_v14  ;;  %v1254_v26 = vld [vmem:[#allocation2 + $0x21f8] sm:$0xff]  ;;  %v1195_v14 = vld [vmem:[#allocation2 + $0x2020] sm:$0xff] }
 0x23c   :  { %7361 = vmatpush3.msra.mxu1 %v1170_v27  ;;  %7327 = vmatprep.subr.mxu0 %v1153_v28  ;;  %v1206_v27 = vld [vmem:[#allocation2 + $0x2078] sm:$0xff] }
 0x23d   :  { %7362 = vmatprep.subr.mxu1 %v1185_v29  ;;  %7328 = vmatpush3.msra.mxu0 %v1137_v30  ;;  %v1238_v28 = vld [vmem:[#allocation2 + $0x2178] sm:$0xff]  ;;  %v1221_v29 = vld [vmem:[#allocation2 + $0x20f0] sm:$0xff] }
 0x23e   :  { %7363 = vmatpush3.msra.mxu1 %v1169_v31  ;;  %7329 = vmatprep.subr.mxu0 %v1152_v32  ;;  %v1253_v30 = vld [vmem:[#allocation2 + $0x21f0] sm:$0xff] }
 0x23f   :  { %7364 = vmatprep.subr.mxu1 %v1184_v33  ;;  %7330 = vmatpush3.msra.mxu0 %v1136_v34  ;;  %v1205_v31 = vld [vmem:[#allocation2 + $0x2070] sm:$0xff]  ;;  %v1220_v33 = vld [vmem:[#allocation2 + $0x20e8] sm:$0xff] }
 0x240   :  { %7365 = vmatpush3.msra.mxu1 %v1168_v35  ;;  %7331 = vmatprep.subr.mxu0 %v1151_v36  ;;  %v1237_v32 = vld [vmem:[#allocation2 + $0x2170] sm:$0xff]  ;;  %v1252_v34 = vld [vmem:[#allocation2 + $0x21e8] sm:$0xff] }
 0x241   :  { %7366 = vmatprep.subr.mxu1 %v1183_v37  ;;  %7332 = vmatpush3.msra.mxu0 %v1135_v38  ;;  %v1204_v35 = vld [vmem:[#allocation2 + $0x2068] sm:$0xff]  ;;  %v1219_v37 = vld [vmem:[#allocation2 + $0x20e0] sm:$0xff] }
 0x242   :  { %7367 = vmatpush3.msra.mxu1 %v1167_v39  ;;  %7333 = vmatprep.subr.mxu0 %v1150_v40  ;;  %v1236_v36 = vld [vmem:[#allocation2 + $0x2168] sm:$0xff]  ;;  %v1251_v38 = vld [vmem:[#allocation2 + $0x21e0] sm:$0xff] }
 0x243   :  { %7368 = vmatprep.subr.mxu1 %v1182_v41  ;;  %7334 = vmatpush3.msra.mxu0 %v1134_v42  ;;  %v1203_v39 = vld [vmem:[#allocation2 + $0x2060] sm:$0xff]  ;;  %v1218_v41 = vld [vmem:[#allocation2 + $0x20d8] sm:$0xff] }
 0x244   :  { %7369 = vmatpush3.msra.mxu1 %v1166_v43  ;;  %7335 = vmatprep.subr.mxu0 %v1149_v44  ;;  %v1235_v40 = vld [vmem:[#allocation2 + $0x2160] sm:$0xff]  ;;  %v1250_v42 = vld [vmem:[#allocation2 + $0x21d8] sm:$0xff] }
 0x245   :  { %7370 = vmatprep.subr.mxu1 %v1181_v45  ;;  %7336 = vmatpush3.msra.mxu0 %v1133_v46  ;;  %v1202_v43 = vld [vmem:[#allocation2 + $0x2058] sm:$0xff]  ;;  %v1217_v45 = vld [vmem:[#allocation2 + $0x20d0] sm:$0xff] }
 0x246   :  { %7371 = vmatpush3.msra.mxu1 %v1165_v47  ;;  %7337 = vmatprep.subr.mxu0 %v1148_v52  ;;  %v1234_v44 = vld [vmem:[#allocation2 + $0x2158] sm:$0xff]  ;;  %v1249_v46 = vld [vmem:[#allocation2 + $0x21d0] sm:$0xff]  ;;  %v1232_v52 = vld [vmem:[#allocation2 + $0x2148] sm:$0xff] }
 0x247   :  { %7372 = vmatprep.subr.mxu1 %v1180_v54  ;;  %7338 = vmatpush3.msra.mxu0 %v1132_v55  ;;  %v1201_v47 = vld [vmem:[#allocation2 + $0x2050] sm:$0xff]  ;;  %v1215_v54 = vld [vmem:[#allocation2 + $0x20c0] sm:$0xff] }
 0x248   :  { %7373 = vmatpush3.msra.mxu1 %v1164_v56  ;;  %7339 = vmatprep.subr.mxu0 %v1147_v57  ;;  %v1247_v55 = vld [vmem:[#allocation2 + $0x21c0] sm:$0xff] }
 0x249   :  { %7374 = vmatprep.subr.mxu1 %v1179_v58  ;;  %7340 = vmatpush3.msra.mxu0 %v1131_v61  ;;  %v1199_v56 = vld [vmem:[#allocation2 + $0x2040] sm:$0xff]  ;;  %v1214_v58 = vld [vmem:[#allocation2 + $0x20b8] sm:$0xff] }
 0x24a   :  { %7375 = vmatpush3.msra.mxu1 %v1163_v62  ;;  %7341 = vmatprep.subr.mxu0 %v1146_v63  ;;  %v1231_v57 = vld [vmem:[#allocation2 + $0x2140] sm:$0xff]  ;;  %v1230_v61 = vld [vmem:[#allocation2 + $0x2138] sm:$0xff]  ;;  %v1213_v62 = vld [vmem:[#allocation2 + $0x20b0] sm:$0xff] }
 0x24b   :  { %7376 = vmatprep.subr.mxu1 %v1178_v0  ;;  %7342 = vmatpush3.msra.mxu0 %v1130_v3  ;;  %v1245_v63 = vld [vmem:[#allocation2 + $0x21b0] sm:$0xff]  ;;  %v111_v3 = vld [vmem:[%s8551_s0 + $0x140] sm:$0xff] }
 0x24c   :  { %7377 = vmatpush3.msra.mxu1 %v1162_v4  ;;  %7343 = vmatprep.subr.mxu0 %v1145_v5  ;;  %v1197_v0 = vld [vmem:[#allocation2 + $0x2030] sm:$0xff]  ;;  %v135_v4 = vld [vmem:[%s8551_s0 + $0x200] sm:$0xff] }
 0x24d   :  { %7378 = vmatprep.subr.mxu1 %v1177_v6  ;;  %7344 = vmatpush3.msra.mxu0 %v1129_v9  ;;  %v159_v5 = vld [vmem:[%s8551_s0 + $0x2c0] sm:$0xff]  ;;  %v1212_v6 = vld [vmem:[#allocation2 + $0x20a8] sm:$0xff] }
 0x24e   :  { %7379 = vmatpush3.msra.mxu1 %v1161_v10  ;;  %7345 = vmatprep.subr.mxu0 %v1144_v11  ;;  %v1228_v9 = vld [vmem:[#allocation2 + $0x2128] sm:$0xff]  ;;  %v1211_v10 = vld [vmem:[#allocation2 + $0x20a0] sm:$0xff]  ;;  %v2384_v13 = vcombine.low %v135_v4, %v159_v5 }
 0x24f   :  { %7380 = vmatprep.subr.mxu1 %v1176_v12  ;;  %7346 = vmatpush3.msra.mxu0 %v1128_v15  ;;  %v1243_v11 = vld [vmem:[#allocation2 + $0x21a0] sm:$0xff]  ;;  %v2382_v12 = vcombine.low %v87_v2, %v111_v3 }
 0x250   :  { %7381 = vmatpush3.msra.mxu1 %v1160_v16  ;;  %7347 = vmatprep.subr.mxu0 %v1143_v17  ;;  %v1227_v15 = vld [vmem:[#allocation2 + $0x2120] sm:$0xff]  ;;  %v1210_v16 = vld [vmem:[#allocation2 + $0x2098] sm:$0xff] }
 0x251   :  { %7382 = vmatprep.subr.mxu1 %v1175_v18  ;;  %7348 = vmatpush3.msra.mxu0 %v1127_v20  ;;  %v1242_v17 = vld [vmem:[#allocation2 + $0x2198] sm:$0xff]  ;;  %v2383_v18 = vcombine.high %v87_v2, %v111_v3  ;;  %v1297_v2 = vld [vmem:[#allocation2 + $0x2350] sm:$0xff]  ;;  %v1280_v3 = vld [vmem:[#allocation2 + $0x22c8] sm:$0xff] }
 0x252   :  { %4930 = vmatprep.mubr.f32.mxu0 %v2379_v19  ;;  %7383 = vmatpush3.msra.mxu1 %v1159_v22  ;;  %v2385_v19 = vcombine.high %v135_v4, %v159_v5  ;;  %v1194_v20 = vld [vmem:[#allocation2 + $0x2018] sm:$0xff]  ;;  %v1209_v22 = vld [vmem:[#allocation2 + $0x2090] sm:$0xff]  ;;  %v1312_v4 = vld [vmem:[#allocation2 + $0x23c8] sm:$0xff] }
 0x253   :  { %4931 = vmatmul.mubr.f32.vlgmr.msra.gmra.mxu0 %v2378_v21  ;;  %5000 = vmatprep.mubr.f32.mxu1 %v2381_v23  ;;  %v1226_v21 = vld [vmem:[#allocation2 + $0x2118] sm:$0xff]  ;;  %v1241_v23 = vld [vmem:[#allocation2 + $0x2190] sm:$0xff]  ;;  %v1264_v5 = vld [vmem:[#allocation2 + $0x2248] sm:$0xff] }
 0x254   :  { %7387 = vmatprep.subr.mxu0 %v1222_v24  ;;  %7422 = vmatprep.subr.mxu1 %v1254_v26  ;;  %v2392_v24 = vrot.slane %v2382_v12, %v8145_v53  ;;  %v1193_v26 = vld [vmem:[#allocation2 + $0x2010] sm:$0xff]  ;;  %v1310_v12 = vld [vmem:[#allocation2 + $0x23b8] sm:$0xff] }
 0x255   :  { %5001 = vmatmul.mubr.f32.vlgmr.msra.gmra.mxu1 %v2380_v25  ;;  %7388 = vmatpush3.msra.mxu0 %v1206_v27  ;;  %v2406_v25 = vrot.slane %v2384_v13, %v8145_v53  ;;  %v1225_v27 = vld [vmem:[#allocation2 + $0x2110] sm:$0xff]  ;;  %v1262_v13 = vld [vmem:[#allocation2 + $0x2238] sm:$0xff] }
 0x256   :  { %7423 = vmatpush3.msra.mxu1 %v1238_v28  ;;  %7389 = vmatprep.subr.mxu0 %v1221_v29  ;;  %v1208_v28 = vld [vmem:[#allocation2 + $0x2088] sm:$0xff] }
 0x257   :  { %7424 = vmatprep.subr.mxu1 %v1253_v30  ;;  %7390 = vmatpush3.msra.mxu0 %v1205_v31  ;;  %v1240_v29 = vld [vmem:[#allocation2 + $0x2188] sm:$0xff]  ;;  %v2399_v30 = vrot.slane %v2383_v18, %v8145_v53  ;;  %v2413_v31 = vrot.slane %v2385_v19, %v8145_v53  ;;  %v1293_v18 = vld [vmem:[#allocation2 + $0x2330] sm:$0xff] }
 0x258   :  { %7425 = vmatpush3.msra.mxu1 %v1237_v32  ;;  %7391 = vmatprep.subr.mxu0 %v1220_v33  ;;  %v1192_v32 = vld [vmem:[#allocation2 + $0x2008] sm:$0xff] }
 0x259   :  { %7426 = vmatprep.subr.mxu1 %v1252_v34  ;;  %7392 = vmatpush3.msra.mxu0 %v1204_v35  ;;  %v1224_v33 = vld [vmem:[#allocation2 + $0x2108] sm:$0xff]  ;;  %v1207_v34 = vld [vmem:[#allocation2 + $0x2080] sm:$0xff] }
 0x25a   :  { %7427 = vmatpush3.msra.mxu1 %v1236_v36  ;;  %7393 = vmatprep.subr.mxu0 %v1219_v37  ;;  %v1239_v35 = vld [vmem:[#allocation2 + $0x2180] sm:$0xff]  ;;  %v2415_v36 = vcombine.high %v2392_v24, %v2406_v25  ;;  %v88_v19 = vld [vmem:[%s8551_s0 + $0x88] sm:$0xff] }
 0x25b   :  { %7428 = vmatprep.subr.mxu1 %v1251_v38  ;;  %7394 = vmatpush3.msra.mxu0 %v1203_v39  ;;  %v1191_v37 = vld [vmem:[#allocation2 + $0x2000] sm:$0xff]  ;;  %v2414_v38 = vcombine.low %v2392_v24, %v2406_v25  ;;  %v1308_v24 = vld [vmem:[#allocation2 + $0x23a8] sm:$0xff] }
 0x25c   :  { %7429 = vmatpush3.msra.mxu1 %v1235_v40  ;;  %7395 = vmatprep.subr.mxu0 %v1218_v41  ;;  %v1223_v39 = vld [vmem:[#allocation2 + $0x2100] sm:$0xff]  ;;  %v2417_v40 = vcombine.high %v2399_v30, %v2413_v31  ;;  %v1286_v41 = vld [vmem:[#allocation2 + $0x22f8] sm:$0xff]  ;;  %v1260_v25 = vld [vmem:[#allocation2 + $0x2228] sm:$0xff] }
 0x25d   :  { %7430 = vmatprep.subr.mxu1 %v1250_v42  ;;  %7396 = vmatpush3.msra.mxu0 %v1202_v43  ;;  %v2416_v42 = vcombine.low %v2399_v30, %v2413_v31  ;;  %v1318_v43 = vld [vmem:[#allocation2 + $0x23f8] sm:$0xff]  ;;  %v1259_v31 = vld [vmem:[#allocation2 + $0x2220] sm:$0xff] }
 0x25e   :  { %7431 = vmatpush3.msra.mxu1 %v1234_v44  ;;  %7397 = vmatprep.subr.mxu0 %v1217_v45  ;;  %v1270_v44 = vld [vmem:[#allocation2 + $0x2278] sm:$0xff] }
 0x25f   :  { %7432 = vmatprep.subr.mxu1 %v1249_v46  ;;  %7398 = vmatpush3.msra.mxu0 %v1201_v47  ;;  %v1302_v45 = vld [vmem:[#allocation2 + $0x2378] sm:$0xff]  ;;  %v1285_v46 = vld [vmem:[#allocation2 + $0x22f0] sm:$0xff] }
 0x260   :  { %7433 = vmatpush3.msra.mxu1 %v1233_v48  ;;  %7399 = vmatprep.subr.mxu0 %v1216_v49  ;;  %v1317_v47 = vld [vmem:[#allocation2 + $0x23f0] sm:$0xff] }
 0x261   :  { %7434 = vmatprep.subr.mxu1 %v1248_v50  ;;  %7400 = vmatpush3.msra.mxu0 %v1200_v51  ;;  %v1269_v48 = vld [vmem:[#allocation2 + $0x2270] sm:$0xff]  ;;  %v1284_v50 = vld [vmem:[#allocation2 + $0x22e8] sm:$0xff] }
 0x262   :  { %7435 = vmatpush3.msra.mxu1 %v1232_v52  ;;  %7401 = vmatprep.subr.mxu0 %v1215_v54  ;;  %v1301_v49 = vld [vmem:[#allocation2 + $0x2370] sm:$0xff]  ;;  %v1316_v51 = vld [vmem:[#allocation2 + $0x23e8] sm:$0xff] }
 0x263   :  { %7436 = vmatprep.subr.mxu1 %v1247_v55  ;;  %7402 = vmatpush3.msra.mxu0 %v1199_v56  ;;  %v1268_v52 = vld [vmem:[#allocation2 + $0x2268] sm:$0xff]  ;;  %v1283_v55 = vld [vmem:[#allocation2 + $0x22e0] sm:$0xff] }
 0x264   :  { %7437 = vmatpush3.msra.mxu1 %v1231_v57  ;;  %7403 = vmatprep.subr.mxu0 %v1214_v58  ;;  %v1300_v54 = vld [vmem:[#allocation2 + $0x2368] sm:$0xff]  ;;  %v1315_v56 = vld [vmem:[#allocation2 + $0x23e0] sm:$0xff] }
 0x265   :  { %7438 = vmatprep.subr.mxu1 %v1246_v59  ;;  %7404 = vmatpush3.msra.mxu0 %v1198_v60  ;;  %v1267_v57 = vld [vmem:[#allocation2 + $0x2260] sm:$0xff]  ;;  %v1282_v59 = vld [vmem:[#allocation2 + $0x22d8] sm:$0xff] }
 0x266   :  { %7439 = vmatpush3.msra.mxu1 %v1230_v61  ;;  %7405 = vmatprep.subr.mxu0 %v1213_v62  ;;  %v1299_v58 = vld [vmem:[#allocation2 + $0x2360] sm:$0xff]  ;;  %v1314_v60 = vld [vmem:[#allocation2 + $0x23d8] sm:$0xff] }
 0x267   :  { %7440 = vmatprep.subr.mxu1 %v1245_v63  ;;  %7406 = vmatpush3.msra.mxu0 %v1197_v0  ;;  %v1266_v61 = vld [vmem:[#allocation2 + $0x2258] sm:$0xff]  ;;  %v1281_v63 = vld [vmem:[#allocation2 + $0x22d0] sm:$0xff] }
 0x268   :  { %7441 = vmatpush3.msra.mxu1 %v1229_v1  ;;  %7407 = vmatprep.subr.mxu0 %v1212_v6  ;;  %v1298_v62 = vld [vmem:[#allocation2 + $0x2358] sm:$0xff]  ;;  %v1313_v0 = vld [vmem:[#allocation2 + $0x23d0] sm:$0xff]  ;;  %v1296_v6 = vld [vmem:[#allocation2 + $0x2348] sm:$0xff] }
 0x269   :  { %7442 = vmatprep.subr.mxu1 %v1244_v7  ;;  %7408 = vmatpush3.msra.mxu0 %v1196_v8  ;;  %v1265_v1 = vld [vmem:[#allocation2 + $0x2250] sm:$0xff]  ;;  %v1279_v7 = vld [vmem:[#allocation2 + $0x22c0] sm:$0xff] }
 0x26a   :  { %7443 = vmatpush3.msra.mxu1 %v1228_v9  ;;  %7409 = vmatprep.subr.mxu0 %v1211_v10  ;;  %v1311_v8 = vld [vmem:[#allocation2 + $0x23c0] sm:$0xff] }
 0x26b   :  { %7444 = vmatprep.subr.mxu1 %v1243_v11  ;;  %7410 = vmatpush3.msra.mxu0 %v1195_v14  ;;  %v1263_v9 = vld [vmem:[#allocation2 + $0x2240] sm:$0xff]  ;;  %v1278_v11 = vld [vmem:[#allocation2 + $0x22b8] sm:$0xff] }
 0x26c   :  { %7445 = vmatpush3.msra.mxu1 %v1227_v15  ;;  %7411 = vmatprep.subr.mxu0 %v1210_v16  ;;  %v1295_v10 = vld [vmem:[#allocation2 + $0x2340] sm:$0xff]  ;;  %v1294_v14 = vld [vmem:[#allocation2 + $0x2338] sm:$0xff]  ;;  %v1277_v15 = vld [vmem:[#allocation2 + $0x22b0] sm:$0xff] }
 0x26d   :  { %7446 = vmatprep.subr.mxu1 %v1242_v17  ;;  %7412 = vmatpush3.msra.mxu0 %v1194_v20  ;;  %v1309_v16 = vld [vmem:[#allocation2 + $0x23b0] sm:$0xff]  ;;  %v112_v20 = vld [vmem:[%s8551_s0 + $0x148] sm:$0xff] }
 0x26e   :  { %7447 = vmatpush3.msra.mxu1 %v1226_v21  ;;  %7413 = vmatprep.subr.mxu0 %v1209_v22  ;;  %v1261_v17 = vld [vmem:[#allocation2 + $0x2230] sm:$0xff]  ;;  %v136_v21 = vld [vmem:[%s8551_s0 + $0x208] sm:$0xff] }
 0x26f   :  { %7448 = vmatprep.subr.mxu1 %v1241_v23  ;;  %7414 = vmatpush3.msra.mxu0 %v1193_v26  ;;  %v160_v22 = vld [vmem:[%s8551_s0 + $0x2c8] sm:$0xff] }
 0x270   :  { %7449 = vmatpush3.msra.mxu1 %v1225_v27  ;;  %7415 = vmatprep.subr.mxu0 %v1208_v28  ;;  %v1276_v23 = vld [vmem:[#allocation2 + $0x22a8] sm:$0xff]  ;;  %v1275_v27 = vld [vmem:[#allocation2 + $0x22a0] sm:$0xff]  ;;  %v2420_v30 = vcombine.low %v136_v21, %v160_v22 }
 0x271   :  { %7450 = vmatprep.subr.mxu1 %v1240_v29  ;;  %7416 = vmatpush3.msra.mxu0 %v1192_v32  ;;  %v1292_v26 = vld [vmem:[#allocation2 + $0x2328] sm:$0xff]  ;;  %v1307_v28 = vld [vmem:[#allocation2 + $0x23a0] sm:$0xff]  ;;  %v2418_v29 = vcombine.low %v88_v19, %v112_v20 }
 0x272   :  { %7451 = vmatpush3.msra.mxu1 %v1224_v33  ;;  %7417 = vmatprep.subr.mxu0 %v1207_v34  ;;  %v1291_v32 = vld [vmem:[#allocation2 + $0x2320] sm:$0xff]  ;;  %v1274_v33 = vld [vmem:[#allocation2 + $0x2298] sm:$0xff] }
 0x273   :  { %7452 = vmatprep.subr.mxu1 %v1239_v35  ;;  %7418 = vmatpush3.msra.mxu0 %v1191_v37  ;;  %v1306_v34 = vld [vmem:[#allocation2 + $0x2398] sm:$0xff]  ;;  %v2419_v35 = vcombine.high %v88_v19, %v112_v20  ;;  %v1361_v19 = vld [vmem:[#allocation2 + $0x2550] sm:$0xff]  ;;  %v1344_v20 = vld [vmem:[#allocation2 + $0x24c8] sm:$0xff] }
 0x274   :  { %5070 = vmatprep.mubr.f32.mxu0 %v2415_v36  ;;  %7453 = vmatpush3.msra.mxu1 %v1223_v39  ;;  %v2421_v36 = vcombine.high %v136_v21, %v160_v22  ;;  %v1258_v37 = vld [vmem:[#allocation2 + $0x2218] sm:$0xff]  ;;  %v1273_v39 = vld [vmem:[#allocation2 + $0x2290] sm:$0xff]  ;;  %v1376_v21 = vld [vmem:[#allocation2 + $0x25c8] sm:$0xff] }
 0x275   :  { %5071 = vmatmul.mubr.f32.vlgmr.msra.gmra.mxu0 %v2414_v38  ;;  %5140 = vmatprep.mubr.f32.mxu1 %v2417_v40  ;;  %v1290_v38 = vld [vmem:[#allocation2 + $0x2318] sm:$0xff]  ;;  %v1305_v40 = vld [vmem:[#allocation2 + $0x2390] sm:$0xff]  ;;  %v1328_v22 = vld [vmem:[#allocation2 + $0x2448] sm:$0xff] }
 0x276   :  { %7457 = vmatprep.subr.mxu0 %v1286_v41  ;;  %7492 = vmatprep.subr.mxu1 %v1318_v43  ;;  %v2428_v41 = vrot.slane %v2418_v29, %v8145_v53  ;;  %v1257_v43 = vld [vmem:[#allocation2 + $0x2210] sm:$0xff]  ;;  %v1374_v29 = vld [vmem:[#allocation2 + $0x25b8] sm:$0xff] }
 0x277   :  { %5141 = vmatmul.mubr.f32.vlgmr.msra.gmra.mxu1 %v2416_v42  ;;  %7458 = vmatpush3.msra.mxu0 %v1270_v44  ;;  %v2442_v42 = vrot.slane %v2420_v30, %v8145_v53  ;;  %v1289_v44 = vld [vmem:[#allocation2 + $0x2310] sm:$0xff]  ;;  %v1326_v30 = vld [vmem:[#allocation2 + $0x2438] sm:$0xff] }
 0x278   :  { %7493 = vmatpush3.msra.mxu1 %v1302_v45  ;;  %7459 = vmatprep.subr.mxu0 %v1285_v46  ;;  %v1272_v45 = vld [vmem:[#allocation2 + $0x2288] sm:$0xff] }
 0x279   :  { %7494 = vmatprep.subr.mxu1 %v1317_v47  ;;  %7460 = vmatpush3.msra.mxu0 %v1269_v48  ;;  %v1304_v46 = vld [vmem:[#allocation2 + $0x2388] sm:$0xff]  ;;  %v2435_v47 = vrot.slane %v2419_v35, %v8145_v53  ;;  %v2449_v48 = vrot.slane %v2421_v36, %v8145_v53  ;;  %v1357_v35 = vld [vmem:[#allocation2 + $0x2530] sm:$0xff] }
 0x27a   :  { %7495 = vmatpush3.msra.mxu1 %v1301_v49  ;;  %7461 = vmatprep.subr.mxu0 %v1284_v50  ;;  %v1256_v49 = vld [vmem:[#allocation2 + $0x2208] sm:$0xff]  ;;  %v89_v36 = vld [vmem:[%s8551_s0 + $0x90] sm:$0xff] }
 0x27b   :  { %7496 = vmatprep.subr.mxu1 %v1316_v51  ;;  %7462 = vmatpush3.msra.mxu0 %v1268_v52  ;;  %v1288_v50 = vld [vmem:[#allocation2 + $0x2308] sm:$0xff]  ;;  %v1271_v51 = vld [vmem:[#allocation2 + $0x2280] sm:$0xff] }
 0x27c   :  { %7497 = vmatpush3.msra.mxu1 %v1300_v54  ;;  %7463 = vmatprep.subr.mxu0 %v1283_v55  ;;  %v1303_v52 = vld [vmem:[#allocation2 + $0x2380] sm:$0xff]  ;;  %v2451_v54 = vcombine.high %v2428_v41, %v2442_v42 }
 0x27d   :  { %7498 = vmatprep.subr.mxu1 %v1315_v56  ;;  %7464 = vmatpush3.msra.mxu0 %v1267_v57  ;;  %v1255_v55 = vld [vmem:[#allocation2 + $0x2200] sm:$0xff]  ;;  %v2450_v56 = vcombine.low %v2428_v41, %v2442_v42  ;;  %v1372_v41 = vld [vmem:[#allocation2 + $0x25a8] sm:$0xff] }
 0x27e   :  { %7499 = vmatpush3.msra.mxu1 %v1299_v58  ;;  %7465 = vmatprep.subr.mxu0 %v1282_v59  ;;  %v1287_v57 = vld [vmem:[#allocation2 + $0x2300] sm:$0xff]  ;;  %v2453_v58 = vcombine.high %v2435_v47, %v2449_v48  ;;  %v1350_v59 = vld [vmem:[#allocation2 + $0x24f8] sm:$0xff]  ;;  %v1324_v42 = vld [vmem:[#allocation2 + $0x2428] sm:$0xff] }
 0x27f   :  { %7500 = vmatprep.subr.mxu1 %v1314_v60  ;;  %7466 = vmatpush3.msra.mxu0 %v1266_v61  ;;  %v2452_v60 = vcombine.low %v2435_v47, %v2449_v48  ;;  %v1382_v61 = vld [vmem:[#allocation2 + $0x25f8] sm:$0xff]  ;;  %v1323_v48 = vld [vmem:[#allocation2 + $0x2420] sm:$0xff] }
 0x280   :  { %7501 = vmatpush3.msra.mxu1 %v1298_v62  ;;  %7467 = vmatprep.subr.mxu0 %v1281_v63  ;;  %v1334_v62 = vld [vmem:[#allocation2 + $0x2478] sm:$0xff] }
 0x281   :  { %7502 = vmatprep.subr.mxu1 %v1313_v0  ;;  %7468 = vmatpush3.msra.mxu0 %v1265_v1  ;;  %v1366_v63 = vld [vmem:[#allocation2 + $0x2578] sm:$0xff]  ;;  %v1349_v0 = vld [vmem:[#allocation2 + $0x24f0] sm:$0xff] }
 0x282   :  { %7503 = vmatpush3.msra.mxu1 %v1297_v2  ;;  %7469 = vmatprep.subr.mxu0 %v1280_v3  ;;  %v1381_v1 = vld [vmem:[#allocation2 + $0x25f0] sm:$0xff] }
 0x283   :  { %7504 = vmatprep.subr.mxu1 %v1312_v4  ;;  %7470 = vmatpush3.msra.mxu0 %v1264_v5  ;;  %v1333_v2 = vld [vmem:[#allocation2 + $0x2470] sm:$0xff]  ;;  %v1348_v4 = vld [vmem:[#allocation2 + $0x24e8] sm:$0xff] }
 0x284   :  { %7505 = vmatpush3.msra.mxu1 %v1296_v6  ;;  %7471 = vmatprep.subr.mxu0 %v1279_v7  ;;  %v1365_v3 = vld [vmem:[#allocation2 + $0x2570] sm:$0xff]  ;;  %v1380_v5 = vld [vmem:[#allocation2 + $0x25e8] sm:$0xff] }
 0x285   :  { %7506 = vmatprep.subr.mxu1 %v1311_v8  ;;  %7472 = vmatpush3.msra.mxu0 %v1263_v9  ;;  %v1332_v6 = vld [vmem:[#allocation2 + $0x2468] sm:$0xff]  ;;  %v1347_v8 = vld [vmem:[#allocation2 + $0x24e0] sm:$0xff] }
 0x286   :  { %7507 = vmatpush3.msra.mxu1 %v1295_v10  ;;  %7473 = vmatprep.subr.mxu0 %v1278_v11  ;;  %v1364_v7 = vld [vmem:[#allocation2 + $0x2568] sm:$0xff]  ;;  %v1379_v9 = vld [vmem:[#allocation2 + $0x25e0] sm:$0xff] }
 0x287   :  { %7508 = vmatprep.subr.mxu1 %v1310_v12  ;;  %7474 = vmatpush3.msra.mxu0 %v1262_v13  ;;  %v1331_v10 = vld [vmem:[#allocation2 + $0x2460] sm:$0xff]  ;;  %v1346_v12 = vld [vmem:[#allocation2 + $0x24d8] sm:$0xff] }
 0x288   :  { %7509 = vmatpush3.msra.mxu1 %v1294_v14  ;;  %7475 = vmatprep.subr.mxu0 %v1277_v15  ;;  %v1363_v11 = vld [vmem:[#allocation2 + $0x2560] sm:$0xff]  ;;  %v1378_v13 = vld [vmem:[#allocation2 + $0x25d8] sm:$0xff] }
 0x289   :  { %7510 = vmatprep.subr.mxu1 %v1309_v16  ;;  %7476 = vmatpush3.msra.mxu0 %v1261_v17  ;;  %v1330_v14 = vld [vmem:[#allocation2 + $0x2458] sm:$0xff]  ;;  %v1345_v16 = vld [vmem:[#allocation2 + $0x24d0] sm:$0xff] }
 0x28a   :  { %7511 = vmatpush3.msra.mxu1 %v1293_v18  ;;  %7477 = vmatprep.subr.mxu0 %v1276_v23  ;;  %v1362_v15 = vld [vmem:[#allocation2 + $0x2558] sm:$0xff]  ;;  %v1377_v17 = vld [vmem:[#allocation2 + $0x25d0] sm:$0xff]  ;;  %v1360_v23 = vld [vmem:[#allocation2 + $0x2548] sm:$0xff] }
 0x28b   :  { %7512 = vmatprep.subr.mxu1 %v1308_v24  ;;  %7478 = vmatpush3.msra.mxu0 %v1260_v25  ;;  %v1329_v18 = vld [vmem:[#allocation2 + $0x2450] sm:$0xff]  ;;  %v1343_v24 = vld [vmem:[#allocation2 + $0x24c0] sm:$0xff] }
 0x28c   :  { %7513 = vmatpush3.msra.mxu1 %v1292_v26  ;;  %7479 = vmatprep.subr.mxu0 %v1275_v27  ;;  %v1375_v25 = vld [vmem:[#allocation2 + $0x25c0] sm:$0xff] }
 0x28d   :  { %7514 = vmatprep.subr.mxu1 %v1307_v28  ;;  %7480 = vmatpush3.msra.mxu0 %v1259_v31  ;;  %v1327_v26 = vld [vmem:[#allocation2 + $0x2440] sm:$0xff]  ;;  %v1342_v28 = vld [vmem:[#allocation2 + $0x24b8] sm:$0xff] }
 0x28e   :  { %7515 = vmatpush3.msra.mxu1 %v1291_v32  ;;  %7481 = vmatprep.subr.mxu0 %v1274_v33  ;;  %v1359_v27 = vld [vmem:[#allocation2 + $0x2540] sm:$0xff]  ;;  %v1358_v31 = vld [vmem:[#allocation2 + $0x2538] sm:$0xff]  ;;  %v1341_v32 = vld [vmem:[#allocation2 + $0x24b0] sm:$0xff] }
 0x28f   :  { %7516 = vmatprep.subr.mxu1 %v1306_v34  ;;  %7482 = vmatpush3.msra.mxu0 %v1258_v37  ;;  %v1373_v33 = vld [vmem:[#allocation2 + $0x25b0] sm:$0xff] }
 0x290   :  { %7517 = vmatpush3.msra.mxu1 %v1290_v38  ;;  %7483 = vmatprep.subr.mxu0 %v1273_v39  ;;  %v1325_v34 = vld [vmem:[#allocation2 + $0x2430] sm:$0xff] }
 0x291   :  { %7518 = vmatprep.subr.mxu1 %v1305_v40  ;;  %7484 = vmatpush3.msra.mxu0 %v1257_v43  ;;  %v113_v37 = vld [vmem:[%s8551_s0 + $0x150] sm:$0xff]  ;;  %v1340_v40 = vld [vmem:[#allocation2 + $0x24a8] sm:$0xff] }
 0x292   :  { %7519 = vmatpush3.msra.mxu1 %v1289_v44  ;;  %7485 = vmatprep.subr.mxu0 %v1272_v45  ;;  %v137_v38 = vld [vmem:[%s8551_s0 + $0x210] sm:$0xff]  ;;  %v1356_v43 = vld [vmem:[#allocation2 + $0x2528] sm:$0xff]  ;;  %v1339_v44 = vld [vmem:[#allocation2 + $0x24a0] sm:$0xff] }
 0x293   :  { %7520 = vmatprep.subr.mxu1 %v1304_v46  ;;  %7486 = vmatpush3.msra.mxu0 %v1256_v49  ;;  %v161_v39 = vld [vmem:[%s8551_s0 + $0x2d0] sm:$0xff]  ;;  %v1371_v45 = vld [vmem:[#allocation2 + $0x25a0] sm:$0xff]  ;;  %v2454_v46 = vcombine.low %v89_v36, %v113_v37 }
 0x294   :  { %7521 = vmatpush3.msra.mxu1 %v1288_v50  ;;  %7487 = vmatprep.subr.mxu0 %v1271_v51  ;;  %v2456_v47 = vcombine.low %v137_v38, %v161_v39  ;;  %v1355_v49 = vld [vmem:[#allocation2 + $0x2520] sm:$0xff]  ;;  %v1338_v50 = vld [vmem:[#allocation2 + $0x2498] sm:$0xff] }
 0x295   :  { %7522 = vmatprep.subr.mxu1 %v1303_v52  ;;  %7488 = vmatpush3.msra.mxu0 %v1255_v55  ;;  %v1370_v51 = vld [vmem:[#allocation2 + $0x2598] sm:$0xff]  ;;  %v2455_v52 = vcombine.high %v89_v36, %v113_v37  ;;  %v1425_v36 = vld [vmem:[#allocation2 + $0x2750] sm:$0xff]  ;;  %v1408_v37 = vld [vmem:[#allocation2 + $0x26c8] sm:$0xff] }
 0x296   :  { %5210 = vmatprep.mubr.f32.mxu0 %v2451_v54  ;;  %7523 = vmatpush3.msra.mxu1 %v1287_v57  ;;  %v2457_v54 = vcombine.high %v137_v38, %v161_v39  ;;  %v1322_v55 = vld [vmem:[#allocation2 + $0x2418] sm:$0xff]  ;;  %v1337_v57 = vld [vmem:[#allocation2 + $0x2490] sm:$0xff]  ;;  %v1440_v38 = vld [vmem:[#allocation2 + $0x27c8] sm:$0xff] }
 0x297   :  { %5211 = vmatmul.mubr.f32.vlgmr.msra.gmra.mxu0 %v2450_v56  ;;  %5280 = vmatprep.mubr.f32.mxu1 %v2453_v58  ;;  %v1354_v56 = vld [vmem:[#allocation2 + $0x2518] sm:$0xff]  ;;  %v1369_v58 = vld [vmem:[#allocation2 + $0x2590] sm:$0xff]  ;;  %v1392_v39 = vld [vmem:[#allocation2 + $0x2648] sm:$0xff] }
 0x298   :  { %7527 = vmatprep.subr.mxu0 %v1350_v59  ;;  %7562 = vmatprep.subr.mxu1 %v1382_v61  ;;  %v2464_v59 = vrot.slane %v2454_v46, %v8145_v53  ;;  %v1321_v61 = vld [vmem:[#allocation2 + $0x2410] sm:$0xff]  ;;  %v1438_v46 = vld [vmem:[#allocation2 + $0x27b8] sm:$0xff] }
 0x299   :  { %5281 = vmatmul.mubr.f32.vlgmr.msra.gmra.mxu1 %v2452_v60  ;;  %7528 = vmatpush3.msra.mxu0 %v1334_v62  ;;  %v2478_v60 = vrot.slane %v2456_v47, %v8145_v53  ;;  %v1353_v62 = vld [vmem:[#allocation2 + $0x2510] sm:$0xff]  ;;  %v1390_v47 = vld [vmem:[#allocation2 + $0x2638] sm:$0xff] }
 0x29a   :  { %7563 = vmatpush3.msra.mxu1 %v1366_v63  ;;  %7529 = vmatprep.subr.mxu0 %v1349_v0  ;;  %v1336_v63 = vld [vmem:[#allocation2 + $0x2488] sm:$0xff] }
 0x29b   :  { %7564 = vmatprep.subr.mxu1 %v1381_v1  ;;  %7530 = vmatpush3.msra.mxu0 %v1333_v2  ;;  %v1368_v0 = vld [vmem:[#allocation2 + $0x2588] sm:$0xff]  ;;  %v2471_v1 = vrot.slane %v2455_v52, %v8145_v53  ;;  %v2485_v2 = vrot.slane %v2457_v54, %v8145_v53  ;;  %v1421_v52 = vld [vmem:[#allocation2 + $0x2730] sm:$0xff]  ;;  %v90_v54 = vld [vmem:[%s8551_s0 + $0x98] sm:$0xff] }
 0x29c   :  { %7565 = vmatpush3.msra.mxu1 %v1365_v3  ;;  %7531 = vmatprep.subr.mxu0 %v1348_v4  ;;  %v1320_v3 = vld [vmem:[#allocation2 + $0x2408] sm:$0xff] }
 0x29d   :  { %7566 = vmatprep.subr.mxu1 %v1380_v5  ;;  %7532 = vmatpush3.msra.mxu0 %v1332_v6  ;;  %v1352_v4 = vld [vmem:[#allocation2 + $0x2508] sm:$0xff]  ;;  %v1335_v5 = vld [vmem:[#allocation2 + $0x2480] sm:$0xff] }
 0x29e   :  { %7567 = vmatpush3.msra.mxu1 %v1364_v7  ;;  %7533 = vmatprep.subr.mxu0 %v1347_v8  ;;  %v1367_v6 = vld [vmem:[#allocation2 + $0x2580] sm:$0xff]  ;;  %v2487_v7 = vcombine.high %v2464_v59, %v2478_v60 }
 0x29f   :  { %7568 = vmatprep.subr.mxu1 %v1379_v9  ;;  %7534 = vmatpush3.msra.mxu0 %v1331_v10  ;;  %v1319_v8 = vld [vmem:[#allocation2 + $0x2400] sm:$0xff]  ;;  %v2486_v9 = vcombine.low %v2464_v59, %v2478_v60  ;;  %v1436_v59 = vld [vmem:[#allocation2 + $0x27a8] sm:$0xff] }
 0x2a0   :  { %7569 = vmatpush3.msra.mxu1 %v1363_v11  ;;  %7535 = vmatprep.subr.mxu0 %v1346_v12  ;;  %v1351_v10 = vld [vmem:[#allocation2 + $0x2500] sm:$0xff]  ;;  %v2489_v11 = vcombine.high %v2471_v1, %v2485_v2  ;;  %v1414_v12 = vld [vmem:[#allocation2 + $0x26f8] sm:$0xff]  ;;  %v1388_v60 = vld [vmem:[#allocation2 + $0x2628] sm:$0xff] }
 0x2a1   :  { %7570 = vmatprep.subr.mxu1 %v1378_v13  ;;  %7536 = vmatpush3.msra.mxu0 %v1330_v14  ;;  %v2488_v13 = vcombine.low %v2471_v1, %v2485_v2  ;;  %v1446_v14 = vld [vmem:[#allocation2 + $0x27f8] sm:$0xff]  ;;  %v1387_v2 = vld [vmem:[#allocation2 + $0x2620] sm:$0xff] }
 0x2a2   :  { %7571 = vmatpush3.msra.mxu1 %v1362_v15  ;;  %7537 = vmatprep.subr.mxu0 %v1345_v16  ;;  %v1398_v15 = vld [vmem:[#allocation2 + $0x2678] sm:$0xff] }
 0x2a3   :  { %7572 = vmatprep.subr.mxu1 %v1377_v17  ;;  %7538 = vmatpush3.msra.mxu0 %v1329_v18  ;;  %v1430_v16 = vld [vmem:[#allocation2 + $0x2778] sm:$0xff]  ;;  %v1413_v17 = vld [vmem:[#allocation2 + $0x26f0] sm:$0xff] }
 0x2a4   :  { %7573 = vmatpush3.msra.mxu1 %v1361_v19  ;;  %7539 = vmatprep.subr.mxu0 %v1344_v20  ;;  %v1445_v18 = vld [vmem:[#allocation2 + $0x27f0] sm:$0xff] }
 0x2a5   :  { %7574 = vmatprep.subr.mxu1 %v1376_v21  ;;  %7540 = vmatpush3.msra.mxu0 %v1328_v22  ;;  %v1397_v19 = vld [vmem:[#allocation2 + $0x2670] sm:$0xff]  ;;  %v1412_v21 = vld [vmem:[#allocation2 + $0x26e8] sm:$0xff] }
 0x2a6   :  { %7575 = vmatpush3.msra.mxu1 %v1360_v23  ;;  %7541 = vmatprep.subr.mxu0 %v1343_v24  ;;  %v1429_v20 = vld [vmem:[#allocation2 + $0x2770] sm:$0xff]  ;;  %v1444_v22 = vld [vmem:[#allocation2 + $0x27e8] sm:$0xff] }
 0x2a7   :  { %7576 = vmatprep.subr.mxu1 %v1375_v25  ;;  %7542 = vmatpush3.msra.mxu0 %v1327_v26  ;;  %v1396_v23 = vld [vmem:[#allocation2 + $0x2668] sm:$0xff]  ;;  %v1411_v25 = vld [vmem:[#allocation2 + $0x26e0] sm:$0xff] }
 0x2a8   :  { %7577 = vmatpush3.msra.mxu1 %v1359_v27  ;;  %7543 = vmatprep.subr.mxu0 %v1342_v28  ;;  %v1428_v24 = vld [vmem:[#allocation2 + $0x2768] sm:$0xff]  ;;  %v1443_v26 = vld [vmem:[#allocation2 + $0x27e0] sm:$0xff] }
 0x2a9   :  { %7578 = vmatprep.subr.mxu1 %v1374_v29  ;;  %7544 = vmatpush3.msra.mxu0 %v1326_v30  ;;  %v1395_v27 = vld [vmem:[#allocation2 + $0x2660] sm:$0xff]  ;;  %v1410_v29 = vld [vmem:[#allocation2 + $0x26d8] sm:$0xff] }
 0x2aa   :  { %7579 = vmatpush3.msra.mxu1 %v1358_v31  ;;  %7545 = vmatprep.subr.mxu0 %v1341_v32  ;;  %v1427_v28 = vld [vmem:[#allocation2 + $0x2760] sm:$0xff]  ;;  %v1442_v30 = vld [vmem:[#allocation2 + $0x27d8] sm:$0xff] }
 0x2ab   :  { %7580 = vmatprep.subr.mxu1 %v1373_v33  ;;  %7546 = vmatpush3.msra.mxu0 %v1325_v34  ;;  %v1394_v31 = vld [vmem:[#allocation2 + $0x2658] sm:$0xff]  ;;  %v1409_v33 = vld [vmem:[#allocation2 + $0x26d0] sm:$0xff] }
 0x2ac   :  { %7581 = vmatpush3.msra.mxu1 %v1357_v35  ;;  %7547 = vmatprep.subr.mxu0 %v1340_v40  ;;  %v1426_v32 = vld [vmem:[#allocation2 + $0x2758] sm:$0xff]  ;;  %v1441_v34 = vld [vmem:[#allocation2 + $0x27d0] sm:$0xff]  ;;  %v1424_v40 = vld [vmem:[#allocation2 + $0x2748] sm:$0xff] }
 0x2ad   :  { %7582 = vmatprep.subr.mxu1 %v1372_v41  ;;  %7548 = vmatpush3.msra.mxu0 %v1324_v42  ;;  %v1393_v35 = vld [vmem:[#allocation2 + $0x2650] sm:$0xff]  ;;  %v1407_v41 = vld [vmem:[#allocation2 + $0x26c0] sm:$0xff] }
 0x2ae   :  { %7583 = vmatpush3.msra.mxu1 %v1356_v43  ;;  %7549 = vmatprep.subr.mxu0 %v1339_v44  ;;  %v1439_v42 = vld [vmem:[#allocation2 + $0x27c0] sm:$0xff] }
 0x2af   :  { %7584 = vmatprep.subr.mxu1 %v1371_v45  ;;  %7550 = vmatpush3.msra.mxu0 %v1323_v48  ;;  %v1391_v43 = vld [vmem:[#allocation2 + $0x2640] sm:$0xff]  ;;  %v1406_v45 = vld [vmem:[#allocation2 + $0x26b8] sm:$0xff] }
 0x2b0   :  { %7585 = vmatpush3.msra.mxu1 %v1355_v49  ;;  %7551 = vmatprep.subr.mxu0 %v1338_v50  ;;  %v1423_v44 = vld [vmem:[#allocation2 + $0x2740] sm:$0xff]  ;;  %v1422_v48 = vld [vmem:[#allocation2 + $0x2738] sm:$0xff]  ;;  %v1405_v49 = vld [vmem:[#allocation2 + $0x26b0] sm:$0xff] }
 0x2b1   :  { %7586 = vmatprep.subr.mxu1 %v1370_v51  ;;  %7552 = vmatpush3.msra.mxu0 %v1322_v55  ;;  %v1437_v50 = vld [vmem:[#allocation2 + $0x27b0] sm:$0xff]  ;;  %v114_v55 = vld [vmem:[%s8551_s0 + $0x158] sm:$0xff] }
 0x2b2   :  { %7587 = vmatpush3.msra.mxu1 %v1354_v56  ;;  %7553 = vmatprep.subr.mxu0 %v1337_v57  ;;  %v1389_v51 = vld [vmem:[#allocation2 + $0x2630] sm:$0xff]  ;;  %v138_v56 = vld [vmem:[%s8551_s0 + $0x218] sm:$0xff] }
 0x2b3   :  { %7588 = vmatprep.subr.mxu1 %v1369_v58  ;;  %7554 = vmatpush3.msra.mxu0 %v1321_v61  ;;  %v162_v57 = vld [vmem:[%s8551_s0 + $0x2d8] sm:$0xff]  ;;  %v1404_v58 = vld [vmem:[#allocation2 + $0x26a8] sm:$0xff] }
 0x2b4   :  { %7589 = vmatpush3.msra.mxu1 %v1353_v62  ;;  %7555 = vmatprep.subr.mxu0 %v1336_v63  ;;  %v1420_v61 = vld [vmem:[#allocation2 + $0x2728] sm:$0xff]  ;;  %v1403_v62 = vld [vmem:[#allocation2 + $0x26a0] sm:$0xff]  ;;  %v2492_v1 = vcombine.low %v138_v56, %v162_v57 }
 0x2b5   :  { %7590 = vmatprep.subr.mxu1 %v1368_v0  ;;  %7556 = vmatpush3.msra.mxu0 %v1320_v3  ;;  %v1435_v63 = vld [vmem:[#allocation2 + $0x27a0] sm:$0xff]  ;;  %v2490_v0 = vcombine.low %v90_v54, %v114_v55 }
 0x2b6   :  { %7591 = vmatpush3.msra.mxu1 %v1352_v4  ;;  %7557 = vmatprep.subr.mxu0 %v1335_v5  ;;  %v1419_v3 = vld [vmem:[#allocation2 + $0x2720] sm:$0xff]  ;;  %v1402_v4 = vld [vmem:[#allocation2 + $0x2698] sm:$0xff] }
 0x2b7   :  { %7592 = vmatprep.subr.mxu1 %v1367_v6  ;;  %7558 = vmatpush3.msra.mxu0 %v1319_v8  ;;  %v1434_v5 = vld [vmem:[#allocation2 + $0x2798] sm:$0xff]  ;;  %v2491_v6 = vcombine.high %v90_v54, %v114_v55  ;;  %v1489_v54 = vld [vmem:[#allocation2 + $0x2950] sm:$0xff]  ;;  %v1472_v55 = vld [vmem:[#allocation2 + $0x28c8] sm:$0xff] }
 0x2b8   :  { %5350 = vmatprep.mubr.f32.mxu0 %v2487_v7  ;;  %7593 = vmatpush3.msra.mxu1 %v1351_v10  ;;  %v2493_v7 = vcombine.high %v138_v56, %v162_v57  ;;  %v1386_v8 = vld [vmem:[#allocation2 + $0x2618] sm:$0xff]  ;;  %v1401_v10 = vld [vmem:[#allocation2 + $0x2690] sm:$0xff]  ;;  %v1504_v56 = vld [vmem:[#allocation2 + $0x29c8] sm:$0xff] }
 0x2b9   :  { %5351 = vmatmul.mubr.f32.vlgmr.msra.gmra.mxu0 %v2486_v9  ;;  %5420 = vmatprep.mubr.f32.mxu1 %v2489_v11  ;;  %v1418_v9 = vld [vmem:[#allocation2 + $0x2718] sm:$0xff]  ;;  %v1433_v11 = vld [vmem:[#allocation2 + $0x2790] sm:$0xff]  ;;  %v1456_v57 = vld [vmem:[#allocation2 + $0x2848] sm:$0xff] }
 0x2ba   :  { %7597 = vmatprep.subr.mxu0 %v1414_v12  ;;  %7632 = vmatprep.subr.mxu1 %v1446_v14  ;;  %v2500_v12 = vrot.slane %v2490_v0, %v8145_v53  ;;  %v1385_v14 = vld [vmem:[#allocation2 + $0x2610] sm:$0xff]  ;;  %v1502_v0 = vld [vmem:[#allocation2 + $0x29b8] sm:$0xff] }
 0x2bb   :  { %5421 = vmatmul.mubr.f32.vlgmr.msra.gmra.mxu1 %v2488_v13  ;;  %7598 = vmatpush3.msra.mxu0 %v1398_v15  ;;  %v2514_v13 = vrot.slane %v2492_v1, %v8145_v53  ;;  %v1417_v15 = vld [vmem:[#allocation2 + $0x2710] sm:$0xff]  ;;  %v1454_v1 = vld [vmem:[#allocation2 + $0x2838] sm:$0xff] }
 0x2bc   :  { %7633 = vmatpush3.msra.mxu1 %v1430_v16  ;;  %7599 = vmatprep.subr.mxu0 %v1413_v17  ;;  %v1400_v16 = vld [vmem:[#allocation2 + $0x2688] sm:$0xff] }
 0x2bd   :  { %7634 = vmatprep.subr.mxu1 %v1445_v18  ;;  %7600 = vmatpush3.msra.mxu0 %v1397_v19  ;;  %v1432_v17 = vld [vmem:[#allocation2 + $0x2788] sm:$0xff]  ;;  %v2507_v18 = vrot.slane %v2491_v6, %v8145_v53  ;;  %v2521_v19 = vrot.slane %v2493_v7, %v8145_v53  ;;  %v1485_v6 = vld [vmem:[#allocation2 + $0x2930] sm:$0xff]  ;;  %v91_v7 = vld [vmem:[%s8551_s0 + $0xa0] sm:$0xff] }
 0x2be   :  { %7635 = vmatpush3.msra.mxu1 %v1429_v20  ;;  %7601 = vmatprep.subr.mxu0 %v1412_v21  ;;  %v1384_v20 = vld [vmem:[#allocation2 + $0x2608] sm:$0xff] }
 0x2bf   :  { %7636 = vmatprep.subr.mxu1 %v1444_v22  ;;  %7602 = vmatpush3.msra.mxu0 %v1396_v23  ;;  %v1416_v21 = vld [vmem:[#allocation2 + $0x2708] sm:$0xff]  ;;  %v1399_v22 = vld [vmem:[#allocation2 + $0x2680] sm:$0xff] }
 0x2c0   :  { %7637 = vmatpush3.msra.mxu1 %v1428_v24  ;;  %7603 = vmatprep.subr.mxu0 %v1411_v25  ;;  %v1431_v23 = vld [vmem:[#allocation2 + $0x2780] sm:$0xff]  ;;  %v2523_v24 = vcombine.high %v2500_v12, %v2514_v13 }
 0x2c1   :  { %7638 = vmatprep.subr.mxu1 %v1443_v26  ;;  %7604 = vmatpush3.msra.mxu0 %v1395_v27  ;;  %v1383_v25 = vld [vmem:[#allocation2 + $0x2600] sm:$0xff]  ;;  %v2522_v26 = vcombine.low %v2500_v12, %v2514_v13  ;;  %v1500_v12 = vld [vmem:[#allocation2 + $0x29a8] sm:$0xff] }
 0x2c2   :  { %7639 = vmatpush3.msra.mxu1 %v1427_v28  ;;  %7605 = vmatprep.subr.mxu0 %v1410_v29  ;;  %v1415_v27 = vld [vmem:[#allocation2 + $0x2700] sm:$0xff]  ;;  %v2525_v28 = vcombine.high %v2507_v18, %v2521_v19  ;;  %v1478_v29 = vld [vmem:[#allocation2 + $0x28f8] sm:$0xff]  ;;  %v1452_v13 = vld [vmem:[#allocation2 + $0x2828] sm:$0xff] }
 0x2c3   :  { %7640 = vmatprep.subr.mxu1 %v1442_v30  ;;  %7606 = vmatpush3.msra.mxu0 %v1394_v31  ;;  %v2524_v30 = vcombine.low %v2507_v18, %v2521_v19  ;;  %v1510_v31 = vld [vmem:[#allocation2 + $0x29f8] sm:$0xff]  ;;  %v1451_v19 = vld [vmem:[#allocation2 + $0x2820] sm:$0xff] }
 0x2c4   :  { %7641 = vmatpush3.msra.mxu1 %v1426_v32  ;;  %7607 = vmatprep.subr.mxu0 %v1409_v33  ;;  %v1462_v32 = vld [vmem:[#allocation2 + $0x2878] sm:$0xff] }
 0x2c5   :  { %7642 = vmatprep.subr.mxu1 %v1441_v34  ;;  %7608 = vmatpush3.msra.mxu0 %v1393_v35  ;;  %v1494_v33 = vld [vmem:[#allocation2 + $0x2978] sm:$0xff]  ;;  %v1477_v34 = vld [vmem:[#allocation2 + $0x28f0] sm:$0xff] }
 0x2c6   :  { %7643 = vmatpush3.msra.mxu1 %v1425_v36  ;;  %7609 = vmatprep.subr.mxu0 %v1408_v37  ;;  %v1509_v35 = vld [vmem:[#allocation2 + $0x29f0] sm:$0xff] }
 0x2c7   :  { %7644 = vmatprep.subr.mxu1 %v1440_v38  ;;  %7610 = vmatpush3.msra.mxu0 %v1392_v39  ;;  %v1461_v36 = vld [vmem:[#allocation2 + $0x2870] sm:$0xff]  ;;  %v1476_v38 = vld [vmem:[#allocation2 + $0x28e8] sm:$0xff] }
 0x2c8   :  { %7645 = vmatpush3.msra.mxu1 %v1424_v40  ;;  %7611 = vmatprep.subr.mxu0 %v1407_v41  ;;  %v1493_v37 = vld [vmem:[#allocation2 + $0x2970] sm:$0xff]  ;;  %v1508_v39 = vld [vmem:[#allocation2 + $0x29e8] sm:$0xff] }
 0x2c9   :  { %7646 = vmatprep.subr.mxu1 %v1439_v42  ;;  %7612 = vmatpush3.msra.mxu0 %v1391_v43  ;;  %v1460_v40 = vld [vmem:[#allocation2 + $0x2868] sm:$0xff]  ;;  %v1475_v42 = vld [vmem:[#allocation2 + $0x28e0] sm:$0xff] }
 0x2ca   :  { %7647 = vmatpush3.msra.mxu1 %v1423_v44  ;;  %7613 = vmatprep.subr.mxu0 %v1406_v45  ;;  %v1492_v41 = vld [vmem:[#allocation2 + $0x2968] sm:$0xff]  ;;  %v1507_v43 = vld [vmem:[#allocation2 + $0x29e0] sm:$0xff] }
 0x2cb   :  { %7648 = vmatprep.subr.mxu1 %v1438_v46  ;;  %7614 = vmatpush3.msra.mxu0 %v1390_v47  ;;  %v1459_v44 = vld [vmem:[#allocation2 + $0x2860] sm:$0xff]  ;;  %v1474_v46 = vld [vmem:[#allocation2 + $0x28d8] sm:$0xff] }
 0x2cc   :  { %7649 = vmatpush3.msra.mxu1 %v1422_v48  ;;  %7615 = vmatprep.subr.mxu0 %v1405_v49  ;;  %v1491_v45 = vld [vmem:[#allocation2 + $0x2960] sm:$0xff]  ;;  %v1506_v47 = vld [vmem:[#allocation2 + $0x29d8] sm:$0xff] }
 0x2cd   :  { %7650 = vmatprep.subr.mxu1 %v1437_v50  ;;  %7616 = vmatpush3.msra.mxu0 %v1389_v51  ;;  %v1458_v48 = vld [vmem:[#allocation2 + $0x2858] sm:$0xff]  ;;  %v1473_v50 = vld [vmem:[#allocation2 + $0x28d0] sm:$0xff] }
 0x2ce   :  { %7651 = vmatpush3.msra.mxu1 %v1421_v52  ;;  %7617 = vmatprep.subr.mxu0 %v1404_v58  ;;  %v1490_v49 = vld [vmem:[#allocation2 + $0x2958] sm:$0xff]  ;;  %v1505_v51 = vld [vmem:[#allocation2 + $0x29d0] sm:$0xff]  ;;  %v1488_v58 = vld [vmem:[#allocation2 + $0x2948] sm:$0xff] }
 0x2cf   :  { %7652 = vmatprep.subr.mxu1 %v1436_v59  ;;  %7618 = vmatpush3.msra.mxu0 %v1388_v60  ;;  %v1457_v52 = vld [vmem:[#allocation2 + $0x2850] sm:$0xff]  ;;  %v1471_v59 = vld [vmem:[#allocation2 + $0x28c0] sm:$0xff] }
 0x2d0   :  { %7653 = vmatpush3.msra.mxu1 %v1420_v61  ;;  %7619 = vmatprep.subr.mxu0 %v1403_v62  ;;  %v1503_v60 = vld [vmem:[#allocation2 + $0x29c0] sm:$0xff] }
 0x2d1   :  { %7654 = vmatprep.subr.mxu1 %v1435_v63  ;;  %7620 = vmatpush3.msra.mxu0 %v1387_v2  ;;  %v1455_v61 = vld [vmem:[#allocation2 + $0x2840] sm:$0xff]  ;;  %v1470_v63 = vld [vmem:[#allocation2 + $0x28b8] sm:$0xff] }
 0x2d2   :  { %7655 = vmatpush3.msra.mxu1 %v1419_v3  ;;  %7621 = vmatprep.subr.mxu0 %v1402_v4  ;;  %v1487_v62 = vld [vmem:[#allocation2 + $0x2940] sm:$0xff]  ;;  %v1486_v2 = vld [vmem:[#allocation2 + $0x2938] sm:$0xff]  ;;  %v1469_v3 = vld [vmem:[#allocation2 + $0x28b0] sm:$0xff] }
 0x2d3   :  { %7656 = vmatprep.subr.mxu1 %v1434_v5  ;;  %7622 = vmatpush3.msra.mxu0 %v1386_v8  ;;  %v1501_v4 = vld [vmem:[#allocation2 + $0x29b0] sm:$0xff]  ;;  %v115_v8 = vld [vmem:[%s8551_s0 + $0x160] sm:$0xff] }
 0x2d4   :  { %7657 = vmatpush3.msra.mxu1 %v1418_v9  ;;  %7623 = vmatprep.subr.mxu0 %v1401_v10  ;;  %v1453_v5 = vld [vmem:[#allocation2 + $0x2830] sm:$0xff]  ;;  %v139_v9 = vld [vmem:[%s8551_s0 + $0x220] sm:$0xff] }
 0x2d5   :  { %7658 = vmatprep.subr.mxu1 %v1433_v11  ;;  %7624 = vmatpush3.msra.mxu0 %v1385_v14  ;;  %v163_v10 = vld [vmem:[%s8551_s0 + $0x2e0] sm:$0xff]  ;;  %v1468_v11 = vld [vmem:[#allocation2 + $0x28a8] sm:$0xff] }
 0x2d6   :  { %7659 = vmatpush3.msra.mxu1 %v1417_v15  ;;  %7625 = vmatprep.subr.mxu0 %v1400_v16  ;;  %v1484_v14 = vld [vmem:[#allocation2 + $0x2928] sm:$0xff]  ;;  %v1467_v15 = vld [vmem:[#allocation2 + $0x28a0] sm:$0xff]  ;;  %v2528_v18 = vcombine.low %v139_v9, %v163_v10 }
 0x2d7   :  { %7660 = vmatprep.subr.mxu1 %v1432_v17  ;;  %7626 = vmatpush3.msra.mxu0 %v1384_v20  ;;  %v1499_v16 = vld [vmem:[#allocation2 + $0x29a0] sm:$0xff]  ;;  %v2526_v17 = vcombine.low %v91_v7, %v115_v8 }
 0x2d8   :  { %7661 = vmatpush3.msra.mxu1 %v1416_v21  ;;  %7627 = vmatprep.subr.mxu0 %v1399_v22  ;;  %v1483_v20 = vld [vmem:[#allocation2 + $0x2920] sm:$0xff]  ;;  %v1466_v21 = vld [vmem:[#allocation2 + $0x2898] sm:$0xff] }
 0x2d9   :  { %7662 = vmatprep.subr.mxu1 %v1431_v23  ;;  %7628 = vmatpush3.msra.mxu0 %v1383_v25  ;;  %v1498_v22 = vld [vmem:[#allocation2 + $0x2998] sm:$0xff]  ;;  %v2527_v23 = vcombine.high %v91_v7, %v115_v8  ;;  %v1553_v7 = vld [vmem:[#allocation2 + $0x2b50] sm:$0xff]  ;;  %v1536_v8 = vld [vmem:[#allocation2 + $0x2ac8] sm:$0xff] }
 0x2da   :  { %5490 = vmatprep.mubr.f32.mxu0 %v2523_v24  ;;  %7663 = vmatpush3.msra.mxu1 %v1415_v27  ;;  %v2529_v24 = vcombine.high %v139_v9, %v163_v10  ;;  %v1450_v25 = vld [vmem:[#allocation2 + $0x2818] sm:$0xff]  ;;  %v1465_v27 = vld [vmem:[#allocation2 + $0x2890] sm:$0xff]  ;;  %v1568_v9 = vld [vmem:[#allocation2 + $0x2bc8] sm:$0xff] }
 0x2db   :  { %5491 = vmatmul.mubr.f32.vlgmr.msra.gmra.mxu0 %v2522_v26  ;;  %5560 = vmatprep.mubr.f32.mxu1 %v2525_v28  ;;  %v1482_v26 = vld [vmem:[#allocation2 + $0x2918] sm:$0xff]  ;;  %v1497_v28 = vld [vmem:[#allocation2 + $0x2990] sm:$0xff]  ;;  %v1520_v10 = vld [vmem:[#allocation2 + $0x2a48] sm:$0xff] }
 0x2dc   :  { %7667 = vmatprep.subr.mxu0 %v1478_v29  ;;  %7702 = vmatprep.subr.mxu1 %v1510_v31  ;;  %v2536_v29 = vrot.slane %v2526_v17, %v8145_v53  ;;  %v1449_v31 = vld [vmem:[#allocation2 + $0x2810] sm:$0xff]  ;;  %v1566_v17 = vld [vmem:[#allocation2 + $0x2bb8] sm:$0xff] }
 0x2dd   :  { %5561 = vmatmul.mubr.f32.vlgmr.msra.gmra.mxu1 %v2524_v30  ;;  %7668 = vmatpush3.msra.mxu0 %v1462_v32  ;;  %v2550_v30 = vrot.slane %v2528_v18, %v8145_v53  ;;  %v1481_v32 = vld [vmem:[#allocation2 + $0x2910] sm:$0xff]  ;;  %v1518_v18 = vld [vmem:[#allocation2 + $0x2a38] sm:$0xff] }
 0x2de   :  { %7703 = vmatpush3.msra.mxu1 %v1494_v33  ;;  %7669 = vmatprep.subr.mxu0 %v1477_v34  ;;  %v1464_v33 = vld [vmem:[#allocation2 + $0x2888] sm:$0xff] }
 0x2df   :  { %7704 = vmatprep.subr.mxu1 %v1509_v35  ;;  %7670 = vmatpush3.msra.mxu0 %v1461_v36  ;;  %v1496_v34 = vld [vmem:[#allocation2 + $0x2988] sm:$0xff]  ;;  %v2543_v35 = vrot.slane %v2527_v23, %v8145_v53  ;;  %v2557_v36 = vrot.slane %v2529_v24, %v8145_v53  ;;  %v1549_v23 = vld [vmem:[#allocation2 + $0x2b30] sm:$0xff] }
 0x2e0   :  { %7705 = vmatpush3.msra.mxu1 %v1493_v37  ;;  %7671 = vmatprep.subr.mxu0 %v1476_v38  ;;  %v1448_v37 = vld [vmem:[#allocation2 + $0x2808] sm:$0xff] }
 0x2e1   :  { %7706 = vmatprep.subr.mxu1 %v1508_v39  ;;  %7672 = vmatpush3.msra.mxu0 %v1460_v40  ;;  %v1480_v38 = vld [vmem:[#allocation2 + $0x2908] sm:$0xff]  ;;  %v1463_v39 = vld [vmem:[#allocation2 + $0x2880] sm:$0xff] }
 0x2e2   :  { %7707 = vmatpush3.msra.mxu1 %v1492_v41  ;;  %7673 = vmatprep.subr.mxu0 %v1475_v42  ;;  %v1495_v40 = vld [vmem:[#allocation2 + $0x2980] sm:$0xff]  ;;  %v2559_v41 = vcombine.high %v2536_v29, %v2550_v30  ;;  %v92_v24 = vld [vmem:[%s8551_s0 + $0xa8] sm:$0xff] }
 0x2e3   :  { %7708 = vmatprep.subr.mxu1 %v1507_v43  ;;  %7674 = vmatpush3.msra.mxu0 %v1459_v44  ;;  %v1447_v42 = vld [vmem:[#allocation2 + $0x2800] sm:$0xff]  ;;  %v2558_v43 = vcombine.low %v2536_v29, %v2550_v30  ;;  %v1564_v29 = vld [vmem:[#allocation2 + $0x2ba8] sm:$0xff] }
 0x2e4   :  { %7709 = vmatpush3.msra.mxu1 %v1491_v45  ;;  %7675 = vmatprep.subr.mxu0 %v1474_v46  ;;  %v1479_v44 = vld [vmem:[#allocation2 + $0x2900] sm:$0xff]  ;;  %v2561_v45 = vcombine.high %v2543_v35, %v2557_v36  ;;  %v1542_v46 = vld [vmem:[#allocation2 + $0x2af8] sm:$0xff]  ;;  %v1516_v30 = vld [vmem:[#allocation2 + $0x2a28] sm:$0xff] }
 0x2e5   :  { %7710 = vmatprep.subr.mxu1 %v1506_v47  ;;  %7676 = vmatpush3.msra.mxu0 %v1458_v48  ;;  %v2560_v47 = vcombine.low %v2543_v35, %v2557_v36  ;;  %v1574_v48 = vld [vmem:[#allocation2 + $0x2bf8] sm:$0xff]  ;;  %v1515_v36 = vld [vmem:[#allocation2 + $0x2a20] sm:$0xff] }
 0x2e6   :  { %7711 = vmatpush3.msra.mxu1 %v1490_v49  ;;  %7677 = vmatprep.subr.mxu0 %v1473_v50  ;;  %v1526_v49 = vld [vmem:[#allocation2 + $0x2a78] sm:$0xff] }
 0x2e7   :  { %7712 = vmatprep.subr.mxu1 %v1505_v51  ;;  %7678 = vmatpush3.msra.mxu0 %v1457_v52  ;;  %v1558_v50 = vld [vmem:[#allocation2 + $0x2b78] sm:$0xff]  ;;  %v1541_v51 = vld [vmem:[#allocation2 + $0x2af0] sm:$0xff] }
 0x2e8   :  { %7713 = vmatpush3.msra.mxu1 %v1489_v54  ;;  %7679 = vmatprep.subr.mxu0 %v1472_v55  ;;  %v1573_v52 = vld [vmem:[#allocation2 + $0x2bf0] sm:$0xff] }
 0x2e9   :  { %7714 = vmatprep.subr.mxu1 %v1504_v56  ;;  %7680 = vmatpush3.msra.mxu0 %v1456_v57  ;;  %v1525_v54 = vld [vmem:[#allocation2 + $0x2a70] sm:$0xff]  ;;  %v1540_v56 = vld [vmem:[#allocation2 + $0x2ae8] sm:$0xff] }
 0x2ea   :  { %7715 = vmatpush3.msra.mxu1 %v1488_v58  ;;  %7681 = vmatprep.subr.mxu0 %v1471_v59  ;;  %v1557_v55 = vld [vmem:[#allocation2 + $0x2b70] sm:$0xff]  ;;  %v1572_v57 = vld [vmem:[#allocation2 + $0x2be8] sm:$0xff] }
 0x2eb   :  { %7716 = vmatprep.subr.mxu1 %v1503_v60  ;;  %7682 = vmatpush3.msra.mxu0 %v1455_v61  ;;  %v1524_v58 = vld [vmem:[#allocation2 + $0x2a68] sm:$0xff]  ;;  %v1539_v60 = vld [vmem:[#allocation2 + $0x2ae0] sm:$0xff] }
 0x2ec   :  { %7717 = vmatpush3.msra.mxu1 %v1487_v62  ;;  %7683 = vmatprep.subr.mxu0 %v1470_v63  ;;  %v1556_v59 = vld [vmem:[#allocation2 + $0x2b68] sm:$0xff]  ;;  %v1571_v61 = vld [vmem:[#allocation2 + $0x2be0] sm:$0xff] }
 0x2ed   :  { %7718 = vmatprep.subr.mxu1 %v1502_v0  ;;  %7684 = vmatpush3.msra.mxu0 %v1454_v1  ;;  %v1523_v62 = vld [vmem:[#allocation2 + $0x2a60] sm:$0xff]  ;;  %v1538_v0 = vld [vmem:[#allocation2 + $0x2ad8] sm:$0xff] }
 0x2ee   :  { %7719 = vmatpush3.msra.mxu1 %v1486_v2  ;;  %7685 = vmatprep.subr.mxu0 %v1469_v3  ;;  %v1555_v63 = vld [vmem:[#allocation2 + $0x2b60] sm:$0xff]  ;;  %v1570_v1 = vld [vmem:[#allocation2 + $0x2bd8] sm:$0xff] }
 0x2ef   :  { %7720 = vmatprep.subr.mxu1 %v1501_v4  ;;  %7686 = vmatpush3.msra.mxu0 %v1453_v5  ;;  %v1522_v2 = vld [vmem:[#allocation2 + $0x2a58] sm:$0xff]  ;;  %v1537_v4 = vld [vmem:[#allocation2 + $0x2ad0] sm:$0xff] }
 0x2f0   :  { %7721 = vmatpush3.msra.mxu1 %v1485_v6  ;;  %7687 = vmatprep.subr.mxu0 %v1468_v11  ;;  %v1554_v3 = vld [vmem:[#allocation2 + $0x2b58] sm:$0xff]  ;;  %v1569_v5 = vld [vmem:[#allocation2 + $0x2bd0] sm:$0xff]  ;;  %v1552_v11 = vld [vmem:[#allocation2 + $0x2b48] sm:$0xff] }
 0x2f1   :  { %7722 = vmatprep.subr.mxu1 %v1500_v12  ;;  %7688 = vmatpush3.msra.mxu0 %v1452_v13  ;;  %v1521_v6 = vld [vmem:[#allocation2 + $0x2a50] sm:$0xff]  ;;  %v1535_v12 = vld [vmem:[#allocation2 + $0x2ac0] sm:$0xff] }
 0x2f2   :  { %7723 = vmatpush3.msra.mxu1 %v1484_v14  ;;  %7689 = vmatprep.subr.mxu0 %v1467_v15  ;;  %v1567_v13 = vld [vmem:[#allocation2 + $0x2bc0] sm:$0xff] }
 0x2f3   :  { %7724 = vmatprep.subr.mxu1 %v1499_v16  ;;  %7690 = vmatpush3.msra.mxu0 %v1451_v19  ;;  %v1519_v14 = vld [vmem:[#allocation2 + $0x2a40] sm:$0xff]  ;;  %v1534_v16 = vld [vmem:[#allocation2 + $0x2ab8] sm:$0xff] }
 0x2f4   :  { %7725 = vmatpush3.msra.mxu1 %v1483_v20  ;;  %7691 = vmatprep.subr.mxu0 %v1466_v21  ;;  %v1551_v15 = vld [vmem:[#allocation2 + $0x2b40] sm:$0xff]  ;;  %v1550_v19 = vld [vmem:[#allocation2 + $0x2b38] sm:$0xff]  ;;  %v1533_v20 = vld [vmem:[#allocation2 + $0x2ab0] sm:$0xff] }
 0x2f5   :  { %7726 = vmatprep.subr.mxu1 %v1498_v22  ;;  %7692 = vmatpush3.msra.mxu0 %v1450_v25  ;;  %v1565_v21 = vld [vmem:[#allocation2 + $0x2bb0] sm:$0xff]  ;;  %v116_v25 = vld [vmem:[%s8551_s0 + $0x168] sm:$0xff] }
 0x2f6   :  { %7727 = vmatpush3.msra.mxu1 %v1482_v26  ;;  %7693 = vmatprep.subr.mxu0 %v1465_v27  ;;  %v1517_v22 = vld [vmem:[#allocation2 + $0x2a30] sm:$0xff]  ;;  %v140_v26 = vld [vmem:[%s8551_s0 + $0x228] sm:$0xff] }
 0x2f7   :  { %7728 = vmatprep.subr.mxu1 %v1497_v28  ;;  %7694 = vmatpush3.msra.mxu0 %v1449_v31  ;;  %v164_v27 = vld [vmem:[%s8551_s0 + $0x2e8] sm:$0xff] }
 0x2f8   :  { %7729 = vmatpush3.msra.mxu1 %v1481_v32  ;;  %7695 = vmatprep.subr.mxu0 %v1464_v33  ;;  %v1532_v28 = vld [vmem:[#allocation2 + $0x2aa8] sm:$0xff]  ;;  %v1531_v32 = vld [vmem:[#allocation2 + $0x2aa0] sm:$0xff]  ;;  %v2564_v35 = vcombine.low %v140_v26, %v164_v27 }
 0x2f9   :  { %7730 = vmatprep.subr.mxu1 %v1496_v34  ;;  %7696 = vmatpush3.msra.mxu0 %v1448_v37  ;;  %v1548_v31 = vld [vmem:[#allocation2 + $0x2b28] sm:$0xff]  ;;  %v1563_v33 = vld [vmem:[#allocation2 + $0x2ba0] sm:$0xff]  ;;  %v2562_v34 = vcombine.low %v92_v24, %v116_v25 }
 0x2fa   :  { %7731 = vmatpush3.msra.mxu1 %v1480_v38  ;;  %7697 = vmatprep.subr.mxu0 %v1463_v39  ;;  %v1547_v37 = vld [vmem:[#allocation2 + $0x2b20] sm:$0xff]  ;;  %v1530_v38 = vld [vmem:[#allocation2 + $0x2a98] sm:$0xff] }
 0x2fb   :  { %7732 = vmatprep.subr.mxu1 %v1495_v40  ;;  %7698 = vmatpush3.msra.mxu0 %v1447_v42  ;;  %v1562_v39 = vld [vmem:[#allocation2 + $0x2b98] sm:$0xff]  ;;  %v2563_v40 = vcombine.high %v92_v24, %v116_v25  ;;  %v1617_v24 = vld [vmem:[#allocation2 + $0x2d50] sm:$0xff]  ;;  %v1600_v25 = vld [vmem:[#allocation2 + $0x2cc8] sm:$0xff] }
 0x2fc   :  { %5630 = vmatprep.mubr.f32.mxu0 %v2559_v41  ;;  %7733 = vmatpush3.msra.mxu1 %v1479_v44  ;;  %v2565_v41 = vcombine.high %v140_v26, %v164_v27  ;;  %v1514_v42 = vld [vmem:[#allocation2 + $0x2a18] sm:$0xff]  ;;  %v1529_v44 = vld [vmem:[#allocation2 + $0x2a90] sm:$0xff]  ;;  %v1632_v26 = vld [vmem:[#allocation2 + $0x2dc8] sm:$0xff] }
 0x2fd   :  { %5631 = vmatmul.mubr.f32.vlgmr.msra.gmra.mxu0 %v2558_v43  ;;  %5700 = vmatprep.mubr.f32.mxu1 %v2561_v45  ;;  %v1546_v43 = vld [vmem:[#allocation2 + $0x2b18] sm:$0xff]  ;;  %v1561_v45 = vld [vmem:[#allocation2 + $0x2b90] sm:$0xff]  ;;  %v1584_v27 = vld [vmem:[#allocation2 + $0x2c48] sm:$0xff] }
 0x2fe   :  { %7737 = vmatprep.subr.mxu0 %v1542_v46  ;;  %7772 = vmatprep.subr.mxu1 %v1574_v48  ;;  %v2572_v46 = vrot.slane %v2562_v34, %v8145_v53  ;;  %v1513_v48 = vld [vmem:[#allocation2 + $0x2a10] sm:$0xff]  ;;  %v1630_v34 = vld [vmem:[#allocation2 + $0x2db8] sm:$0xff] }
 0x2ff   :  { %5701 = vmatmul.mubr.f32.vlgmr.msra.gmra.mxu1 %v2560_v47  ;;  %7738 = vmatpush3.msra.mxu0 %v1526_v49  ;;  %v2586_v47 = vrot.slane %v2564_v35, %v8145_v53  ;;  %v1545_v49 = vld [vmem:[#allocation2 + $0x2b10] sm:$0xff]  ;;  %v1582_v35 = vld [vmem:[#allocation2 + $0x2c38] sm:$0xff] }
 0x300   :  { %7773 = vmatpush3.msra.mxu1 %v1558_v50  ;;  %7739 = vmatprep.subr.mxu0 %v1541_v51  ;;  %v1528_v50 = vld [vmem:[#allocation2 + $0x2a88] sm:$0xff] }
 0x301   :  { %7774 = vmatprep.subr.mxu1 %v1573_v52  ;;  %7740 = vmatpush3.msra.mxu0 %v1525_v54  ;;  %v1560_v51 = vld [vmem:[#allocation2 + $0x2b88] sm:$0xff]  ;;  %v2579_v52 = vrot.slane %v2563_v40, %v8145_v53  ;;  %v2593_v54 = vrot.slane %v2565_v41, %v8145_v53  ;;  %v1613_v40 = vld [vmem:[#allocation2 + $0x2d30] sm:$0xff] }
 0x302   :  { %7775 = vmatpush3.msra.mxu1 %v1557_v55  ;;  %7741 = vmatprep.subr.mxu0 %v1540_v56  ;;  %v1512_v55 = vld [vmem:[#allocation2 + $0x2a08] sm:$0xff]  ;;  %v93_v41 = vld [vmem:[%s8551_s0 + $0xb0] sm:$0xff] }
 0x303   :  { %7776 = vmatprep.subr.mxu1 %v1572_v57  ;;  %7742 = vmatpush3.msra.mxu0 %v1524_v58  ;;  %v1544_v56 = vld [vmem:[#allocation2 + $0x2b08] sm:$0xff]  ;;  %v1527_v57 = vld [vmem:[#allocation2 + $0x2a80] sm:$0xff] }
 0x304   :  { %7777 = vmatpush3.msra.mxu1 %v1556_v59  ;;  %7743 = vmatprep.subr.mxu0 %v1539_v60  ;;  %v1559_v58 = vld [vmem:[#allocation2 + $0x2b80] sm:$0xff]  ;;  %v2595_v59 = vcombine.high %v2572_v46, %v2586_v47 }
 0x305   :  { %7778 = vmatprep.subr.mxu1 %v1571_v61  ;;  %7744 = vmatpush3.msra.mxu0 %v1523_v62  ;;  %v1511_v60 = vld [vmem:[#allocation2 + $0x2a00] sm:$0xff]  ;;  %v2594_v61 = vcombine.low %v2572_v46, %v2586_v47  ;;  %v1628_v46 = vld [vmem:[#allocation2 + $0x2da8] sm:$0xff] }
 0x306   :  { %7779 = vmatpush3.msra.mxu1 %v1555_v63  ;;  %7745 = vmatprep.subr.mxu0 %v1538_v0  ;;  %v1543_v62 = vld [vmem:[#allocation2 + $0x2b00] sm:$0xff]  ;;  %v2597_v63 = vcombine.high %v2579_v52, %v2593_v54  ;;  %v1606_v0 = vld [vmem:[#allocation2 + $0x2cf8] sm:$0xff]  ;;  %v1580_v47 = vld [vmem:[#allocation2 + $0x2c28] sm:$0xff] }
 0x307   :  { %7780 = vmatprep.subr.mxu1 %v1570_v1  ;;  %7746 = vmatpush3.msra.mxu0 %v1522_v2  ;;  %v2596_v1 = vcombine.low %v2579_v52, %v2593_v54  ;;  %v1638_v2 = vld [vmem:[#allocation2 + $0x2df8] sm:$0xff]  ;;  %v1579_v54 = vld [vmem:[#allocation2 + $0x2c20] sm:$0xff] }
 0x308   :  { %7781 = vmatpush3.msra.mxu1 %v1554_v3  ;;  %7747 = vmatprep.subr.mxu0 %v1537_v4  ;;  %v1590_v3 = vld [vmem:[#allocation2 + $0x2c78] sm:$0xff] }
 0x309   :  { %7782 = vmatprep.subr.mxu1 %v1569_v5  ;;  %7748 = vmatpush3.msra.mxu0 %v1521_v6  ;;  %v1622_v4 = vld [vmem:[#allocation2 + $0x2d78] sm:$0xff]  ;;  %v1605_v5 = vld [vmem:[#allocation2 + $0x2cf0] sm:$0xff] }
 0x30a   :  { %7783 = vmatpush3.msra.mxu1 %v1553_v7  ;;  %7749 = vmatprep.subr.mxu0 %v1536_v8  ;;  %v1637_v6 = vld [vmem:[#allocation2 + $0x2df0] sm:$0xff] }
 0x30b   :  { %7784 = vmatprep.subr.mxu1 %v1568_v9  ;;  %7750 = vmatpush3.msra.mxu0 %v1520_v10  ;;  %v1589_v7 = vld [vmem:[#allocation2 + $0x2c70] sm:$0xff]  ;;  %v1604_v9 = vld [vmem:[#allocation2 + $0x2ce8] sm:$0xff] }
 0x30c   :  { %7785 = vmatpush3.msra.mxu1 %v1552_v11  ;;  %7751 = vmatprep.subr.mxu0 %v1535_v12  ;;  %v1621_v8 = vld [vmem:[#allocation2 + $0x2d70] sm:$0xff]  ;;  %v1636_v10 = vld [vmem:[#allocation2 + $0x2de8] sm:$0xff] }
 0x30d   :  { %7786 = vmatprep.subr.mxu1 %v1567_v13  ;;  %7752 = vmatpush3.msra.mxu0 %v1519_v14  ;;  %v1588_v11 = vld [vmem:[#allocation2 + $0x2c68] sm:$0xff]  ;;  %v1603_v13 = vld [vmem:[#allocation2 + $0x2ce0] sm:$0xff] }
 0x30e   :  { %7787 = vmatpush3.msra.mxu1 %v1551_v15  ;;  %7753 = vmatprep.subr.mxu0 %v1534_v16  ;;  %v1620_v12 = vld [vmem:[#allocation2 + $0x2d68] sm:$0xff]  ;;  %v1635_v14 = vld [vmem:[#allocation2 + $0x2de0] sm:$0xff] }
 0x30f   :  { %7788 = vmatprep.subr.mxu1 %v1566_v17  ;;  %7754 = vmatpush3.msra.mxu0 %v1518_v18  ;;  %v1587_v15 = vld [vmem:[#allocation2 + $0x2c60] sm:$0xff]  ;;  %v1602_v17 = vld [vmem:[#allocation2 + $0x2cd8] sm:$0xff] }
 0x310   :  { %7789 = vmatpush3.msra.mxu1 %v1550_v19  ;;  %7755 = vmatprep.subr.mxu0 %v1533_v20  ;;  %v1619_v16 = vld [vmem:[#allocation2 + $0x2d60] sm:$0xff]  ;;  %v1634_v18 = vld [vmem:[#allocation2 + $0x2dd8] sm:$0xff] }
 0x311   :  { %7790 = vmatprep.subr.mxu1 %v1565_v21  ;;  %7756 = vmatpush3.msra.mxu0 %v1517_v22  ;;  %v1586_v19 = vld [vmem:[#allocation2 + $0x2c58] sm:$0xff]  ;;  %v1601_v21 = vld [vmem:[#allocation2 + $0x2cd0] sm:$0xff] }
 0x312   :  { %7791 = vmatpush3.msra.mxu1 %v1549_v23  ;;  %7757 = vmatprep.subr.mxu0 %v1532_v28  ;;  %v1618_v20 = vld [vmem:[#allocation2 + $0x2d58] sm:$0xff]  ;;  %v1633_v22 = vld [vmem:[#allocation2 + $0x2dd0] sm:$0xff]  ;;  %v1616_v28 = vld [vmem:[#allocation2 + $0x2d48] sm:$0xff] }
 0x313   :  { %7792 = vmatprep.subr.mxu1 %v1564_v29  ;;  %7758 = vmatpush3.msra.mxu0 %v1516_v30  ;;  %v1585_v23 = vld [vmem:[#allocation2 + $0x2c50] sm:$0xff]  ;;  %v1599_v29 = vld [vmem:[#allocation2 + $0x2cc0] sm:$0xff] }
 0x314   :  { %7793 = vmatpush3.msra.mxu1 %v1548_v31  ;;  %7759 = vmatprep.subr.mxu0 %v1531_v32  ;;  %v1631_v30 = vld [vmem:[#allocation2 + $0x2dc0] sm:$0xff] }
 0x315   :  { %7794 = vmatprep.subr.mxu1 %v1563_v33  ;;  %7760 = vmatpush3.msra.mxu0 %v1515_v36  ;;  %v1583_v31 = vld [vmem:[#allocation2 + $0x2c40] sm:$0xff]  ;;  %v1598_v33 = vld [vmem:[#allocation2 + $0x2cb8] sm:$0xff] }
 0x316   :  { %7795 = vmatpush3.msra.mxu1 %v1547_v37  ;;  %7761 = vmatprep.subr.mxu0 %v1530_v38  ;;  %v1615_v32 = vld [vmem:[#allocation2 + $0x2d40] sm:$0xff]  ;;  %v1614_v36 = vld [vmem:[#allocation2 + $0x2d38] sm:$0xff]  ;;  %v1597_v37 = vld [vmem:[#allocation2 + $0x2cb0] sm:$0xff] }
 0x317   :  { %7796 = vmatprep.subr.mxu1 %v1562_v39  ;;  %7762 = vmatpush3.msra.mxu0 %v1514_v42  ;;  %v1629_v38 = vld [vmem:[#allocation2 + $0x2db0] sm:$0xff] }
 0x318   :  { %7797 = vmatpush3.msra.mxu1 %v1546_v43  ;;  %7763 = vmatprep.subr.mxu0 %v1529_v44  ;;  %v1581_v39 = vld [vmem:[#allocation2 + $0x2c30] sm:$0xff] }
 0x319   :  { %7798 = vmatprep.subr.mxu1 %v1561_v45  ;;  %7764 = vmatpush3.msra.mxu0 %v1513_v48  ;;  %v117_v42 = vld [vmem:[%s8551_s0 + $0x170] sm:$0xff]  ;;  %v1596_v45 = vld [vmem:[#allocation2 + $0x2ca8] sm:$0xff] }
 0x31a   :  { %7799 = vmatpush3.msra.mxu1 %v1545_v49  ;;  %7765 = vmatprep.subr.mxu0 %v1528_v50  ;;  %v141_v43 = vld [vmem:[%s8551_s0 + $0x230] sm:$0xff]  ;;  %v1612_v48 = vld [vmem:[#allocation2 + $0x2d28] sm:$0xff]  ;;  %v1595_v49 = vld [vmem:[#allocation2 + $0x2ca0] sm:$0xff] }
 0x31b   :  { %7800 = vmatprep.subr.mxu1 %v1560_v51  ;;  %7766 = vmatpush3.msra.mxu0 %v1512_v55  ;;  %v165_v44 = vld [vmem:[%s8551_s0 + $0x2f0] sm:$0xff]  ;;  %v1627_v50 = vld [vmem:[#allocation2 + $0x2da0] sm:$0xff]  ;;  %v2598_v51 = vcombine.low %v93_v41, %v117_v42 }
 0x31c   :  { %7801 = vmatpush3.msra.mxu1 %v1544_v56  ;;  %7767 = vmatprep.subr.mxu0 %v1527_v57  ;;  %v2600_v52 = vcombine.low %v141_v43, %v165_v44  ;;  %v1611_v55 = vld [vmem:[#allocation2 + $0x2d20] sm:$0xff]  ;;  %v1594_v56 = vld [vmem:[#allocation2 + $0x2c98] sm:$0xff] }
 0x31d   :  { %7802 = vmatprep.subr.mxu1 %v1559_v58  ;;  %7768 = vmatpush3.msra.mxu0 %v1511_v60  ;;  %v1626_v57 = vld [vmem:[#allocation2 + $0x2d98] sm:$0xff]  ;;  %v2599_v58 = vcombine.high %v93_v41, %v117_v42  ;;  %v1681_v41 = vld [vmem:[#allocation2 + $0x2f50] sm:$0xff]  ;;  %v1664_v42 = vld [vmem:[#allocation2 + $0x2ec8] sm:$0xff] }
 0x31e   :  { %5770 = vmatprep.mubr.f32.mxu0 %v2595_v59  ;;  %7803 = vmatpush3.msra.mxu1 %v1543_v62  ;;  %v2601_v59 = vcombine.high %v141_v43, %v165_v44  ;;  %v1578_v60 = vld [vmem:[#allocation2 + $0x2c18] sm:$0xff]  ;;  %v1593_v62 = vld [vmem:[#allocation2 + $0x2c90] sm:$0xff]  ;;  %v1696_v43 = vld [vmem:[#allocation2 + $0x2fc8] sm:$0xff] }
 0x31f   :  { %5771 = vmatmul.mubr.f32.vlgmr.msra.gmra.mxu0 %v2594_v61  ;;  %5840 = vmatprep.mubr.f32.mxu1 %v2597_v63  ;;  %v1610_v61 = vld [vmem:[#allocation2 + $0x2d18] sm:$0xff]  ;;  %v1625_v63 = vld [vmem:[#allocation2 + $0x2d90] sm:$0xff]  ;;  %v1648_v44 = vld [vmem:[#allocation2 + $0x2e48] sm:$0xff] }
 0x320   :  { %7807 = vmatprep.subr.mxu0 %v1606_v0  ;;  %7842 = vmatprep.subr.mxu1 %v1638_v2  ;;  %v2608_v0 = vrot.slane %v2598_v51, %v8145_v53  ;;  %v1577_v2 = vld [vmem:[#allocation2 + $0x2c10] sm:$0xff]  ;;  %v1694_v51 = vld [vmem:[#allocation2 + $0x2fb8] sm:$0xff] }
 0x321   :  { %5841 = vmatmul.mubr.f32.vlgmr.msra.gmra.mxu1 %v2596_v1  ;;  %7808 = vmatpush3.msra.mxu0 %v1590_v3  ;;  %v2622_v1 = vrot.slane %v2600_v52, %v8145_v53  ;;  %v1609_v3 = vld [vmem:[#allocation2 + $0x2d10] sm:$0xff]  ;;  %v1646_v52 = vld [vmem:[#allocation2 + $0x2e38] sm:$0xff] }
 0x322   :  { %7843 = vmatpush3.msra.mxu1 %v1622_v4  ;;  %7809 = vmatprep.subr.mxu0 %v1605_v5  ;;  %v1592_v4 = vld [vmem:[#allocation2 + $0x2c88] sm:$0xff] }
 0x323   :  { %7844 = vmatprep.subr.mxu1 %v1637_v6  ;;  %7810 = vmatpush3.msra.mxu0 %v1589_v7  ;;  %v1624_v5 = vld [vmem:[#allocation2 + $0x2d88] sm:$0xff]  ;;  %v2615_v6 = vrot.slane %v2599_v58, %v8145_v53  ;;  %v2629_v7 = vrot.slane %v2601_v59, %v8145_v53  ;;  %v1677_v58 = vld [vmem:[#allocation2 + $0x2f30] sm:$0xff]  ;;  %v94_v59 = vld [vmem:[%s8551_s0 + $0xb8] sm:$0xff] }
 0x324   :  { %7845 = vmatpush3.msra.mxu1 %v1621_v8  ;;  %7811 = vmatprep.subr.mxu0 %v1604_v9  ;;  %v1576_v8 = vld [vmem:[#allocation2 + $0x2c08] sm:$0xff] }
 0x325   :  { %7846 = vmatprep.subr.mxu1 %v1636_v10  ;;  %7812 = vmatpush3.msra.mxu0 %v1588_v11  ;;  %v1608_v9 = vld [vmem:[#allocation2 + $0x2d08] sm:$0xff]  ;;  %v1591_v10 = vld [vmem:[#allocation2 + $0x2c80] sm:$0xff] }
 0x326   :  { %7847 = vmatpush3.msra.mxu1 %v1620_v12  ;;  %7813 = vmatprep.subr.mxu0 %v1603_v13  ;;  %v1623_v11 = vld [vmem:[#allocation2 + $0x2d80] sm:$0xff]  ;;  %v2631_v12 = vcombine.high %v2608_v0, %v2622_v1 }
 0x327   :  { %7848 = vmatprep.subr.mxu1 %v1635_v14  ;;  %7814 = vmatpush3.msra.mxu0 %v1587_v15  ;;  %v1575_v13 = vld [vmem:[#allocation2 + $0x2c00] sm:$0xff]  ;;  %v2630_v14 = vcombine.low %v2608_v0, %v2622_v1  ;;  %v1692_v0 = vld [vmem:[#allocation2 + $0x2fa8] sm:$0xff] }
 0x328   :  { %7849 = vmatpush3.msra.mxu1 %v1619_v16  ;;  %7815 = vmatprep.subr.mxu0 %v1602_v17  ;;  %v1607_v15 = vld [vmem:[#allocation2 + $0x2d00] sm:$0xff]  ;;  %v2633_v16 = vcombine.high %v2615_v6, %v2629_v7  ;;  %v1670_v17 = vld [vmem:[#allocation2 + $0x2ef8] sm:$0xff]  ;;  %v1644_v1 = vld [vmem:[#allocation2 + $0x2e28] sm:$0xff] }
 0x329   :  { %7850 = vmatprep.subr.mxu1 %v1634_v18  ;;  %7816 = vmatpush3.msra.mxu0 %v1586_v19  ;;  %v2632_v18 = vcombine.low %v2615_v6, %v2629_v7  ;;  %v1702_v19 = vld [vmem:[#allocation2 + $0x2ff8] sm:$0xff]  ;;  %v1643_v7 = vld [vmem:[#allocation2 + $0x2e20] sm:$0xff] }
 0x32a   :  { %7851 = vmatpush3.msra.mxu1 %v1618_v20  ;;  %7817 = vmatprep.subr.mxu0 %v1601_v21  ;;  %v1654_v20 = vld [vmem:[#allocation2 + $0x2e78] sm:$0xff] }
 0x32b   :  { %7852 = vmatprep.subr.mxu1 %v1633_v22  ;;  %7818 = vmatpush3.msra.mxu0 %v1585_v23  ;;  %v1686_v21 = vld [vmem:[#allocation2 + $0x2f78] sm:$0xff]  ;;  %v1669_v22 = vld [vmem:[#allocation2 + $0x2ef0] sm:$0xff] }
 0x32c   :  { %7853 = vmatpush3.msra.mxu1 %v1617_v24  ;;  %7819 = vmatprep.subr.mxu0 %v1600_v25  ;;  %v1701_v23 = vld [vmem:[#allocation2 + $0x2ff0] sm:$0xff] }
 0x32d   :  { %7854 = vmatprep.subr.mxu1 %v1632_v26  ;;  %7820 = vmatpush3.msra.mxu0 %v1584_v27  ;;  %v1653_v24 = vld [vmem:[#allocation2 + $0x2e70] sm:$0xff]  ;;  %v1668_v26 = vld [vmem:[#allocation2 + $0x2ee8] sm:$0xff] }
 0x32e   :  { %7855 = vmatpush3.msra.mxu1 %v1616_v28  ;;  %7821 = vmatprep.subr.mxu0 %v1599_v29  ;;  %v1685_v25 = vld [vmem:[#allocation2 + $0x2f70] sm:$0xff]  ;;  %v1700_v27 = vld [vmem:[#allocation2 + $0x2fe8] sm:$0xff] }
 0x32f   :  { %7856 = vmatprep.subr.mxu1 %v1631_v30  ;;  %7822 = vmatpush3.msra.mxu0 %v1583_v31  ;;  %v1652_v28 = vld [vmem:[#allocation2 + $0x2e68] sm:$0xff]  ;;  %v1667_v30 = vld [vmem:[#allocation2 + $0x2ee0] sm:$0xff] }
 0x330   :  { %7857 = vmatpush3.msra.mxu1 %v1615_v32  ;;  %7823 = vmatprep.subr.mxu0 %v1598_v33  ;;  %v1684_v29 = vld [vmem:[#allocation2 + $0x2f68] sm:$0xff]  ;;  %v1699_v31 = vld [vmem:[#allocation2 + $0x2fe0] sm:$0xff] }
 0x331   :  { %7858 = vmatprep.subr.mxu1 %v1630_v34  ;;  %7824 = vmatpush3.msra.mxu0 %v1582_v35  ;;  %v1651_v32 = vld [vmem:[#allocation2 + $0x2e60] sm:$0xff]  ;;  %v1666_v34 = vld [vmem:[#allocation2 + $0x2ed8] sm:$0xff] }
 0x332   :  { %7859 = vmatpush3.msra.mxu1 %v1614_v36  ;;  %7825 = vmatprep.subr.mxu0 %v1597_v37  ;;  %v1683_v33 = vld [vmem:[#allocation2 + $0x2f60] sm:$0xff]  ;;  %v1698_v35 = vld [vmem:[#allocation2 + $0x2fd8] sm:$0xff] }
 0x333   :  { %7860 = vmatprep.subr.mxu1 %v1629_v38  ;;  %7826 = vmatpush3.msra.mxu0 %v1581_v39  ;;  %v1650_v36 = vld [vmem:[#allocation2 + $0x2e58] sm:$0xff]  ;;  %v1665_v38 = vld [vmem:[#allocation2 + $0x2ed0] sm:$0xff] }
 0x334   :  { %7861 = vmatpush3.msra.mxu1 %v1613_v40  ;;  %7827 = vmatprep.subr.mxu0 %v1596_v45  ;;  %v1682_v37 = vld [vmem:[#allocation2 + $0x2f58] sm:$0xff]  ;;  %v1697_v39 = vld [vmem:[#allocation2 + $0x2fd0] sm:$0xff]  ;;  %v1680_v45 = vld [vmem:[#allocation2 + $0x2f48] sm:$0xff] }
 0x335   :  { %7862 = vmatprep.subr.mxu1 %v1628_v46  ;;  %7828 = vmatpush3.msra.mxu0 %v1580_v47  ;;  %v1649_v40 = vld [vmem:[#allocation2 + $0x2e50] sm:$0xff]  ;;  %v1663_v46 = vld [vmem:[#allocation2 + $0x2ec0] sm:$0xff] }
 0x336   :  { %7863 = vmatpush3.msra.mxu1 %v1612_v48  ;;  %7829 = vmatprep.subr.mxu0 %v1595_v49  ;;  %v1695_v47 = vld [vmem:[#allocation2 + $0x2fc0] sm:$0xff] }
 0x337   :  { %7864 = vmatprep.subr.mxu1 %v1627_v50  ;;  %7830 = vmatpush3.msra.mxu0 %v1579_v54  ;;  %v1647_v48 = vld [vmem:[#allocation2 + $0x2e40] sm:$0xff]  ;;  %v1662_v50 = vld [vmem:[#allocation2 + $0x2eb8] sm:$0xff] }
 0x338   :  { %7865 = vmatpush3.msra.mxu1 %v1611_v55  ;;  %7831 = vmatprep.subr.mxu0 %v1594_v56  ;;  %v1679_v49 = vld [vmem:[#allocation2 + $0x2f40] sm:$0xff]  ;;  %v1678_v54 = vld [vmem:[#allocation2 + $0x2f38] sm:$0xff]  ;;  %v1661_v55 = vld [vmem:[#allocation2 + $0x2eb0] sm:$0xff] }
 0x339   :  { %7866 = vmatprep.subr.mxu1 %v1626_v57  ;;  %7832 = vmatpush3.msra.mxu0 %v1578_v60  ;;  %v1693_v56 = vld [vmem:[#allocation2 + $0x2fb0] sm:$0xff]  ;;  %v118_v60 = vld [vmem:[%s8551_s0 + $0x178] sm:$0xff] }
 0x33a   :  { %7867 = vmatpush3.msra.mxu1 %v1610_v61  ;;  %7833 = vmatprep.subr.mxu0 %v1593_v62  ;;  %v1645_v57 = vld [vmem:[#allocation2 + $0x2e30] sm:$0xff]  ;;  %v142_v61 = vld [vmem:[%s8551_s0 + $0x238] sm:$0xff] }
 0x33b   :  { %7868 = vmatprep.subr.mxu1 %v1625_v63  ;;  %7834 = vmatpush3.msra.mxu0 %v1577_v2  ;;  %v166_v62 = vld [vmem:[%s8551_s0 + $0x2f8] sm:$0xff]  ;;  %v1660_v63 = vld [vmem:[#allocation2 + $0x2ea8] sm:$0xff] }
 0x33c   :  { %7869 = vmatpush3.msra.mxu1 %v1609_v3  ;;  %7835 = vmatprep.subr.mxu0 %v1592_v4  ;;  %v1676_v2 = vld [vmem:[#allocation2 + $0x2f28] sm:$0xff]  ;;  %v1659_v3 = vld [vmem:[#allocation2 + $0x2ea0] sm:$0xff]  ;;  %v2636_v6 = vcombine.low %v142_v61, %v166_v62 }
 0x33d   :  { %7870 = vmatprep.subr.mxu1 %v1624_v5  ;;  %7836 = vmatpush3.msra.mxu0 %v1576_v8  ;;  %v1691_v4 = vld [vmem:[#allocation2 + $0x2fa0] sm:$0xff]  ;;  %v2634_v5 = vcombine.low %v94_v59, %v118_v60 }
 0x33e   :  { %7871 = vmatpush3.msra.mxu1 %v1608_v9  ;;  %7837 = vmatprep.subr.mxu0 %v1591_v10  ;;  %v1675_v8 = vld [vmem:[#allocation2 + $0x2f20] sm:$0xff]  ;;  %v2635_v9 = vcombine.high %v94_v59, %v118_v60  ;;  %v2637_v10 = vcombine.high %v142_v61, %v166_v62  ;;  %v6132_v61 = vld [vmem:[#allocation6 + $0x28] sm:$0xff] }
 0x33f   :  { %7872 = vmatprep.subr.mxu1 %v1623_v11  ;;  %7838 = vmatpush3.msra.mxu0 %v1575_v13  ;;  %v1658_v11 = vld [vmem:[#allocation2 + $0x2e98] sm:$0xff] }
 0x340   :  { %5910 = vmatprep.mubr.f32.mxu0 %v2631_v12  ;;  %7873 = vmatpush3.msra.mxu1 %v1607_v15  ;;  %v1690_v12 = vld [vmem:[#allocation2 + $0x2f98] sm:$0xff]  ;;  %v1657_v15 = vld [vmem:[#allocation2 + $0x2e90] sm:$0xff] }
 0x341   :  { %5911 = vmatmul.mubr.f32.vlgmr.msra.gmra.mxu0 %v2630_v14  ;;  %5980 = vmatprep.mubr.f32.mxu1 %v2633_v16  ;;  %v1642_v13 = vld [vmem:[#allocation2 + $0x2e18] sm:$0xff]  ;;  %v1689_v16 = vld [vmem:[#allocation2 + $0x2f90] sm:$0xff] }
 0x342   :  { %7877 = vmatprep.subr.mxu0 %v1670_v17  ;;  %7912 = vmatprep.subr.mxu1 %v1702_v19  ;;  %v1674_v14 = vld [vmem:[#allocation2 + $0x2f18] sm:$0xff]  ;;  %v2644_v17 = vrot.slane %v2634_v5, %v8145_v53  ;;  %v1641_v19 = vld [vmem:[#allocation2 + $0x2e10] sm:$0xff] }
 0x343   :  { %5981 = vmatmul.mubr.f32.vlgmr.msra.gmra.mxu1 %v2632_v18  ;;  %7878 = vmatpush3.msra.mxu0 %v1654_v20  ;;  %v2658_v18 = vrot.slane %v2636_v6, %v8145_v53  ;;  %v1673_v20 = vld [vmem:[#allocation2 + $0x2f10] sm:$0xff]  ;;  %v6130_v5 = vld [vmem:[#allocation6 + $0x18] sm:$0xff] }
 0x344   :  { %7913 = vmatpush3.msra.mxu1 %v1686_v21  ;;  %7879 = vmatprep.subr.mxu0 %v1669_v22  ;;  %v2651_v21 = vrot.slane %v2635_v9, %v8145_v53  ;;  %v2665_v22 = vrot.slane %v2637_v10, %v8145_v53  ;;  %v1671_v53 = vld [vmem:[#allocation2 + $0x2f00] sm:$0xff] }
 0x345   :  { %7914 = vmatprep.subr.mxu1 %v1701_v23  ;;  %7880 = vmatpush3.msra.mxu0 %v1653_v24  ;;  %v1656_v23 = vld [vmem:[#allocation2 + $0x2e88] sm:$0xff] }
 0x346   :  { %7915 = vmatpush3.msra.mxu1 %v1685_v25  ;;  %7881 = vmatprep.subr.mxu0 %v1668_v26  ;;  %v1688_v24 = vld [vmem:[#allocation2 + $0x2f88] sm:$0xff] }
 0x347   :  { %7916 = vmatprep.subr.mxu1 %v1700_v27  ;;  %7882 = vmatpush3.msra.mxu0 %v1652_v28  ;;  %v1640_v25 = vld [vmem:[#allocation2 + $0x2e08] sm:$0xff]  ;;  %v1655_v27 = vld [vmem:[#allocation2 + $0x2e80] sm:$0xff] }
 0x348   :  { %7917 = vmatpush3.msra.mxu1 %v1684_v29  ;;  %7883 = vmatprep.subr.mxu0 %v1667_v30  ;;  %v1672_v26 = vld [vmem:[#allocation2 + $0x2f08] sm:$0xff]  ;;  %v1687_v28 = vld [vmem:[#allocation2 + $0x2f80] sm:$0xff]  ;;  %v2667_v29 = vcombine.high %v2644_v17, %v2658_v18 }
 0x349   :  { %7918 = vmatprep.subr.mxu1 %v1699_v31  ;;  %7884 = vmatpush3.msra.mxu0 %v1651_v32  ;;  %v1639_v30 = vld [vmem:[#allocation2 + $0x2e00] sm:$0xff]  ;;  %v2669_v31 = vcombine.high %v2651_v21, %v2665_v22  ;;  %v2666_v32 = vcombine.low %v2644_v17, %v2658_v18 }
 0x34a   :  { %7919 = vmatpush3.msra.mxu1 %v1683_v33  ;;  %7885 = vmatprep.subr.mxu0 %v1666_v34  ;;  %v2668_v33 = vcombine.low %v2651_v21, %v2665_v22  ;;  %v6142_v34 = vld [vmem:[#allocation6 + $0x78] sm:$0xff] }
 0x34b   :  { %7920 = vmatprep.subr.mxu1 %v1698_v35  ;;  %7886 = vmatpush3.msra.mxu0 %v1650_v36  ;;  %v8101_v35 = vmov 0.0   ;;  %v6141_v36 = vld [vmem:[#allocation6 + $0x70] sm:$0xff] }
 0x34c   :  { %7921 = vmatpush3.msra.mxu1 %v1682_v37  ;;  %7887 = vmatprep.subr.mxu0 %v1665_v38  ;;  %v6140_v37 = vld [vmem:[#allocation6 + $0x68] sm:$0xff]  ;;  %v6139_v38 = vld [vmem:[#allocation6 + $0x60] sm:$0xff] }
 0x34d   :  { %7922 = vmatprep.subr.mxu1 %v1697_v39  ;;  %7888 = vmatpush3.msra.mxu0 %v1649_v40  ;;  %v6138_v39 = vld [vmem:[#allocation6 + $0x58] sm:$0xff]  ;;  %v6137_v40 = vld [vmem:[#allocation6 + $0x50] sm:$0xff] }
 0x34e   :  { %7923 = vmatpush3.msra.mxu1 %v1681_v41  ;;  %7889 = vmatprep.subr.mxu0 %v1664_v42  ;;  %v6136_v41 = vld [vmem:[#allocation6 + $0x48] sm:$0xff]  ;;  %v6299_v42 = vpop.f32.mrf.mxu0 }
 0x34f   :  { %7924 = vmatprep.subr.mxu1 %v1696_v43  ;;  %7890 = vmatpush3.msra.mxu0 %v1648_v44  ;;  %v6135_v43 = vld [vmem:[#allocation6 + $0x40] sm:$0xff]  ;;  %v6134_v44 = vld [vmem:[#allocation6 + $0x38] sm:$0xff] }
 0x350   :  { %7925 = vmatpush3.msra.mxu1 %v1680_v45  ;;  %7891 = vmatprep.subr.mxu0 %v1663_v46  ;;  %v6334_v45 = vpop.f32.mrf.mxu1  ;;  %v6300_v46 = vpop.f32.mrf.mxu0 }
 0x351   :  { %7926 = vmatprep.subr.mxu1 %v1695_v47  ;;  %7892 = vmatpush3.msra.mxu0 %v1647_v48  ;;  %v6133_v47 = vld [vmem:[#allocation6 + $0x30] sm:$0xff] }
 0x352   :  { %7927 = vmatpush3.msra.mxu1 %v1679_v49  ;;  %7893 = vmatprep.subr.mxu0 %v1662_v50  ;;  %v6369_v48 = vpop.f32.mrf.mxu0  ;;  %v6301_v49 = vadd.f32 %v6300_v46, %v6299_v42  ;;  %v6265_v50 = vld [vmem:[#allocation4] ss:$0 sm:$0xff] }
 0x353   :  { %7928 = vmatprep.subr.mxu1 %v1694_v51  ;;  %7894 = vmatpush3.msra.mxu0 %v1646_v52  ;;  %v6335_v51 = vpop.f32.mrf.mxu1 }
 0x354   :  { %7929 = vmatpush3.msra.mxu1 %v1678_v54  ;;  %7895 = vmatprep.subr.mxu0 %v1661_v55  ;;  %v6370_v54 = vpop.f32.mrf.mxu0  ;;  %v2833_v55 = vadd.f32 %v6301_v49, %v6265_v50 }
 0x355   :  { %7930 = vmatprep.subr.mxu1 %v1693_v56  ;;  %7896 = vmatpush3.msra.mxu0 %v1645_v57  ;;  %v6404_v52 = vpop.f32.mrf.mxu1  ;;  %v6336_v56 = vadd.f32 %v6335_v51, %v6334_v45 }
 0x356   :  { %7931 = vmatpush3.msra.mxu1 %v1677_v58  ;;  %7897 = vmatprep.subr.mxu0 %v1660_v63  ;;  %v6439_v57 = vpop.f32.mrf.mxu0  ;;  %v6371_v58 = vadd.f32 %v6370_v54, %v6369_v48 }
 0x357   :  { %7932 = vmatprep.subr.mxu1 %v1692_v0  ;;  %7898 = vmatpush3.msra.mxu0 %v1644_v1  ;;  %v6405_v59 = vpop.f32.mrf.mxu1  ;;  %v2903_v60 = vadd.f32 %v6336_v56, %v2833_v55 }
 0x358   :  { %7933 = vmatpush3.msra.mxu1 %v1676_v2  ;;  %7899 = vmatprep.subr.mxu0 %v1659_v3  ;;  %v6440_v63 = vpop.f32.mrf.mxu0  ;;  %v6406_v1 = vadd.f32 %v6405_v59, %v6404_v52  ;;  %v6131_v2 = vld [vmem:[#allocation6 + $0x20] sm:$0xff] }
 0x359   :  { %7934 = vmatprep.subr.mxu1 %v1691_v4  ;;  %7900 = vmatpush3.msra.mxu0 %v1643_v7  ;;  %v6474_v62 = vpop.f32.mrf.mxu1  ;;  %v2973_v0 = vadd.f32 %v6371_v58, %v2903_v60  ;;  %v6441_v4 = vadd.f32 %v6440_v63, %v6439_v57 }
 0x35a   :  { %7935 = vmatpush3.msra.mxu1 %v1675_v8  ;;  %7901 = vmatprep.subr.mxu0 %v1658_v11  ;;  %v6509_v3 = vpop.f32.mrf.mxu0  ;;  %v6129_v8 = vld [vmem:[#allocation6 + $0x10] sm:$0xff] }
 0x35b   :  { %7936 = vmatprep.subr.mxu1 %v1690_v12  ;;  %7902 = vmatpush3.msra.mxu0 %v1642_v13  ;;  %v6475_v6 = vpop.f32.mrf.mxu1  ;;  %v3043_v7 = vadd.f32 %v6406_v1, %v2973_v0  ;;  %v6128_v13 = vld [vmem:[#allocation6 + $0x8] sm:$0xff] }
 0x35c   :  { %7937 = vmatpush3.msra.mxu1 %v1674_v14  ;;  %7903 = vmatprep.subr.mxu0 %v1657_v15  ;;  %v6510_v10 = vpop.f32.mrf.mxu0  ;;  %v6476_v12 = vadd.f32 %v6475_v6, %v6474_v62 }
 0x35d   :  { %7938 = vmatprep.subr.mxu1 %v1689_v16  ;;  %7904 = vmatpush3.msra.mxu0 %v1641_v19  ;;  %v6544_v9 = vpop.f32.mrf.mxu1  ;;  %v3113_v11 = vadd.f32 %v6441_v4, %v3043_v7  ;;  %v6511_v15 = vadd.f32 %v6510_v10, %v6509_v3  ;;  %v6127_v16 = vld [vmem:[#allocation6] sm:$0xff] }
 0x35e   :  { %7939 = vmatpush3.msra.mxu1 %v1673_v20  ;;  %7905 = vmatprep.subr.mxu0 %v1656_v23  ;;  %v6579_v14 = vpop.f32.mrf.mxu0 }
 0x35f   :  { %7940 = vmatprep.subr.mxu1 %v1688_v24  ;;  %7906 = vmatpush3.msra.mxu0 %v1640_v25  ;;  %v6545_v17 = vpop.f32.mrf.mxu1  ;;  %v3183_v18 = vadd.f32 %v6476_v12, %v3113_v11 }
 0x360   :  { %7941 = vmatpush3.msra.mxu1 %v1672_v26  ;;  %7907 = vmatprep.subr.mxu0 %v1655_v27  ;;  %v6580_v20 = vpop.f32.mrf.mxu0  ;;  %v6546_v22 = vadd.f32 %v6545_v17, %v6544_v9 }
 0x361   :  { %7942 = vmatprep.subr.mxu1 %v1687_v28  ;;  %7908 = vmatpush3.msra.mxu0 %v1639_v30  ;;  %v6614_v19 = vpop.f32.mrf.mxu1  ;;  %v3253_v21 = vadd.f32 %v6511_v15, %v3183_v18  ;;  %v6581_v24 = vadd.f32 %v6580_v20, %v6579_v14 }
 0x362   :  { %6050 = vmatprep.mubr.f32.mxu0 %v2667_v29  ;;  %7943 = vmatpush3.msra.mxu1 %v1671_v53  ;;  %v6649_v23 = vpop.f32.mrf.mxu0 }
 0x363   :  { %6120 = vmatprep.mubr.f32.mxu1 %v2669_v31  ;;  %6051 = vmatmul.mubr.f32.vlgmr.msra.gmra.mxu0 %v2666_v32  ;;  %v6615_v25 = vpop.f32.mrf.mxu1  ;;  %v3323_v26 = vadd.f32 %v6546_v22, %v3253_v21 }
 0x364   :  { %6121 = vmatmul.mubr.f32.vlgmr.msra.gmra.mxu1 %v2668_v33  ;;  %7964 = vmatprep.subr.mxu0 %v8101_v35  ;;  %v6650_v28 = vpop.f32.mrf.mxu0  ;;  %v6616_v30 = vadd.f32 %v6615_v25, %v6614_v19 }
 0x365   :  { %7965 = vmatpush3.msra.mxu0 %v6142_v34  ;;  %7996 = vmatprep.mubr.msk.f32.mxu0 %vm8102_vm0, %v8101_v35  ;;  %v6684_v27 = vpop.f32.mrf.mxu1  ;;  %v3393_v29 = vadd.f32 %v6581_v24, %v3323_v26  ;;  %v6651_v53 = vadd.f32 %v6650_v28, %v6649_v23 }
 0x366   :  { %7966 = vmatprep.subr.mxu0 %v8101_v35  ;;  %v6719_v31 = vpop.f32.mrf.mxu0 }
 0x367   :  { %7967 = vmatpush3.msra.mxu0 %v6141_v36  ;;  %v6685_v32 = vpop.f32.mrf.mxu1  ;;  %v3463_v33 = vadd.f32 %v6616_v30, %v3393_v29 }
 0x368   :  { %7968 = vmatprep.subr.mxu0 %v8101_v35  ;;  %v6720_v36 = vpop.f32.mrf.mxu0 }
 0x369   :  { %7969 = vmatpush3.msra.mxu0 %v6140_v37  ;;  %v6754_v34 = vpop.f32.mrf.mxu1  ;;  %v6686_v37 = vadd.f32 %v6685_v32, %v6684_v27 }
 0x36a   :  { %7970 = vmatprep.subr.mxu0 %v8101_v35 }
 0x36b   :  { %7971 = vmatpush3.msra.mxu0 %v6139_v38  ;;  %v6789_v38 = vpop.f32.mrf.mxu0 }
 0x36c   :  { %7972 = vmatprep.subr.mxu0 %v8101_v35 }
 0x36d   :  { %7973 = vmatpush3.msra.mxu0 %v6138_v39  ;;  %v6721_v39 = vadd.f32 %v6720_v36, %v6719_v31 }
 0x36e   :  { %7974 = vmatprep.subr.mxu0 %v8101_v35 }
 0x36f   :  { %7975 = vmatpush3.msra.mxu0 %v6137_v40  ;;  %v6755_v40 = vpop.f32.mrf.mxu1 }
 0x370   :  { %7976 = vmatprep.subr.mxu0 %v8101_v35  ;;  %v6756_v45 = vadd.f32 %v6755_v40, %v6754_v34 }
 0x371   :  { %7977 = vmatpush3.msra.mxu0 %v6136_v41  ;;  %v6824_v42 = vpop.f32.mrf.mxu1 }
 0x372   :  { %7978 = vmatprep.subr.mxu0 %v8101_v35 }
 0x373   :  { %7979 = vmatpush3.msra.mxu0 %v6135_v43  ;;  %v6790_v43 = vpop.f32.mrf.mxu0  ;;  %v6825_v48 = vpop.f32.mrf.mxu1 }
 0x374   :  { %7980 = vmatprep.subr.mxu0 %v8101_v35  ;;  %v6826_v54 = vadd.f32 %v6825_v48, %v6824_v42 }
 0x375   :  { %7981 = vmatpush3.msra.mxu0 %v6134_v44  ;;  %v6859_v46 = vpop.f32.mrf.mxu0  ;;  %v6894_v50 = vpop.f32.mrf.mxu1 }
 0x376   :  { %7982 = vmatprep.subr.mxu0 %v8101_v35 }
 0x377   :  { %7983 = vmatpush3.msra.mxu0 %v6133_v47  ;;  %v6791_v47 = vadd.f32 %v6790_v43, %v6789_v38  ;;  %v6860_v51 = vpop.f32.mrf.mxu0  ;;  %v6895_v57 = vpop.f32.mrf.mxu1 }
 0x378   :  { %7984 = vmatprep.subr.mxu0 %v8101_v35  ;;  %v6861_v56 = vadd.f32 %v6860_v51, %v6859_v46  ;;  %v6896_v62 = vadd.f32 %v6895_v57, %v6894_v50 }
 0x379   :  { %7985 = vmatpush3.msra.mxu0 %v6132_v61  ;;  %v6929_v55 = vpop.f32.mrf.mxu0  ;;  %v6964_v59 = vpop.f32.mrf.mxu1 }
 0x37a   :  { %7986 = vmatprep.subr.mxu0 %v8101_v35 }
 0x37b   :  { %7987 = vmatpush3.msra.mxu0 %v6131_v2  ;;  %v6930_v60 = vpop.f32.mrf.mxu0  ;;  %v6965_v1 = vpop.f32.mrf.mxu1 }
 0x37c   :  { %7988 = vmatprep.subr.mxu0 %v8101_v35  ;;  %v6931_v0 = vadd.f32 %v6930_v60, %v6929_v55  ;;  %v6966_v6 = vadd.f32 %v6965_v1, %v6964_v59 }
 0x37d   :  { %7989 = vmatpush3.msra.mxu0 %v6130_v5  ;;  %v6999_v63 = vpop.f32.mrf.mxu0  ;;  %v7034_v3 = vpop.f32.mrf.mxu1 }
 0x37e   :  { %7990 = vmatprep.subr.mxu0 %v8101_v35 }
 0x37f   :  { %7991 = vmatpush3.msra.mxu0 %v6129_v8  ;;  %v7000_v4 = vpop.f32.mrf.mxu0  ;;  %v7035_v9 = vpop.f32.mrf.mxu1 }
 0x380   :  { %7992 = vmatprep.subr.mxu0 %v8101_v35  ;;  %v7001_v8 = vadd.f32 %v7000_v4, %v6999_v63  ;;  %v7036_v14 = vadd.f32 %v7035_v9, %v7034_v3 }
 0x381   :  { %7993 = vmatpush3.msra.mxu0 %v6128_v13  ;;  %v7069_v7 = vpop.f32.mrf.mxu0  ;;  %v7104_v11 = vpop.f32.mrf.mxu1 }
 0x382   :  { %7994 = vmatprep.subr.mxu0 %v8101_v35  ;;  %v3533_v35 = vadd.f32 %v6651_v53, %v3463_v33 }
 0x383   :  { %7995 = vmatpush3.msra.mxu0 %v6127_v16  ;;  %v7070_v12 = vpop.f32.mrf.mxu0  ;;  %v7105_v17 = vpop.f32.mrf.mxu1 }
 0x384   :  { %v3603_v41 = vadd.f32 %v6686_v37, %v3533_v35  ;;  %v7071_v16 = vadd.f32 %v7070_v12, %v7069_v7  ;;  %v7106_v22 = vadd.f32 %v7105_v17, %v7104_v11 }
 0x385   :  { %v7139_v15 = vpop.f32.mrf.mxu0  ;;  %v7174_v19 = vpop.f32.mrf.mxu1 }
 0x386   :  { %v3673_v44 = vadd.f32 %v6721_v39, %v3603_v41 }
 0x387   :  { %v7140_v20 = vpop.f32.mrf.mxu0  ;;  %v7175_v25 = vpop.f32.mrf.mxu1 }
 0x388   :  { %v3743_v49 = vadd.f32 %v6756_v45, %v3673_v44  ;;  %v7141_v24 = vadd.f32 %v7140_v20, %v7139_v15  ;;  %v7176_v30 = vadd.f32 %v7175_v25, %v7174_v19 }
 0x389   :  { %v7209_v23 = vpop.f32.mrf.mxu0  ;;  %v7244_v27 = vpop.f32.mrf.mxu1 }
 0x38a   :  { %v3813_v52 = vadd.f32 %v6791_v47, %v3743_v49 }
 0x38b   :  { %v7210_v28 = vpop.f32.mrf.mxu0  ;;  %v7245_v32 = vpop.f32.mrf.mxu1 }
 0x38c   :  { %v3883_v58 = vadd.f32 %v6826_v54, %v3813_v52  ;;  %v7211_v53 = vadd.f32 %v7210_v28, %v7209_v23  ;;  %v7246_v37 = vadd.f32 %v7245_v32, %v7244_v27 }
 0x38d   :  { %v7279_v31 = vpop.f32.mrf.mxu0  ;;  %v7314_v34 = vpop.f32.mrf.mxu1 }
 0x38e   :  { %v3953_v61 = vadd.f32 %v6861_v56, %v3883_v58 }
 0x38f   :  { %v7280_v36 = vpop.f32.mrf.mxu0  ;;  %v7315_v40 = vpop.f32.mrf.mxu1 }
 0x390   :  { %v4023_v2 = vadd.f32 %v6896_v62, %v3953_v61  ;;  %v7281_v39 = vadd.f32 %v7280_v36, %v7279_v31  ;;  %v7316_v45 = vadd.f32 %v7315_v40, %v7314_v34 }
 0x391   :  { %v7349_v38 = vpop.f32.mrf.mxu0  ;;  %v7384_v42 = vpop.f32.mrf.mxu1 }
 0x392   :  { %v4093_v5 = vadd.f32 %v6931_v0, %v4023_v2 }
 0x393   :  { %v7350_v43 = vpop.f32.mrf.mxu0  ;;  %v7385_v48 = vpop.f32.mrf.mxu1 }
 0x394   :  { %v4163_v10 = vadd.f32 %v6966_v6, %v4093_v5  ;;  %v7351_v47 = vadd.f32 %v7350_v43, %v7349_v38  ;;  %v7386_v54 = vadd.f32 %v7385_v48, %v7384_v42 }
 0x395   :  { %v7419_v46 = vpop.f32.mrf.mxu0  ;;  %v7454_v50 = vpop.f32.mrf.mxu1 }
 0x396   :  { %v4233_v13 = vadd.f32 %v7001_v8, %v4163_v10 }
 0x397   :  { %v7420_v51 = vpop.f32.mrf.mxu0  ;;  %v7455_v57 = vpop.f32.mrf.mxu1 }
 0x398   :  { %v4303_v18 = vadd.f32 %v7036_v14, %v4233_v13  ;;  %v7421_v56 = vadd.f32 %v7420_v51, %v7419_v46  ;;  %v7456_v62 = vadd.f32 %v7455_v57, %v7454_v50 }
 0x399   :  { %v7489_v55 = vpop.f32.mrf.mxu0  ;;  %v7524_v59 = vpop.f32.mrf.mxu1 }
 0x39a   :  { %v4373_v21 = vadd.f32 %v7071_v16, %v4303_v18 }
 0x39b   :  { %v7490_v60 = vpop.f32.mrf.mxu0  ;;  %v7525_v1 = vpop.f32.mrf.mxu1 }
 0x39c   :  { %v4443_v26 = vadd.f32 %v7106_v22, %v4373_v21  ;;  %v7491_v0 = vadd.f32 %v7490_v60, %v7489_v55  ;;  %v7526_v6 = vadd.f32 %v7525_v1, %v7524_v59 }
 0x39d   :  { %v7559_v63 = vpop.f32.mrf.mxu0  ;;  %v7594_v3 = vpop.f32.mrf.mxu1 }
 0x39e   :  { %v4513_v29 = vadd.f32 %v7141_v24, %v4443_v26 }
 0x39f   :  { %v7560_v4 = vpop.f32.mrf.mxu0  ;;  %v7595_v9 = vpop.f32.mrf.mxu1 }
 0x3a0   :  { %v4583_v33 = vadd.f32 %v7176_v30, %v4513_v29  ;;  %v7561_v8 = vadd.f32 %v7560_v4, %v7559_v63  ;;  %v7596_v14 = vadd.f32 %v7595_v9, %v7594_v3 }
 0x3a1   :  { %v7629_v7 = vpop.f32.mrf.mxu0  ;;  %v7664_v11 = vpop.f32.mrf.mxu1 }
 0x3a2   :  { %v4653_v35 = vadd.f32 %v7211_v53, %v4583_v33 }
 0x3a3   :  { %v7630_v12 = vpop.f32.mrf.mxu0  ;;  %v7665_v17 = vpop.f32.mrf.mxu1 }
 0x3a4   :  { %v4723_v41 = vadd.f32 %v7246_v37, %v4653_v35  ;;  %v7631_v16 = vadd.f32 %v7630_v12, %v7629_v7  ;;  %v7666_v22 = vadd.f32 %v7665_v17, %v7664_v11 }
 0x3a6   :  { %v4793_v44 = vadd.f32 %v7281_v39, %v4723_v41 }
 0x3a8   :  { %v4863_v49 = vadd.f32 %v7316_v45, %v4793_v44 }
 0x3aa   :  { %v4933_v52 = vadd.f32 %v7351_v47, %v4863_v49 }
 0x3ac   :  { %v5003_v58 = vadd.f32 %v7386_v54, %v4933_v52  ;;  %v6266_v54 = vld [vmem:[#allocation7] ss:$0 sm:$0xff] }
 0x3ae   :  { %v5073_v61 = vadd.f32 %v7421_v56, %v5003_v58 }
 0x3b0   :  { %v5143_v2 = vadd.f32 %v7456_v62, %v5073_v61 }
 0x3b2   :  { %v5213_v5 = vadd.f32 %v7491_v0, %v5143_v2 }
 0x3b4   :  { %v5283_v10 = vadd.f32 %v7526_v6, %v5213_v5 }
 0x3b6   :  { %v5353_v13 = vadd.f32 %v7561_v8, %v5283_v10 }
 0x3b8   :  { %v5423_v18 = vadd.f32 %v7596_v14, %v5353_v13 }
 0x3ba   :  { %v5493_v21 = vadd.f32 %v7631_v16, %v5423_v18 }
 0x3bc   :  { %v5563_v26 = vadd.f32 %v7666_v22, %v5493_v21 }
 0x3bd   :  { %v7699_v15 = vpop.f32.mrf.mxu0 }
 0x3bf   :  { %v7734_v19 = vpop.f32.mrf.mxu1  ;;  %v7700_v20 = vpop.f32.mrf.mxu0 }
 0x3c0   :  { %v7701_v24 = vadd.f32 %v7700_v20, %v7699_v15 }
 0x3c1   :  { %v7735_v25 = vpop.f32.mrf.mxu1 }
 0x3c2   :  { %v5633_v29 = vadd.f32 %v7701_v24, %v5563_v26  ;;  %v7736_v30 = vadd.f32 %v7735_v25, %v7734_v19 }
 0x3c4   :  { %v5703_v33 = vadd.f32 %v7736_v30, %v5633_v29 }
 0x3df   :  { %v7769_v23 = vpop.f32.mrf.mxu0 }
 0x3e1   :  { %v7804_v27 = vpop.f32.mrf.mxu1  ;;  %v7770_v28 = vpop.f32.mrf.mxu0 }
 0x3e2   :  { %v7771_v53 = vadd.f32 %v7770_v28, %v7769_v23 }
 0x3e3   :  { %v7805_v32 = vpop.f32.mrf.mxu1 }
 0x3e4   :  { %v5773_v35 = vadd.f32 %v7771_v53, %v5703_v33  ;;  %v7806_v37 = vadd.f32 %v7805_v32, %v7804_v27 }
 0x3e6   :  { %v5843_v40 = vadd.f32 %v7806_v37, %v5773_v35 }
 0x401   :  { %v7839_v31 = vpop.f32.mrf.mxu0 }
 0x403   :  { %v7874_v34 = vpop.f32.mrf.mxu1  ;;  %v7840_v36 = vpop.f32.mrf.mxu0 }
 0x404   :  { %v7841_v38 = vadd.f32 %v7840_v36, %v7839_v31 }
 0x405   :  { %v7875_v39 = vpop.f32.mrf.mxu1 }
 0x406   :  { %v5913_v41 = vadd.f32 %v7841_v38, %v5843_v40  ;;  %v7876_v42 = vadd.f32 %v7875_v39, %v7874_v34 }
 0x408   :  { %v5983_v47 = vadd.f32 %v7876_v42, %v5913_v41 }
 0x423   :  { %v7909_v43 = vpop.f32.mrf.mxu0 }
 0x424   :  { %v7944_v44 = vpop.f32.mrf.mxu1 }
 0x425   :  { %v7910_v45 = vpop.f32.mrf.mxu0 }
 0x426   :  { %v7945_v46 = vpop.f32.mrf.mxu1  ;;  %v7911_v48 = vadd.f32 %v7910_v45, %v7909_v43 }
 0x427   :  { %v7946_v50 = vadd.f32 %v7945_v46, %v7944_v44 }
 0x428   :  { %v6053_v49 = vadd.f32 %v7911_v48, %v5983_v47 }
 0x42a   :  { %v6123_v51 = vadd.f32 %v7946_v50, %v6053_v49 }
 0x42c   :  { %v6126_v52 = vmax.f32 %v6123_v51, 0.0 }
 0x42e   :  { %7997 = vmatmul.mubr.f32.vlgmr.msra.gmra.mxu0 %v6126_v52 }
 0x4ee   :  { %v6216_v55 = vpop.f32.mrf.mxu0 }
 0x4ef   :  { %v6217_v56 = vadd.f32 %v6266_v54, %v6216_v55 }
 0x4f0   :  { %v7998_v57 = vpop.f32.mrf.mxu0 }
 0x4f1   :  { %6220 = vst [vmem:[#allocation9] sm:$0xff] %v6217_v56 }
 0x4f8   :  { %v6239_v58 = vld [vmem:[#allocation9] sm:$0x3] }
 0x4f9   :  { %6240 = vst [vmem:[%s8556_s5] sm:$0x3] %v6239_v58 }
 0x4fa   :  { %6258 = vsyncpa [#allocation3], 1 }
 0x4fb   :  { %6259 = vsyncpa [#allocation5], 1 }
 0x4fc   :  { %6260 = vsyncpa [#allocation8], 1 }

</bundles_post_ra>
